<compile_context>
chip_gen: v7x
topology: tpu7x:2x2x1
jax: 0.10.0
libtpu: 0.0.40
codegen_flags: <defaults>
</compile_context>

<pallas_src>
import functools
import math

import jax
import jax.numpy as jnp
from jax import lax
from jax.experimental import pallas as pl
from jax.experimental.pallas import tpu as pltpu

RMS_EPS = 1e-6  # LlamaConfig.rms_norm_eps default


def _rms_norm(h, w):
    var = jnp.mean(h * h, axis=-1, keepdims=True)
    return h * lax.rsqrt(var + RMS_EPS) * w


def _rotate_half(x):
    hd = x.shape[-1]
    return jnp.concatenate([-x[:, hd // 2:], x[:, :hd // 2]], axis=-1)


def hybrid_kernel(x_ref, pos_ref, rms1_ref, wqkv_ref, wo_ref, cos_ref, sin_ref,
                  rms2_ref, wgu_ref, wd_ref, o_ref, ctx_ref, *, n_head):
    S = x_ref.shape[1]
    D = x_ref.shape[2]
    hd = D // n_head
    hd2 = hd // 2
    scale = 1.0 / math.sqrt(hd)
    neg_big = jnp.finfo(jnp.float32).min

    # --- absolute positional embedding ---
    h = x_ref[0] + pos_ref[...]                        # (S, D) f32

    # --- residual marker #1 (initial residual == 0) ---
    res = h

    # --- rms norm #1 (f32 VPU math) ---
    hn = _rms_norm(h, rms1_ref[...])

    # --- llama attention ---
    # single (D, 3D) bf16 projection: [Q | K | V], f32 accumulation
    qkv = jnp.dot(hn.astype(jnp.bfloat16), wqkv_ref[...],
                  preferred_element_type=jnp.float32)  # (S, 3D) f32

    c = cos_ref[...]                                   # (S, hd/2) f32
    s = sin_ref[...]                                   # (S, hd/2) f32

    row = lax.broadcasted_iota(jnp.int32, (S, S), 0)
    col = lax.broadcasted_iota(jnp.int32, (S, S), 1)
    causal = col <= row

    def rope_halves(xh):
        # Exact rotate_half RoPE expressed as two half-width outputs (cos/sin
        # repeat across halves), so no lane shuffle / concat is ever needed.
        a = xh[:, :hd2]
        b = xh[:, hd2:]
        return ((a * c - b * s).astype(jnp.bfloat16),
                (b * c + a * s).astype(jnp.bfloat16))

    dn = (((1,), (1,)), ((), ()))  # contract last dims (q . k^T)

    # TODO(synk): trace-time head loop is fine for n_head=4; see header TODO
    #             for the batched / flash-style restructure at realistic dims.
    for head in range(n_head):
        lo = head * hd
        qf, qs = rope_halves(qkv[:, lo:lo + hd])
        kf, ks = rope_halves(qkv[:, D + lo:D + lo + hd])
        vh = qkv[:, 2 * D + lo:2 * D + lo + hd].astype(jnp.bfloat16)

        # q_rope . k_rope = (first-half contraction) + (second-half
        # contraction): same FLOPs as one matmul, bf16 operands, f32 acc.
        sc = (lax.dot_general(qf, kf, dn, preferred_element_type=jnp.float32) +
              lax.dot_general(qs, ks, dn, preferred_element_type=jnp.float32))
        sc = sc * scale
        sc = jnp.where(causal, sc, neg_big)

        m = jnp.max(sc, axis=-1, keepdims=True)
        e = jnp.exp(sc - m)
        l = jnp.sum(e, axis=-1, keepdims=True)
        p = (e * pl.reciprocal(l, approx=True)).astype(jnp.bfloat16)

        ctx_ref[:, lo:lo + hd] = jnp.dot(
            p, vh, preferred_element_type=jnp.float32).astype(jnp.bfloat16)

    # single full-width output projection from the bf16 staged contexts
    attn_out = jnp.dot(ctx_ref[...], wo_ref[...],
                       preferred_element_type=jnp.float32)

    # --- residual marker #2 ---
    h = res + attn_out
    res = h

    # --- rms norm #2 ---
    hn2 = _rms_norm(h, rms2_ref[...])

    # --- llama mlp: down(silu(gate(x)) * up(x)), gate|up fused ---
    gu = jnp.dot(hn2.astype(jnp.bfloat16), wgu_ref[...],
                 preferred_element_type=jnp.float32)   # (S, 2I)
    I = wgu_ref.shape[1] // 2
    g = gu[:, :I]
    u = gu[:, I:]
    act = (g * jax.nn.sigmoid(g) * u).astype(jnp.bfloat16)
    mlp_out = jnp.dot(act, wd_ref[...], preferred_element_type=jnp.float32)

    # --- residual marker #3 ---
    o_ref[0] = res + mlp_out


def prepare_params(p, n_head):
    """One-time weight prep (hoisted out of the per-call forward): fuse and
    bf16-cast the projection weights and keep only the (S, hd/2) RoPE half
    tables (cos/sin repeat across the two head-dim halves)."""
    hd = p['wq_t'].shape[1] // n_head
    return dict(
        pos=p['pos'],
        rms1=p['rms1'],
        rms2=p['rms2'],
        w_qkv=jnp.concatenate([p['wq_t'], p['wk_t'], p['wv_t']],
                              axis=1).astype(jnp.bfloat16),        # (D, 3D)
        wo=p['wo_t'].astype(jnp.bfloat16),                         # (D, D)
        w_gu=jnp.concatenate([p['gate_t'], p['up_t']],
                             axis=1).astype(jnp.bfloat16),         # (D, 2I)
        w_down=p['down_t'].astype(jnp.bfloat16),                   # (I, D)
        cos_half=p['cos'][:, :hd // 2],                            # (S, hd/2)
        sin_half=p['sin'][:, :hd // 2],                            # (S, hd/2)
    )


def _forward(x, prep, n_head, *, tuned):
    B, S, D = x.shape
    I = prep['w_down'].shape[0]
    hd2 = prep['cos_half'].shape[1]

    kernel = functools.partial(hybrid_kernel, n_head=n_head)

    def invariant(shape):
        # Grid-invariant operand (weights / norms / tables): same block every
        # grid step, so double-buffering buys nothing -- single-buffer it to
        # halve its VMEM residency (matters most on v7x's 64 MiB).
        kwargs = {}
        if tuned:
            kwargs['pipeline_mode'] = pl.Buffered(1)
        return pl.BlockSpec(shape, lambda b: (0,) * len(shape), **kwargs)

    cp = dict(dimension_semantics=("parallel",))
    if tuned:
        # Explicit scoped-VMEM budget (defaults: 16 MiB v5e / 32 MiB v6e,v7x).
        # Re-derive per generation at realistic shapes (~100 MiB v5e/v6e,
        # ~48 MiB v7x).
        cp['vmem_limit_bytes'] = 48 * 1024 * 1024

    out = pl.pallas_call(
        kernel,
        out_shape=jax.ShapeDtypeStruct((B, S, D), jnp.float32),
        grid_spec=pltpu.PrefetchScalarGridSpec(
            num_scalar_prefetch=0,
            grid=(B,),
            in_specs=[
                pl.BlockSpec((1, S, D), lambda b: (b, 0, 0)),  # x, per-batch
                invariant((S, D)),        # positional embedding
                invariant((1, D)),        # rms norm 1 weight
                invariant((D, 3 * D)),    # [Wq | Wk | Wv]^T, bf16
                invariant((D, D)),        # Wo^T, bf16
                invariant((S, hd2)),      # rope cos half-table
                invariant((S, hd2)),      # rope sin half-table
                invariant((1, D)),        # rms norm 2 weight
                invariant((D, 2 * I)),    # [W_gate | W_up]^T, bf16
                invariant((I, D)),        # W_down^T, bf16
            ],
            out_specs=pl.BlockSpec((1, S, D), lambda b: (b, 0, 0)),
            scratch_shapes=[pltpu.VMEM((S, D), jnp.bfloat16)],  # staged ctx
        ),
        compiler_params=pltpu.CompilerParams(**cp),
    )(x, prep['pos'], prep['rms1'], prep['w_qkv'], prep['wo'],
      prep['cos_half'], prep['sin_half'], prep['rms2'],
      prep['w_gu'], prep['w_down'])
    return jax.block_until_ready(out)


def hybrid_backbone(x, prep, n_head):
    try:
        return _forward(x, prep, n_head, tuned=True)
    except Exception:
        # pl.Buffered(1) / vmem_limit_bytes knob rejected on this jax/libtpu
        # build -- fall back to the default pipeline config (identical math).
        return _forward(x, prep, n_head, tuned=False)


def reference(x, p, n_head):
    """Pure-JAX f32 replica of the HybridBackbone forward (PyTorch trace)."""
    B, S, D = x.shape
    hd = D // n_head
    scale = 1.0 / math.sqrt(hd)
    row = lax.broadcasted_iota(jnp.int32, (S, S), 0)
    col = lax.broadcasted_iota(jnp.int32, (S, S), 1)
    mask = jnp.where(col > row, jnp.finfo(jnp.float32).min, 0.0)

    def one(xb):
        h = xb + p['pos']
        res = h
        hn = _rms_norm(h, p['rms1'])
        attn_out = jnp.zeros((S, D), jnp.float32)
        for head in range(n_head):
            lo, hi = head * hd, (head + 1) * hd
            q = hn @ p['wq_t'][:, lo:hi]
            k = hn @ p['wk_t'][:, lo:hi]
            v = hn @ p['wv_t'][:, lo:hi]
            q = q * p['cos'] + _rotate_half(q) * p['sin']
            k = k * p['cos'] + _rotate_half(k) * p['sin']
            s = q @ k.T * scale + mask
            pr = jax.nn.softmax(s, axis=-1)
            attn_out = attn_out + (pr @ v) @ p['wo_t'][lo:hi, :]
        h = res + attn_out
        res = h
        hn2 = _rms_norm(h, p['rms2'])
        g = hn2 @ p['gate_t']
        u = hn2 @ p['up_t']
        return res + (g * jax.nn.sigmoid(g) * u) @ p['down_t']

    return jax.vmap(one)(x)


if __name__ == "__main__":
    B, S, D, n_head = 2, 8, 32, 4
    hd = D // n_head
    rope_theta = 10000.0

    key = jax.random.PRNGKey(0)
    keys = jax.random.split(key, 12)
    init = lambda k, shape: (0.05 * jax.random.normal(k, shape)).astype(jnp.float32)

    x = jax.random.normal(keys[0], (B, S, D), jnp.float32)
    params = dict(
        pos=init(keys[1], (S, D)),
        rms1=(1.0 + 0.05 * jax.random.normal(keys[9], (1, D))).astype(jnp.float32),
        rms2=(1.0 + 0.05 * jax.random.normal(keys[10], (1, D))).astype(jnp.float32),
        wq_t=init(keys[2], (D, D)),
        wk_t=init(keys[3], (D, D)),
        wv_t=init(keys[4], (D, D)),
        wo_t=init(keys[5], (D, D)),
        gate_t=init(keys[6], (D, 4 * D)),
        up_t=init(keys[7], (D, 4 * D)),
        down_t=init(keys[8], (4 * D, D)),
    )
    # RoPE tables (position-dependent constants)
    inv_freq = 1.0 / (rope_theta ** (jnp.arange(0, hd, 2, dtype=jnp.float32) / hd))
    freqs = jnp.arange(S, dtype=jnp.float32)[:, None] * inv_freq[None, :]
    emb = jnp.concatenate([freqs, freqs], axis=-1)
    params['cos'] = jnp.cos(emb)
    params['sin'] = jnp.sin(emb)

    prep = prepare_params(params, n_head)          # one-time weight prep
    out = jax.block_until_ready(hybrid_backbone(x, prep, n_head))
    ref = reference(x, params, n_head)
    assert out.shape == (B, S, D), out.shape
    assert jnp.allclose(out, ref, atol=5e-2, rtol=5e-2), float(
        jnp.max(jnp.abs(out - ref)))
    print("KERNEL_OK")
</pallas_src>

<mosaic_0001>
module attributes {stable_mosaic.version = 11 : i64} {
  func.func @hybrid_kernel(%arg0: i32, %arg1: memref<1x8x32xf32, #tpu.memory_space<vmem>>, %arg2: memref<8x32xf32, #tpu.memory_space<vmem>>, %arg3: memref<1x32xf32, #tpu.memory_space<vmem>>, %arg4: memref<32x96xbf16, #tpu.memory_space<vmem>>, %arg5: memref<32x32xbf16, #tpu.memory_space<vmem>>, %arg6: memref<8x4xf32, #tpu.memory_space<vmem>>, %arg7: memref<8x4xf32, #tpu.memory_space<vmem>>, %arg8: memref<1x32xf32, #tpu.memory_space<vmem>>, %arg9: memref<32x256xbf16, #tpu.memory_space<vmem>>, %arg10: memref<128x32xbf16, #tpu.memory_space<vmem>>, %arg11: memref<1x8x32xf32, #tpu.memory_space<vmem>>, %arg12: memref<8x32xbf16, #tpu.memory_space<vmem>>) attributes {dimension_semantics = [#tpu.dimension_semantics<parallel>], iteration_bounds = array<i64: 2>, scalar_prefetch = 0 : i64, scratch_operands = 1 : i64, tpu.core_type = #tpu.core_type<tc>, window_params = [{transform_indices = @transform_0, window_bounds = array<i64: 1, 8, 32>}, {pipeline_mode = #tpu.pipeline_mode<synchronous>, transform_indices = @transform_1, window_bounds = array<i64: 8, 32>}, {pipeline_mode = #tpu.pipeline_mode<synchronous>, transform_indices = @transform_2, window_bounds = array<i64: 1, 32>}, {pipeline_mode = #tpu.pipeline_mode<synchronous>, transform_indices = @transform_3, window_bounds = array<i64: 32, 96>}, {pipeline_mode = #tpu.pipeline_mode<synchronous>, transform_indices = @transform_4, window_bounds = array<i64: 32, 32>}, {pipeline_mode = #tpu.pipeline_mode<synchronous>, transform_indices = @transform_5, window_bounds = array<i64: 8, 4>}, {pipeline_mode = #tpu.pipeline_mode<synchronous>, transform_indices = @transform_6, window_bounds = array<i64: 8, 4>}, {pipeline_mode = #tpu.pipeline_mode<synchronous>, transform_indices = @transform_7, window_bounds = array<i64: 1, 32>}, {pipeline_mode = #tpu.pipeline_mode<synchronous>, transform_indices = @transform_8, window_bounds = array<i64: 32, 256>}, {pipeline_mode = #tpu.pipeline_mode<synchronous>, transform_indices = @transform_9, window_bounds = array<i64: 128, 32>}, {transform_indices = @transform_10, window_bounds = array<i64: 1, 8, 32>}]} {
    %c0 = arith.constant 0 : index
    %c0_0 = arith.constant 0 : index
    %c0_1 = arith.constant 0 : index
    %0 = vector.load %arg1[%c0, %c0_0, %c0_1] : memref<1x8x32xf32, #tpu.memory_space<vmem>>, vector<1x8x32xf32>
    %1 = vector.shape_cast %0 : vector<1x8x32xf32> to vector<8x32xf32>
    %c0_2 = arith.constant 0 : index
    %c0_3 = arith.constant 0 : index
    %2 = vector.load %arg2[%c0_2, %c0_3] : memref<8x32xf32, #tpu.memory_space<vmem>>, vector<8x32xf32>
    %3 = arith.addf %1, %2 : vector<8x32xf32>
    %c0_4 = arith.constant 0 : index
    %c0_5 = arith.constant 0 : index
    %4 = vector.load %arg3[%c0_4, %c0_5] : memref<1x32xf32, #tpu.memory_space<vmem>>, vector<1x32xf32>
    %5 = arith.mulf %3, %3 : vector<8x32xf32>
    %cst = arith.constant dense<0.000000e+00> : vector<8xf32>
    %6 = vector.multi_reduction <add>, %5, %cst [1] : vector<8x32xf32> to vector<8xf32>
    %7 = vector.shape_cast %6 : vector<8xf32> to vector<8x1xf32>
    %cst_6 = arith.constant 3.200000e+01 : f32
    %8 = vector.broadcast %cst_6 : f32 to vector<8x1xf32>
    %9 = arith.divf %7, %8 : vector<8x1xf32>
    %cst_7 = arith.constant 9.99999997E-7 : f32
    %10 = vector.broadcast %cst_7 : f32 to vector<8x1xf32>
    %11 = arith.addf %9, %10 : vector<8x1xf32>
    %12 = math.rsqrt %11 : vector<8x1xf32>
    %13 = vector.broadcast %12 : vector<8x1xf32> to vector<8x32xf32>
    %14 = arith.mulf %3, %13 : vector<8x32xf32>
    %15 = vector.broadcast %4 : vector<1x32xf32> to vector<8x32xf32>
    %16 = arith.mulf %14, %15 : vector<8x32xf32>
    %17 = arith.truncf %16 : vector<8x32xf32> to vector<8x32xbf16>
    %c0_8 = arith.constant 0 : index
    %c0_9 = arith.constant 0 : index
    %18 = vector.load %arg4[%c0_8, %c0_9] : memref<32x96xbf16, #tpu.memory_space<vmem>>, vector<32x96xbf16>
    %cst_10 = arith.constant dense<0.000000e+00> : vector<8x96xf32>
    %19 = tpu.matmul %17, %18, %cst_10 {dimension_numbers = #tpu.dot_dimension_numbers<[1], [0], [0], [1], [0, 0, 1, 1], [], []>} : vector<8x32xbf16>, vector<32x96xbf16>, vector<8x96xf32> -> vector<8x96xf32>
    %c0_11 = arith.constant 0 : index
    %c0_12 = arith.constant 0 : index
    %20 = vector.load %arg6[%c0_11, %c0_12] : memref<8x4xf32, #tpu.memory_space<vmem>>, vector<8x4xf32>
    %c0_13 = arith.constant 0 : index
    %c0_14 = arith.constant 0 : index
    %21 = vector.load %arg7[%c0_13, %c0_14] : memref<8x4xf32, #tpu.memory_space<vmem>>, vector<8x4xf32>
    %22 = tpu.iota {dimensions = array<i32: 0>} : vector<8x8xi32>
    %23 = tpu.iota {dimensions = array<i32: 1>} : vector<8x8xi32>
    %24 = arith.cmpi sle, %23, %22 : vector<8x8xi32>
    %25 = vector.extract_strided_slice %19 {offsets = [0, 0], sizes = [8, 8], strides = [1, 1]} : vector<8x96xf32> to vector<8x8xf32>
    %26 = vector.extract_strided_slice %25 {offsets = [0, 0], sizes = [8, 4], strides = [1, 1]} : vector<8x8xf32> to vector<8x4xf32>
    %27 = vector.extract_strided_slice %25 {offsets = [0, 4], sizes = [8, 4], strides = [1, 1]} : vector<8x8xf32> to vector<8x4xf32>
    %28 = arith.mulf %26, %20 : vector<8x4xf32>
    %29 = arith.mulf %27, %21 : vector<8x4xf32>
    %30 = arith.subf %28, %29 : vector<8x4xf32>
    %31 = arith.truncf %30 : vector<8x4xf32> to vector<8x4xbf16>
    %32 = arith.mulf %27, %20 : vector<8x4xf32>
    %33 = arith.mulf %26, %21 : vector<8x4xf32>
    %34 = arith.addf %32, %33 : vector<8x4xf32>
    %35 = arith.truncf %34 : vector<8x4xf32> to vector<8x4xbf16>
    %36 = vector.extract_strided_slice %19 {offsets = [0, 32], sizes = [8, 8], strides = [1, 1]} : vector<8x96xf32> to vector<8x8xf32>
    %37 = vector.extract_strided_slice %36 {offsets = [0, 0], sizes = [8, 4], strides = [1, 1]} : vector<8x8xf32> to vector<8x4xf32>
    %38 = vector.extract_strided_slice %36 {offsets = [0, 4], sizes = [8, 4], strides = [1, 1]} : vector<8x8xf32> to vector<8x4xf32>
    %39 = arith.mulf %37, %20 : vector<8x4xf32>
    %40 = arith.mulf %38, %21 : vector<8x4xf32>
    %41 = arith.subf %39, %40 : vector<8x4xf32>
    %42 = arith.truncf %41 : vector<8x4xf32> to vector<8x4xbf16>
    %43 = arith.mulf %38, %20 : vector<8x4xf32>
    %44 = arith.mulf %37, %21 : vector<8x4xf32>
    %45 = arith.addf %43, %44 : vector<8x4xf32>
    %46 = arith.truncf %45 : vector<8x4xf32> to vector<8x4xbf16>
    %47 = vector.extract_strided_slice %19 {offsets = [0, 64], sizes = [8, 8], strides = [1, 1]} : vector<8x96xf32> to vector<8x8xf32>
    %48 = arith.truncf %47 : vector<8x8xf32> to vector<8x8xbf16>
    %cst_15 = arith.constant dense<0.000000e+00> : vector<8x8xf32>
    %49 = tpu.matmul %31, %42, %cst_15 {dimension_numbers = #tpu.dot_dimension_numbers<[1], [1], [0], [0], [0, 0, 1, 0], [], []>} : vector<8x4xbf16>, vector<8x4xbf16>, vector<8x8xf32> -> vector<8x8xf32>
    %cst_16 = arith.constant dense<0.000000e+00> : vector<8x8xf32>
    %50 = tpu.matmul %35, %46, %cst_16 {dimension_numbers = #tpu.dot_dimension_numbers<[1], [1], [0], [0], [0, 0, 1, 0], [], []>} : vector<8x4xbf16>, vector<8x4xbf16>, vector<8x8xf32> -> vector<8x8xf32>
    %51 = arith.addf %49, %50 : vector<8x8xf32>
    %cst_17 = arith.constant 0.353553385 : f32
    %52 = vector.broadcast %cst_17 : f32 to vector<8x8xf32>
    %53 = arith.mulf %51, %52 : vector<8x8xf32>
    %cst_18 = arith.constant -3.40282347E+38 : f32
    %54 = vector.broadcast %cst_18 : f32 to vector<8x8xf32>
    %55 = arith.select %24, %53, %54 : vector<8x8xi1>, vector<8x8xf32>
    %cst_19 = arith.constant dense<0xFF800000> : vector<8xf32>
    %56 = vector.multi_reduction <maximumf>, %55, %cst_19 [1] : vector<8x8xf32> to vector<8xf32>
    %57 = vector.shape_cast %56 : vector<8xf32> to vector<8x1xf32>
    %58 = vector.broadcast %57 : vector<8x1xf32> to vector<8x8xf32>
    %59 = arith.subf %55, %58 : vector<8x8xf32>
    %60 = math.exp %59 : vector<8x8xf32>
    %cst_20 = arith.constant dense<0.000000e+00> : vector<8xf32>
    %61 = vector.multi_reduction <add>, %60, %cst_20 [1] : vector<8x8xf32> to vector<8xf32>
    %62 = vector.shape_cast %61 : vector<8xf32> to vector<8x1xf32>
    %63 = tpu.reciprocal %62 {approx = true} : vector<8x1xf32> -> vector<8x1xf32>
    %64 = vector.broadcast %63 : vector<8x1xf32> to vector<8x8xf32>
    %65 = arith.mulf %60, %64 : vector<8x8xf32>
    %66 = arith.truncf %65 : vector<8x8xf32> to vector<8x8xbf16>
    %cst_21 = arith.constant dense<0.000000e+00> : vector<8x8xf32>
    %67 = tpu.matmul %66, %48, %cst_21 {dimension_numbers = #tpu.dot_dimension_numbers<[1], [0], [0], [1], [0, 0, 1, 1], [], []>} : vector<8x8xbf16>, vector<8x8xbf16>, vector<8x8xf32> -> vector<8x8xf32>
    %68 = arith.truncf %67 : vector<8x8xf32> to vector<8x8xbf16>
    %c0_22 = arith.constant 0 : index
    %c0_23 = arith.constant 0 : index
    %69 = vector.load %arg12[%c0_22, %c0_23] : memref<8x32xbf16, #tpu.memory_space<vmem>>, vector<8x8xbf16>
    tpu.vector_store %arg12[%c0_22, %c0_23], %68 {strides = array<i32>} : memref<8x32xbf16, #tpu.memory_space<vmem>>, vector<8x8xbf16>,
    %70 = vector.extract_strided_slice %19 {offsets = [0, 8], sizes = [8, 8], strides = [1, 1]} : vector<8x96xf32> to vector<8x8xf32>
    %71 = vector.extract_strided_slice %70 {offsets = [0, 0], sizes = [8, 4], strides = [1, 1]} : vector<8x8xf32> to vector<8x4xf32>
    %72 = vector.extract_strided_slice %70 {offsets = [0, 4], sizes = [8, 4], strides = [1, 1]} : vector<8x8xf32> to vector<8x4xf32>
    %73 = arith.mulf %71, %20 : vector<8x4xf32>
    %74 = arith.mulf %72, %21 : vector<8x4xf32>
    %75 = arith.subf %73, %74 : vector<8x4xf32>
    %76 = arith.truncf %75 : vector<8x4xf32> to vector<8x4xbf16>
    %77 = arith.mulf %72, %20 : vector<8x4xf32>
    %78 = arith.mulf %71, %21 : vector<8x4xf32>
    %79 = arith.addf %77, %78 : vector<8x4xf32>
    %80 = arith.truncf %79 : vector<8x4xf32> to vector<8x4xbf16>
    %81 = vector.extract_strided_slice %19 {offsets = [0, 40], sizes = [8, 8], strides = [1, 1]} : vector<8x96xf32> to vector<8x8xf32>
    %82 = vector.extract_strided_slice %81 {offsets = [0, 0], sizes = [8, 4], strides = [1, 1]} : vector<8x8xf32> to vector<8x4xf32>
    %83 = vector.extract_strided_slice %81 {offsets = [0, 4], sizes = [8, 4], strides = [1, 1]} : vector<8x8xf32> to vector<8x4xf32>
    %84 = arith.mulf %82, %20 : vector<8x4xf32>
    %85 = arith.mulf %83, %21 : vector<8x4xf32>
    %86 = arith.subf %84, %85 : vector<8x4xf32>
    %87 = arith.truncf %86 : vector<8x4xf32> to vector<8x4xbf16>
    %88 = arith.mulf %83, %20 : vector<8x4xf32>
    %89 = arith.mulf %82, %21 : vector<8x4xf32>
    %90 = arith.addf %88, %89 : vector<8x4xf32>
    %91 = arith.truncf %90 : vector<8x4xf32> to vector<8x4xbf16>
    %92 = vector.extract_strided_slice %19 {offsets = [0, 72], sizes = [8, 8], strides = [1, 1]} : vector<8x96xf32> to vector<8x8xf32>
    %93 = arith.truncf %92 : vector<8x8xf32> to vector<8x8xbf16>
    %cst_24 = arith.constant dense<0.000000e+00> : vector<8x8xf32>
    %94 = tpu.matmul %76, %87, %cst_24 {dimension_numbers = #tpu.dot_dimension_numbers<[1], [1], [0], [0], [0, 0, 1, 0], [], []>} : vector<8x4xbf16>, vector<8x4xbf16>, vector<8x8xf32> -> vector<8x8xf32>
    %cst_25 = arith.constant dense<0.000000e+00> : vector<8x8xf32>
    %95 = tpu.matmul %80, %91, %cst_25 {dimension_numbers = #tpu.dot_dimension_numbers<[1], [1], [0], [0], [0, 0, 1, 0], [], []>} : vector<8x4xbf16>, vector<8x4xbf16>, vector<8x8xf32> -> vector<8x8xf32>
    %96 = arith.addf %94, %95 : vector<8x8xf32>
    %cst_26 = arith.constant 0.353553385 : f32
    %97 = vector.broadcast %cst_26 : f32 to vector<8x8xf32>
    %98 = arith.mulf %96, %97 : vector<8x8xf32>
    %cst_27 = arith.constant -3.40282347E+38 : f32
    %99 = vector.broadcast %cst_27 : f32 to vector<8x8xf32>
    %100 = arith.select %24, %98, %99 : vector<8x8xi1>, vector<8x8xf32>
    %cst_28 = arith.constant dense<0xFF800000> : vector<8xf32>
    %101 = vector.multi_reduction <maximumf>, %100, %cst_28 [1] : vector<8x8xf32> to vector<8xf32>
    %102 = vector.shape_cast %101 : vector<8xf32> to vector<8x1xf32>
    %103 = vector.broadcast %102 : vector<8x1xf32> to vector<8x8xf32>
    %104 = arith.subf %100, %103 : vector<8x8xf32>
    %105 = math.exp %104 : vector<8x8xf32>
    %cst_29 = arith.constant dense<0.000000e+00> : vector<8xf32>
    %106 = vector.multi_reduction <add>, %105, %cst_29 [1] : vector<8x8xf32> to vector<8xf32>
    %107 = vector.shape_cast %106 : vector<8xf32> to vector<8x1xf32>
    %108 = tpu.reciprocal %107 {approx = true} : vector<8x1xf32> -> vector<8x1xf32>
    %109 = vector.broadcast %108 : vector<8x1xf32> to vector<8x8xf32>
    %110 = arith.mulf %105, %109 : vector<8x8xf32>
    %111 = arith.truncf %110 : vector<8x8xf32> to vector<8x8xbf16>
    %cst_30 = arith.constant dense<0.000000e+00> : vector<8x8xf32>
    %112 = tpu.matmul %111, %93, %cst_30 {dimension_numbers = #tpu.dot_dimension_numbers<[1], [0], [0], [1], [0, 0, 1, 1], [], []>} : vector<8x8xbf16>, vector<8x8xbf16>, vector<8x8xf32> -> vector<8x8xf32>
    %113 = arith.truncf %112 : vector<8x8xf32> to vector<8x8xbf16>
    %c0_31 = arith.constant 0 : index
    %c8 = arith.constant 8 : index
    %114 = vector.load %arg12[%c0_31, %c8] : memref<8x32xbf16, #tpu.memory_space<vmem>>, vector<8x8xbf16>
    tpu.vector_store %arg12[%c0_31, %c8], %113 {strides = array<i32>} : memref<8x32xbf16, #tpu.memory_space<vmem>>, vector<8x8xbf16>,
    %115 = vector.extract_strided_slice %19 {offsets = [0, 16], sizes = [8, 8], strides = [1, 1]} : vector<8x96xf32> to vector<8x8xf32>
    %116 = vector.extract_strided_slice %115 {offsets = [0, 0], sizes = [8, 4], strides = [1, 1]} : vector<8x8xf32> to vector<8x4xf32>
    %117 = vector.extract_strided_slice %115 {offsets = [0, 4], sizes = [8, 4], strides = [1, 1]} : vector<8x8xf32> to vector<8x4xf32>
    %118 = arith.mulf %116, %20 : vector<8x4xf32>
    %119 = arith.mulf %117, %21 : vector<8x4xf32>
    %120 = arith.subf %118, %119 : vector<8x4xf32>
    %121 = arith.truncf %120 : vector<8x4xf32> to vector<8x4xbf16>
    %122 = arith.mulf %117, %20 : vector<8x4xf32>
    %123 = arith.mulf %116, %21 : vector<8x4xf32>
    %124 = arith.addf %122, %123 : vector<8x4xf32>
    %125 = arith.truncf %124 : vector<8x4xf32> to vector<8x4xbf16>
    %126 = vector.extract_strided_slice %19 {offsets = [0, 48], sizes = [8, 8], strides = [1, 1]} : vector<8x96xf32> to vector<8x8xf32>
    %127 = vector.extract_strided_slice %126 {offsets = [0, 0], sizes = [8, 4], strides = [1, 1]} : vector<8x8xf32> to vector<8x4xf32>
    %128 = vector.extract_strided_slice %126 {offsets = [0, 4], sizes = [8, 4], strides = [1, 1]} : vector<8x8xf32> to vector<8x4xf32>
    %129 = arith.mulf %127, %20 : vector<8x4xf32>
    %130 = arith.mulf %128, %21 : vector<8x4xf32>
    %131 = arith.subf %129, %130 : vector<8x4xf32>
    %132 = arith.truncf %131 : vector<8x4xf32> to vector<8x4xbf16>
    %133 = arith.mulf %128, %20 : vector<8x4xf32>
    %134 = arith.mulf %127, %21 : vector<8x4xf32>
    %135 = arith.addf %133, %134 : vector<8x4xf32>
    %136 = arith.truncf %135 : vector<8x4xf32> to vector<8x4xbf16>
    %137 = vector.extract_strided_slice %19 {offsets = [0, 80], sizes = [8, 8], strides = [1, 1]} : vector<8x96xf32> to vector<8x8xf32>
    %138 = arith.truncf %137 : vector<8x8xf32> to vector<8x8xbf16>
    %cst_32 = arith.constant dense<0.000000e+00> : vector<8x8xf32>
    %139 = tpu.matmul %121, %132, %cst_32 {dimension_numbers = #tpu.dot_dimension_numbers<[1], [1], [0], [0], [0, 0, 1, 0], [], []>} : vector<8x4xbf16>, vector<8x4xbf16>, vector<8x8xf32> -> vector<8x8xf32>
    %cst_33 = arith.constant dense<0.000000e+00> : vector<8x8xf32>
    %140 = tpu.matmul %125, %136, %cst_33 {dimension_numbers = #tpu.dot_dimension_numbers<[1], [1], [0], [0], [0, 0, 1, 0], [], []>} : vector<8x4xbf16>, vector<8x4xbf16>, vector<8x8xf32> -> vector<8x8xf32>
    %141 = arith.addf %139, %140 : vector<8x8xf32>
    %cst_34 = arith.constant 0.353553385 : f32
    %142 = vector.broadcast %cst_34 : f32 to vector<8x8xf32>
    %143 = arith.mulf %141, %142 : vector<8x8xf32>
    %cst_35 = arith.constant -3.40282347E+38 : f32
    %144 = vector.broadcast %cst_35 : f32 to vector<8x8xf32>
    %145 = arith.select %24, %143, %144 : vector<8x8xi1>, vector<8x8xf32>
    %cst_36 = arith.constant dense<0xFF800000> : vector<8xf32>
    %146 = vector.multi_reduction <maximumf>, %145, %cst_36 [1] : vector<8x8xf32> to vector<8xf32>
    %147 = vector.shape_cast %146 : vector<8xf32> to vector<8x1xf32>
    %148 = vector.broadcast %147 : vector<8x1xf32> to vector<8x8xf32>
    %149 = arith.subf %145, %148 : vector<8x8xf32>
    %150 = math.exp %149 : vector<8x8xf32>
    %cst_37 = arith.constant dense<0.000000e+00> : vector<8xf32>
    %151 = vector.multi_reduction <add>, %150, %cst_37 [1] : vector<8x8xf32> to vector<8xf32>
    %152 = vector.shape_cast %151 : vector<8xf32> to vector<8x1xf32>
    %153 = tpu.reciprocal %152 {approx = true} : vector<8x1xf32> -> vector<8x1xf32>
    %154 = vector.broadcast %153 : vector<8x1xf32> to vector<8x8xf32>
    %155 = arith.mulf %150, %154 : vector<8x8xf32>
    %156 = arith.truncf %155 : vector<8x8xf32> to vector<8x8xbf16>
    %cst_38 = arith.constant dense<0.000000e+00> : vector<8x8xf32>
    %157 = tpu.matmul %156, %138, %cst_38 {dimension_numbers = #tpu.dot_dimension_numbers<[1], [0], [0], [1], [0, 0, 1, 1], [], []>} : vector<8x8xbf16>, vector<8x8xbf16>, vector<8x8xf32> -> vector<8x8xf32>
    %158 = arith.truncf %157 : vector<8x8xf32> to vector<8x8xbf16>
    %c0_39 = arith.constant 0 : index
    %c16 = arith.constant 16 : index
    %159 = vector.load %arg12[%c0_39, %c16] : memref<8x32xbf16, #tpu.memory_space<vmem>>, vector<8x8xbf16>
    tpu.vector_store %arg12[%c0_39, %c16], %158 {strides = array<i32>} : memref<8x32xbf16, #tpu.memory_space<vmem>>, vector<8x8xbf16>,
    %160 = vector.extract_strided_slice %19 {offsets = [0, 24], sizes = [8, 8], strides = [1, 1]} : vector<8x96xf32> to vector<8x8xf32>
    %161 = vector.extract_strided_slice %160 {offsets = [0, 0], sizes = [8, 4], strides = [1, 1]} : vector<8x8xf32> to vector<8x4xf32>
    %162 = vector.extract_strided_slice %160 {offsets = [0, 4], sizes = [8, 4], strides = [1, 1]} : vector<8x8xf32> to vector<8x4xf32>
    %163 = arith.mulf %161, %20 : vector<8x4xf32>
    %164 = arith.mulf %162, %21 : vector<8x4xf32>
    %165 = arith.subf %163, %164 : vector<8x4xf32>
    %166 = arith.truncf %165 : vector<8x4xf32> to vector<8x4xbf16>
    %167 = arith.mulf %162, %20 : vector<8x4xf32>
    %168 = arith.mulf %161, %21 : vector<8x4xf32>
    %169 = arith.addf %167, %168 : vector<8x4xf32>
    %170 = arith.truncf %169 : vector<8x4xf32> to vector<8x4xbf16>
    %171 = vector.extract_strided_slice %19 {offsets = [0, 56], sizes = [8, 8], strides = [1, 1]} : vector<8x96xf32> to vector<8x8xf32>
    %172 = vector.extract_strided_slice %171 {offsets = [0, 0], sizes = [8, 4], strides = [1, 1]} : vector<8x8xf32> to vector<8x4xf32>
    %173 = vector.extract_strided_slice %171 {offsets = [0, 4], sizes = [8, 4], strides = [1, 1]} : vector<8x8xf32> to vector<8x4xf32>
    %174 = arith.mulf %172, %20 : vector<8x4xf32>
    %175 = arith.mulf %173, %21 : vector<8x4xf32>
    %176 = arith.subf %174, %175 : vector<8x4xf32>
    %177 = arith.truncf %176 : vector<8x4xf32> to vector<8x4xbf16>
    %178 = arith.mulf %173, %20 : vector<8x4xf32>
    %179 = arith.mulf %172, %21 : vector<8x4xf32>
    %180 = arith.addf %178, %179 : vector<8x4xf32>
    %181 = arith.truncf %180 : vector<8x4xf32> to vector<8x4xbf16>
    %182 = vector.extract_strided_slice %19 {offsets = [0, 88], sizes = [8, 8], strides = [1, 1]} : vector<8x96xf32> to vector<8x8xf32>
    %183 = arith.truncf %182 : vector<8x8xf32> to vector<8x8xbf16>
    %cst_40 = arith.constant dense<0.000000e+00> : vector<8x8xf32>
    %184 = tpu.matmul %166, %177, %cst_40 {dimension_numbers = #tpu.dot_dimension_numbers<[1], [1], [0], [0], [0, 0, 1, 0], [], []>} : vector<8x4xbf16>, vector<8x4xbf16>, vector<8x8xf32> -> vector<8x8xf32>
    %cst_41 = arith.constant dense<0.000000e+00> : vector<8x8xf32>
    %185 = tpu.matmul %170, %181, %cst_41 {dimension_numbers = #tpu.dot_dimension_numbers<[1], [1], [0], [0], [0, 0, 1, 0], [], []>} : vector<8x4xbf16>, vector<8x4xbf16>, vector<8x8xf32> -> vector<8x8xf32>
    %186 = arith.addf %184, %185 : vector<8x8xf32>
    %cst_42 = arith.constant 0.353553385 : f32
    %187 = vector.broadcast %cst_42 : f32 to vector<8x8xf32>
    %188 = arith.mulf %186, %187 : vector<8x8xf32>
    %cst_43 = arith.constant -3.40282347E+38 : f32
    %189 = vector.broadcast %cst_43 : f32 to vector<8x8xf32>
    %190 = arith.select %24, %188, %189 : vector<8x8xi1>, vector<8x8xf32>
    %cst_44 = arith.constant dense<0xFF800000> : vector<8xf32>
    %191 = vector.multi_reduction <maximumf>, %190, %cst_44 [1] : vector<8x8xf32> to vector<8xf32>
    %192 = vector.shape_cast %191 : vector<8xf32> to vector<8x1xf32>
    %193 = vector.broadcast %192 : vector<8x1xf32> to vector<8x8xf32>
    %194 = arith.subf %190, %193 : vector<8x8xf32>
    %195 = math.exp %194 : vector<8x8xf32>
    %cst_45 = arith.constant dense<0.000000e+00> : vector<8xf32>
    %196 = vector.multi_reduction <add>, %195, %cst_45 [1] : vector<8x8xf32> to vector<8xf32>
    %197 = vector.shape_cast %196 : vector<8xf32> to vector<8x1xf32>
    %198 = tpu.reciprocal %197 {approx = true} : vector<8x1xf32> -> vector<8x1xf32>
    %199 = vector.broadcast %198 : vector<8x1xf32> to vector<8x8xf32>
    %200 = arith.mulf %195, %199 : vector<8x8xf32>
    %201 = arith.truncf %200 : vector<8x8xf32> to vector<8x8xbf16>
    %cst_46 = arith.constant dense<0.000000e+00> : vector<8x8xf32>
    %202 = tpu.matmul %201, %183, %cst_46 {dimension_numbers = #tpu.dot_dimension_numbers<[1], [0], [0], [1], [0, 0, 1, 1], [], []>} : vector<8x8xbf16>, vector<8x8xbf16>, vector<8x8xf32> -> vector<8x8xf32>
    %203 = arith.truncf %202 : vector<8x8xf32> to vector<8x8xbf16>
    %c0_47 = arith.constant 0 : index
    %c24 = arith.constant 24 : index
    %204 = vector.load %arg12[%c0_47, %c24] : memref<8x32xbf16, #tpu.memory_space<vmem>>, vector<8x8xbf16>
    tpu.vector_store %arg12[%c0_47, %c24], %203 {strides = array<i32>} : memref<8x32xbf16, #tpu.memory_space<vmem>>, vector<8x8xbf16>,
    %c0_48 = arith.constant 0 : index
    %c0_49 = arith.constant 0 : index
    %205 = vector.load %arg12[%c0_48, %c0_49] : memref<8x32xbf16, #tpu.memory_space<vmem>>, vector<8x32xbf16>
    %c0_50 = arith.constant 0 : index
    %c0_51 = arith.constant 0 : index
    %206 = vector.load %arg5[%c0_50, %c0_51] : memref<32x32xbf16, #tpu.memory_space<vmem>>, vector<32x32xbf16>
    %cst_52 = arith.constant dense<0.000000e+00> : vector<8x32xf32>
    %207 = tpu.matmul %205, %206, %cst_52 {dimension_numbers = #tpu.dot_dimension_numbers<[1], [0], [0], [1], [0, 0, 1, 1], [], []>} : vector<8x32xbf16>, vector<32x32xbf16>, vector<8x32xf32> -> vector<8x32xf32>
    %208 = arith.addf %3, %207 : vector<8x32xf32>
    %c0_53 = arith.constant 0 : index
    %c0_54 = arith.constant 0 : index
    %209 = vector.load %arg8[%c0_53, %c0_54] : memref<1x32xf32, #tpu.memory_space<vmem>>, vector<1x32xf32>
    %210 = arith.mulf %208, %208 : vector<8x32xf32>
    %cst_55 = arith.constant dense<0.000000e+00> : vector<8xf32>
    %211 = vector.multi_reduction <add>, %210, %cst_55 [1] : vector<8x32xf32> to vector<8xf32>
    %212 = vector.shape_cast %211 : vector<8xf32> to vector<8x1xf32>
    %cst_56 = arith.constant 3.200000e+01 : f32
    %213 = vector.broadcast %cst_56 : f32 to vector<8x1xf32>
    %214 = arith.divf %212, %213 : vector<8x1xf32>
    %cst_57 = arith.constant 9.99999997E-7 : f32
    %215 = vector.broadcast %cst_57 : f32 to vector<8x1xf32>
    %216 = arith.addf %214, %215 : vector<8x1xf32>
    %217 = math.rsqrt %216 : vector<8x1xf32>
    %218 = vector.broadcast %217 : vector<8x1xf32> to vector<8x32xf32>
    %219 = arith.mulf %208, %218 : vector<8x32xf32>
    %220 = vector.broadcast %209 : vector<1x32xf32> to vector<8x32xf32>
    %221 = arith.mulf %219, %220 : vector<8x32xf32>
    %222 = arith.truncf %221 : vector<8x32xf32> to vector<8x32xbf16>
    %c0_58 = arith.constant 0 : index
    %c0_59 = arith.constant 0 : index
    %223 = vector.load %arg9[%c0_58, %c0_59] : memref<32x256xbf16, #tpu.memory_space<vmem>>, vector<32x256xbf16>
    %cst_60 = arith.constant dense<0.000000e+00> : vector<8x256xf32>
    %224 = tpu.matmul %222, %223, %cst_60 {dimension_numbers = #tpu.dot_dimension_numbers<[1], [0], [0], [1], [0, 0, 1, 1], [], []>} : vector<8x32xbf16>, vector<32x256xbf16>, vector<8x256xf32> -> vector<8x256xf32>
    %225 = vector.extract_strided_slice %224 {offsets = [0, 0], sizes = [8, 128], strides = [1, 1]} : vector<8x256xf32> to vector<8x128xf32>
    %226 = vector.extract_strided_slice %224 {offsets = [0, 128], sizes = [8, 128], strides = [1, 1]} : vector<8x256xf32> to vector<8x128xf32>
    %227 = arith.negf %225 : vector<8x128xf32>
    %228 = math.exp %227 : vector<8x128xf32>
    %cst_61 = arith.constant 1.000000e+00 : f32
    %229 = vector.broadcast %cst_61 : f32 to vector<8x128xf32>
    %230 = arith.addf %229, %228 : vector<8x128xf32>
    %231 = arith.divf %229, %230 : vector<8x128xf32>
    %232 = arith.mulf %225, %231 : vector<8x128xf32>
    %233 = arith.mulf %232, %226 : vector<8x128xf32>
    %234 = arith.truncf %233 : vector<8x128xf32> to vector<8x128xbf16>
    %c0_62 = arith.constant 0 : index
    %c0_63 = arith.constant 0 : index
    %235 = vector.load %arg10[%c0_62, %c0_63] : memref<128x32xbf16, #tpu.memory_space<vmem>>, vector<128x32xbf16>
    %cst_64 = arith.constant dense<0.000000e+00> : vector<8x32xf32>
    %236 = tpu.matmul %234, %235, %cst_64 {dimension_numbers = #tpu.dot_dimension_numbers<[1], [0], [0], [1], [0, 0, 1, 1], [], []>} : vector<8x128xbf16>, vector<128x32xbf16>, vector<8x32xf32> -> vector<8x32xf32>
    %237 = arith.addf %208, %236 : vector<8x32xf32>
    %c0_65 = arith.constant 0 : index
    %c0_66 = arith.constant 0 : index
    %c0_67 = arith.constant 0 : index
    %238 = vector.load %arg11[%c0_65, %c0_66, %c0_67] : memref<1x8x32xf32, #tpu.memory_space<vmem>>, vector<1x8x32xf32>
    %239 = vector.shape_cast %238 : vector<1x8x32xf32> to vector<8x32xf32>
    %240 = vector.shape_cast %237 : vector<8x32xf32> to vector<1x8x32xf32>
    tpu.vector_store %arg11[%c0_65, %c0_66, %c0_67], %240 {strides = array<i32>} : memref<1x8x32xf32, #tpu.memory_space<vmem>>, vector<1x8x32xf32>,
    return
  }
  func.func @transform_0(%arg0: i32) -> (i32, i32, i32) {
    %c0_i32 = arith.constant 0 : i32
    %c0_i32_0 = arith.constant 0 : i32
    %c0_i32_1 = arith.constant 0 : i32
    return %arg0, %c0_i32, %c0_i32_0 : i32, i32, i32
  }
  func.func @transform_1(%arg0: i32) -> (i32, i32) {
    %c0_i32 = arith.constant 0 : i32
    %c0_i32_0 = arith.constant 0 : i32
    %c0_i32_1 = arith.constant 0 : i32
    return %c0_i32, %c0_i32_0 : i32, i32
  }
  func.func @transform_2(%arg0: i32) -> (i32, i32) {
    %c0_i32 = arith.constant 0 : i32
    %c0_i32_0 = arith.constant 0 : i32
    %c0_i32_1 = arith.constant 0 : i32
    return %c0_i32, %c0_i32_0 : i32, i32
  }
  func.func @transform_3(%arg0: i32) -> (i32, i32) {
    %c0_i32 = arith.constant 0 : i32
    %c0_i32_0 = arith.constant 0 : i32
    %c0_i32_1 = arith.constant 0 : i32
    return %c0_i32, %c0_i32_0 : i32, i32
  }
  func.func @transform_4(%arg0: i32) -> (i32, i32) {
    %c0_i32 = arith.constant 0 : i32
    %c0_i32_0 = arith.constant 0 : i32
    %c0_i32_1 = arith.constant 0 : i32
    return %c0_i32, %c0_i32_0 : i32, i32
  }
  func.func @transform_5(%arg0: i32) -> (i32, i32) {
    %c0_i32 = arith.constant 0 : i32
    %c0_i32_0 = arith.constant 0 : i32
    %c0_i32_1 = arith.constant 0 : i32
    return %c0_i32, %c0_i32_0 : i32, i32
  }
  func.func @transform_6(%arg0: i32) -> (i32, i32) {
    %c0_i32 = arith.constant 0 : i32
    %c0_i32_0 = arith.constant 0 : i32
    %c0_i32_1 = arith.constant 0 : i32
    return %c0_i32, %c0_i32_0 : i32, i32
  }
  func.func @transform_7(%arg0: i32) -> (i32, i32) {
    %c0_i32 = arith.constant 0 : i32
    %c0_i32_0 = arith.constant 0 : i32
    %c0_i32_1 = arith.constant 0 : i32
    return %c0_i32, %c0_i32_0 : i32, i32
  }
  func.func @transform_8(%arg0: i32) -> (i32, i32) {
    %c0_i32 = arith.constant 0 : i32
    %c0_i32_0 = arith.constant 0 : i32
    %c0_i32_1 = arith.constant 0 : i32
    return %c0_i32, %c0_i32_0 : i32, i32
  }
  func.func @transform_9(%arg0: i32) -> (i32, i32) {
    %c0_i32 = arith.constant 0 : i32
    %c0_i32_0 = arith.constant 0 : i32
    %c0_i32_1 = arith.constant 0 : i32
    return %c0_i32, %c0_i32_0 : i32, i32
  }
  func.func @transform_10(%arg0: i32) -> (i32, i32, i32) {
    %c0_i32 = arith.constant 0 : i32
    %c0_i32_0 = arith.constant 0 : i32
    %c0_i32_1 = arith.constant 0 : i32
    return %arg0, %c0_i32, %c0_i32_0 : i32, i32, i32
  }
}

module attributes {stable_mosaic.version = 11 : i64} {
  func.func @hybrid_kernel(%arg0: i32, %arg1: memref<1x8x32xf32, #tpu.memory_space<vmem>>, %arg2: memref<8x32xf32, #tpu.memory_space<vmem>>, %arg3: memref<1x32xf32, #tpu.memory_space<vmem>>, %arg4: memref<32x96xbf16, #tpu.memory_space<vmem>>, %arg5: memref<32x32xbf16, #tpu.memory_space<vmem>>, %arg6: memref<8x4xf32, #tpu.memory_space<vmem>>, %arg7: memref<8x4xf32, #tpu.memory_space<vmem>>, %arg8: memref<1x32xf32, #tpu.memory_space<vmem>>, %arg9: memref<32x256xbf16, #tpu.memory_space<vmem>>, %arg10: memref<128x32xbf16, #tpu.memory_space<vmem>>, %arg11: memref<1x8x32xf32, #tpu.memory_space<vmem>>, %arg12: memref<8x32xbf16, #tpu.memory_space<vmem>>) attributes {dimension_semantics = [#tpu.dimension_semantics<parallel>], iteration_bounds = array<i64: 2>, scalar_prefetch = 0 : i64, scratch_operands = 1 : i64, tpu.core_type = #tpu.core_type<tc>, window_params = [{transform_indices = @transform_0, window_bounds = array<i64: 1, 8, 32>}, {pipeline_mode = #tpu.pipeline_mode<synchronous>, transform_indices = @transform_1, window_bounds = array<i64: 8, 32>}, {pipeline_mode = #tpu.pipeline_mode<synchronous>, transform_indices = @transform_2, window_bounds = array<i64: 1, 32>}, {pipeline_mode = #tpu.pipeline_mode<synchronous>, transform_indices = @transform_3, window_bounds = array<i64: 32, 96>}, {pipeline_mode = #tpu.pipeline_mode<synchronous>, transform_indices = @transform_4, window_bounds = array<i64: 32, 32>}, {pipeline_mode = #tpu.pipeline_mode<synchronous>, transform_indices = @transform_5, window_bounds = array<i64: 8, 4>}, {pipeline_mode = #tpu.pipeline_mode<synchronous>, transform_indices = @transform_6, window_bounds = array<i64: 8, 4>}, {pipeline_mode = #tpu.pipeline_mode<synchronous>, transform_indices = @transform_7, window_bounds = array<i64: 1, 32>}, {pipeline_mode = #tpu.pipeline_mode<synchronous>, transform_indices = @transform_8, window_bounds = array<i64: 32, 256>}, {pipeline_mode = #tpu.pipeline_mode<synchronous>, transform_indices = @transform_9, window_bounds = array<i64: 128, 32>}, {transform_indices = @transform_10, window_bounds = array<i64: 1, 8, 32>}]} {
    %c0 = arith.constant 0 : index
    %c0_0 = arith.constant 0 : index
    %c0_1 = arith.constant 0 : index
    %0 = vector.load %arg1[%c0, %c0_0, %c0_1] : memref<1x8x32xf32, #tpu.memory_space<vmem>>, vector<1x8x32xf32>
    %1 = vector.shape_cast %0 : vector<1x8x32xf32> to vector<8x32xf32>
    %c0_2 = arith.constant 0 : index
    %c0_3 = arith.constant 0 : index
    %2 = vector.load %arg2[%c0_2, %c0_3] : memref<8x32xf32, #tpu.memory_space<vmem>>, vector<8x32xf32>
    %3 = arith.addf %1, %2 : vector<8x32xf32>
    %c0_4 = arith.constant 0 : index
    %c0_5 = arith.constant 0 : index
    %4 = vector.load %arg3[%c0_4, %c0_5] : memref<1x32xf32, #tpu.memory_space<vmem>>, vector<1x32xf32>
    %5 = arith.mulf %3, %3 : vector<8x32xf32>
    %cst = arith.constant dense<0.000000e+00> : vector<8xf32>
    %6 = vector.multi_reduction <add>, %5, %cst [1] : vector<8x32xf32> to vector<8xf32>
    %7 = vector.shape_cast %6 : vector<8xf32> to vector<8x1xf32>
    %cst_6 = arith.constant 3.200000e+01 : f32
    %8 = vector.broadcast %cst_6 : f32 to vector<8x1xf32>
    %9 = arith.divf %7, %8 : vector<8x1xf32>
    %cst_7 = arith.constant 9.99999997E-7 : f32
    %10 = vector.broadcast %cst_7 : f32 to vector<8x1xf32>
    %11 = arith.addf %9, %10 : vector<8x1xf32>
    %12 = math.rsqrt %11 : vector<8x1xf32>
    %13 = vector.broadcast %12 : vector<8x1xf32> to vector<8x32xf32>
    %14 = arith.mulf %3, %13 : vector<8x32xf32>
    %15 = vector.broadcast %4 : vector<1x32xf32> to vector<8x32xf32>
    %16 = arith.mulf %14, %15 : vector<8x32xf32>
    %17 = arith.truncf %16 : vector<8x32xf32> to vector<8x32xbf16>
    %c0_8 = arith.constant 0 : index
    %c0_9 = arith.constant 0 : index
    %18 = vector.load %arg4[%c0_8, %c0_9] : memref<32x96xbf16, #tpu.memory_space<vmem>>, vector<32x96xbf16>
    %cst_10 = arith.constant dense<0.000000e+00> : vector<8x96xf32>
    %19 = tpu.matmul %17, %18, %cst_10 {dimension_numbers = #tpu.dot_dimension_numbers<[1], [0], [0], [1], [0, 0, 1, 1], [], []>} : vector<8x32xbf16>, vector<32x96xbf16>, vector<8x96xf32> -> vector<8x96xf32>
    %c0_11 = arith.constant 0 : index
    %c0_12 = arith.constant 0 : index
    %20 = vector.load %arg6[%c0_11, %c0_12] : memref<8x4xf32, #tpu.memory_space<vmem>>, vector<8x4xf32>
    %c0_13 = arith.constant 0 : index
    %c0_14 = arith.constant 0 : index
    %21 = vector.load %arg7[%c0_13, %c0_14] : memref<8x4xf32, #tpu.memory_space<vmem>>, vector<8x4xf32>
    %22 = tpu.iota {dimensions = array<i32: 0>} : vector<8x8xi32>
    %23 = tpu.iota {dimensions = array<i32: 1>} : vector<8x8xi32>
    %24 = arith.cmpi sle, %23, %22 : vector<8x8xi32>
    %25 = vector.extract_strided_slice %19 {offsets = [0, 0], sizes = [8, 8], strides = [1, 1]} : vector<8x96xf32> to vector<8x8xf32>
    %26 = vector.extract_strided_slice %25 {offsets = [0, 0], sizes = [8, 4], strides = [1, 1]} : vector<8x8xf32> to vector<8x4xf32>
    %27 = vector.extract_strided_slice %25 {offsets = [0, 4], sizes = [8, 4], strides = [1, 1]} : vector<8x8xf32> to vector<8x4xf32>
    %28 = arith.mulf %26, %20 : vector<8x4xf32>
    %29 = arith.mulf %27, %21 : vector<8x4xf32>
    %30 = arith.subf %28, %29 : vector<8x4xf32>
    %31 = arith.truncf %30 : vector<8x4xf32> to vector<8x4xbf16>
    %32 = arith.mulf %27, %20 : vector<8x4xf32>
    %33 = arith.mulf %26, %21 : vector<8x4xf32>
    %34 = arith.addf %32, %33 : vector<8x4xf32>
    %35 = arith.truncf %34 : vector<8x4xf32> to vector<8x4xbf16>
    %36 = vector.extract_strided_slice %19 {offsets = [0, 32], sizes = [8, 8], strides = [1, 1]} : vector<8x96xf32> to vector<8x8xf32>
    %37 = vector.extract_strided_slice %36 {offsets = [0, 0], sizes = [8, 4], strides = [1, 1]} : vector<8x8xf32> to vector<8x4xf32>
    %38 = vector.extract_strided_slice %36 {offsets = [0, 4], sizes = [8, 4], strides = [1, 1]} : vector<8x8xf32> to vector<8x4xf32>
    %39 = arith.mulf %37, %20 : vector<8x4xf32>
    %40 = arith.mulf %38, %21 : vector<8x4xf32>
    %41 = arith.subf %39, %40 : vector<8x4xf32>
    %42 = arith.truncf %41 : vector<8x4xf32> to vector<8x4xbf16>
    %43 = arith.mulf %38, %20 : vector<8x4xf32>
    %44 = arith.mulf %37, %21 : vector<8x4xf32>
    %45 = arith.addf %43, %44 : vector<8x4xf32>
    %46 = arith.truncf %45 : vector<8x4xf32> to vector<8x4xbf16>
    %47 = vector.extract_strided_slice %19 {offsets = [0, 64], sizes = [8, 8], strides = [1, 1]} : vector<8x96xf32> to vector<8x8xf32>
    %48 = arith.truncf %47 : vector<8x8xf32> to vector<8x8xbf16>
    %cst_15 = arith.constant dense<0.000000e+00> : vector<8x8xf32>
    %49 = tpu.matmul %31, %42, %cst_15 {dimension_numbers = #tpu.dot_dimension_numbers<[1], [1], [0], [0], [0, 0, 1, 0], [], []>} : vector<8x4xbf16>, vector<8x4xbf16>, vector<8x8xf32> -> vector<8x8xf32>
    %cst_16 = arith.constant dense<0.000000e+00> : vector<8x8xf32>
    %50 = tpu.matmul %35, %46, %cst_16 {dimension_numbers = #tpu.dot_dimension_numbers<[1], [1], [0], [0], [0, 0, 1, 0], [], []>} : vector<8x4xbf16>, vector<8x4xbf16>, vector<8x8xf32> -> vector<8x8xf32>
    %51 = arith.addf %49, %50 : vector<8x8xf32>
    %cst_17 = arith.constant 0.353553385 : f32
    %52 = vector.broadcast %cst_17 : f32 to vector<8x8xf32>
    %53 = arith.mulf %51, %52 : vector<8x8xf32>
    %cst_18 = arith.constant -3.40282347E+38 : f32
    %54 = vector.broadcast %cst_18 : f32 to vector<8x8xf32>
    %55 = arith.select %24, %53, %54 : vector<8x8xi1>, vector<8x8xf32>
    %cst_19 = arith.constant dense<0xFF800000> : vector<8xf32>
    %56 = vector.multi_reduction <maximumf>, %55, %cst_19 [1] : vector<8x8xf32> to vector<8xf32>
    %57 = vector.shape_cast %56 : vector<8xf32> to vector<8x1xf32>
    %58 = vector.broadcast %57 : vector<8x1xf32> to vector<8x8xf32>
    %59 = arith.subf %55, %58 : vector<8x8xf32>
    %60 = math.exp %59 : vector<8x8xf32>
    %cst_20 = arith.constant dense<0.000000e+00> : vector<8xf32>
    %61 = vector.multi_reduction <add>, %60, %cst_20 [1] : vector<8x8xf32> to vector<8xf32>
    %62 = vector.shape_cast %61 : vector<8xf32> to vector<8x1xf32>
    %63 = tpu.reciprocal %62 {approx = true} : vector<8x1xf32> -> vector<8x1xf32>
    %64 = vector.broadcast %63 : vector<8x1xf32> to vector<8x8xf32>
    %65 = arith.mulf %60, %64 : vector<8x8xf32>
    %66 = arith.truncf %65 : vector<8x8xf32> to vector<8x8xbf16>
    %cst_21 = arith.constant dense<0.000000e+00> : vector<8x8xf32>
    %67 = tpu.matmul %66, %48, %cst_21 {dimension_numbers = #tpu.dot_dimension_numbers<[1], [0], [0], [1], [0, 0, 1, 1], [], []>} : vector<8x8xbf16>, vector<8x8xbf16>, vector<8x8xf32> -> vector<8x8xf32>
    %68 = arith.truncf %67 : vector<8x8xf32> to vector<8x8xbf16>
    %c0_22 = arith.constant 0 : index
    %c0_23 = arith.constant 0 : index
    %69 = vector.load %arg12[%c0_22, %c0_23] : memref<8x32xbf16, #tpu.memory_space<vmem>>, vector<8x8xbf16>
    tpu.vector_store %arg12[%c0_22, %c0_23], %68 {strides = array<i32>} : memref<8x32xbf16, #tpu.memory_space<vmem>>, vector<8x8xbf16>,
    %70 = vector.extract_strided_slice %19 {offsets = [0, 8], sizes = [8, 8], strides = [1, 1]} : vector<8x96xf32> to vector<8x8xf32>
    %71 = vector.extract_strided_slice %70 {offsets = [0, 0], sizes = [8, 4], strides = [1, 1]} : vector<8x8xf32> to vector<8x4xf32>
    %72 = vector.extract_strided_slice %70 {offsets = [0, 4], sizes = [8, 4], strides = [1, 1]} : vector<8x8xf32> to vector<8x4xf32>
    %73 = arith.mulf %71, %20 : vector<8x4xf32>
    %74 = arith.mulf %72, %21 : vector<8x4xf32>
    %75 = arith.subf %73, %74 : vector<8x4xf32>
    %76 = arith.truncf %75 : vector<8x4xf32> to vector<8x4xbf16>
    %77 = arith.mulf %72, %20 : vector<8x4xf32>
    %78 = arith.mulf %71, %21 : vector<8x4xf32>
    %79 = arith.addf %77, %78 : vector<8x4xf32>
    %80 = arith.truncf %79 : vector<8x4xf32> to vector<8x4xbf16>
    %81 = vector.extract_strided_slice %19 {offsets = [0, 40], sizes = [8, 8], strides = [1, 1]} : vector<8x96xf32> to vector<8x8xf32>
    %82 = vector.extract_strided_slice %81 {offsets = [0, 0], sizes = [8, 4], strides = [1, 1]} : vector<8x8xf32> to vector<8x4xf32>
    %83 = vector.extract_strided_slice %81 {offsets = [0, 4], sizes = [8, 4], strides = [1, 1]} : vector<8x8xf32> to vector<8x4xf32>
    %84 = arith.mulf %82, %20 : vector<8x4xf32>
    %85 = arith.mulf %83, %21 : vector<8x4xf32>
    %86 = arith.subf %84, %85 : vector<8x4xf32>
    %87 = arith.truncf %86 : vector<8x4xf32> to vector<8x4xbf16>
    %88 = arith.mulf %83, %20 : vector<8x4xf32>
    %89 = arith.mulf %82, %21 : vector<8x4xf32>
    %90 = arith.addf %88, %89 : vector<8x4xf32>
    %91 = arith.truncf %90 : vector<8x4xf32> to vector<8x4xbf16>
    %92 = vector.extract_strided_slice %19 {offsets = [0, 72], sizes = [8, 8], strides = [1, 1]} : vector<8x96xf32> to vector<8x8xf32>
    %93 = arith.truncf %92 : vector<8x8xf32> to vector<8x8xbf16>
    %cst_24 = arith.constant dense<0.000000e+00> : vector<8x8xf32>
    %94 = tpu.matmul %76, %87, %cst_24 {dimension_numbers = #tpu.dot_dimension_numbers<[1], [1], [0], [0], [0, 0, 1, 0], [], []>} : vector<8x4xbf16>, vector<8x4xbf16>, vector<8x8xf32> -> vector<8x8xf32>
    %cst_25 = arith.constant dense<0.000000e+00> : vector<8x8xf32>
    %95 = tpu.matmul %80, %91, %cst_25 {dimension_numbers = #tpu.dot_dimension_numbers<[1], [1], [0], [0], [0, 0, 1, 0], [], []>} : vector<8x4xbf16>, vector<8x4xbf16>, vector<8x8xf32> -> vector<8x8xf32>
    %96 = arith.addf %94, %95 : vector<8x8xf32>
    %cst_26 = arith.constant 0.353553385 : f32
    %97 = vector.broadcast %cst_26 : f32 to vector<8x8xf32>
    %98 = arith.mulf %96, %97 : vector<8x8xf32>
    %cst_27 = arith.constant -3.40282347E+38 : f32
    %99 = vector.broadcast %cst_27 : f32 to vector<8x8xf32>
    %100 = arith.select %24, %98, %99 : vector<8x8xi1>, vector<8x8xf32>
    %cst_28 = arith.constant dense<0xFF800000> : vector<8xf32>
    %101 = vector.multi_reduction <maximumf>, %100, %cst_28 [1] : vector<8x8xf32> to vector<8xf32>
    %102 = vector.shape_cast %101 : vector<8xf32> to vector<8x1xf32>
    %103 = vector.broadcast %102 : vector<8x1xf32> to vector<8x8xf32>
    %104 = arith.subf %100, %103 : vector<8x8xf32>
    %105 = math.exp %104 : vector<8x8xf32>
    %cst_29 = arith.constant dense<0.000000e+00> : vector<8xf32>
    %106 = vector.multi_reduction <add>, %105, %cst_29 [1] : vector<8x8xf32> to vector<8xf32>
    %107 = vector.shape_cast %106 : vector<8xf32> to vector<8x1xf32>
    %108 = tpu.reciprocal %107 {approx = true} : vector<8x1xf32> -> vector<8x1xf32>
    %109 = vector.broadcast %108 : vector<8x1xf32> to vector<8x8xf32>
    %110 = arith.mulf %105, %109 : vector<8x8xf32>
    %111 = arith.truncf %110 : vector<8x8xf32> to vector<8x8xbf16>
    %cst_30 = arith.constant dense<0.000000e+00> : vector<8x8xf32>
    %112 = tpu.matmul %111, %93, %cst_30 {dimension_numbers = #tpu.dot_dimension_numbers<[1], [0], [0], [1], [0, 0, 1, 1], [], []>} : vector<8x8xbf16>, vector<8x8xbf16>, vector<8x8xf32> -> vector<8x8xf32>
    %113 = arith.truncf %112 : vector<8x8xf32> to vector<8x8xbf16>
    %c0_31 = arith.constant 0 : index
    %c8 = arith.constant 8 : index
    %114 = vector.load %arg12[%c0_31, %c8] : memref<8x32xbf16, #tpu.memory_space<vmem>>, vector<8x8xbf16>
    tpu.vector_store %arg12[%c0_31, %c8], %113 {strides = array<i32>} : memref<8x32xbf16, #tpu.memory_space<vmem>>, vector<8x8xbf16>,
    %115 = vector.extract_strided_slice %19 {offsets = [0, 16], sizes = [8, 8], strides = [1, 1]} : vector<8x96xf32> to vector<8x8xf32>
    %116 = vector.extract_strided_slice %115 {offsets = [0, 0], sizes = [8, 4], strides = [1, 1]} : vector<8x8xf32> to vector<8x4xf32>
    %117 = vector.extract_strided_slice %115 {offsets = [0, 4], sizes = [8, 4], strides = [1, 1]} : vector<8x8xf32> to vector<8x4xf32>
    %118 = arith.mulf %116, %20 : vector<8x4xf32>
    %119 = arith.mulf %117, %21 : vector<8x4xf32>
    %120 = arith.subf %118, %119 : vector<8x4xf32>
    %121 = arith.truncf %120 : vector<8x4xf32> to vector<8x4xbf16>
    %122 = arith.mulf %117, %20 : vector<8x4xf32>
    %123 = arith.mulf %116, %21 : vector<8x4xf32>
    %124 = arith.addf %122, %123 : vector<8x4xf32>
    %125 = arith.truncf %124 : vector<8x4xf32> to vector<8x4xbf16>
    %126 = vector.extract_strided_slice %19 {offsets = [0, 48], sizes = [8, 8], strides = [1, 1]} : vector<8x96xf32> to vector<8x8xf32>
    %127 = vector.extract_strided_slice %126 {offsets = [0, 0], sizes = [8, 4], strides = [1, 1]} : vector<8x8xf32> to vector<8x4xf32>
    %128 = vector.extract_strided_slice %126 {offsets = [0, 4], sizes = [8, 4], strides = [1, 1]} : vector<8x8xf32> to vector<8x4xf32>
    %129 = arith.mulf %127, %20 : vector<8x4xf32>
    %130 = arith.mulf %128, %21 : vector<8x4xf32>
    %131 = arith.subf %129, %130 : vector<8x4xf32>
    %132 = arith.truncf %131 : vector<8x4xf32> to vector<8x4xbf16>
    %133 = arith.mulf %128, %20 : vector<8x4xf32>
    %134 = arith.mulf %127, %21 : vector<8x4xf32>
    %135 = arith.addf %133, %134 : vector<8x4xf32>
    %136 = arith.truncf %135 : vector<8x4xf32> to vector<8x4xbf16>
    %137 = vector.extract_strided_slice %19 {offsets = [0, 80], sizes = [8, 8], strides = [1, 1]} : vector<8x96xf32> to vector<8x8xf32>
    %138 = arith.truncf %137 : vector<8x8xf32> to vector<8x8xbf16>
    %cst_32 = arith.constant dense<0.000000e+00> : vector<8x8xf32>
    %139 = tpu.matmul %121, %132, %cst_32 {dimension_numbers = #tpu.dot_dimension_numbers<[1], [1], [0], [0], [0, 0, 1, 0], [], []>} : vector<8x4xbf16>, vector<8x4xbf16>, vector<8x8xf32> -> vector<8x8xf32>
    %cst_33 = arith.constant dense<0.000000e+00> : vector<8x8xf32>
    %140 = tpu.matmul %125, %136, %cst_33 {dimension_numbers = #tpu.dot_dimension_numbers<[1], [1], [0], [0], [0, 0, 1, 0], [], []>} : vector<8x4xbf16>, vector<8x4xbf16>, vector<8x8xf32> -> vector<8x8xf32>
    %141 = arith.addf %139, %140 : vector<8x8xf32>
    %cst_34 = arith.constant 0.353553385 : f32
    %142 = vector.broadcast %cst_34 : f32 to vector<8x8xf32>
    %143 = arith.mulf %141, %142 : vector<8x8xf32>
    %cst_35 = arith.constant -3.40282347E+38 : f32
    %144 = vector.broadcast %cst_35 : f32 to vector<8x8xf32>
    %145 = arith.select %24, %143, %144 : vector<8x8xi1>, vector<8x8xf32>
    %cst_36 = arith.constant dense<0xFF800000> : vector<8xf32>
    %146 = vector.multi_reduction <maximumf>, %145, %cst_36 [1] : vector<8x8xf32> to vector<8xf32>
    %147 = vector.shape_cast %146 : vector<8xf32> to vector<8x1xf32>
    %148 = vector.broadcast %147 : vector<8x1xf32> to vector<8x8xf32>
    %149 = arith.subf %145, %148 : vector<8x8xf32>
    %150 = math.exp %149 : vector<8x8xf32>
    %cst_37 = arith.constant dense<0.000000e+00> : vector<8xf32>
    %151 = vector.multi_reduction <add>, %150, %cst_37 [1] : vector<8x8xf32> to vector<8xf32>
    %152 = vector.shape_cast %151 : vector<8xf32> to vector<8x1xf32>
    %153 = tpu.reciprocal %152 {approx = true} : vector<8x1xf32> -> vector<8x1xf32>
    %154 = vector.broadcast %153 : vector<8x1xf32> to vector<8x8xf32>
    %155 = arith.mulf %150, %154 : vector<8x8xf32>
    %156 = arith.truncf %155 : vector<8x8xf32> to vector<8x8xbf16>
    %cst_38 = arith.constant dense<0.000000e+00> : vector<8x8xf32>
    %157 = tpu.matmul %156, %138, %cst_38 {dimension_numbers = #tpu.dot_dimension_numbers<[1], [0], [0], [1], [0, 0, 1, 1], [], []>} : vector<8x8xbf16>, vector<8x8xbf16>, vector<8x8xf32> -> vector<8x8xf32>
    %158 = arith.truncf %157 : vector<8x8xf32> to vector<8x8xbf16>
    %c0_39 = arith.constant 0 : index
    %c16 = arith.constant 16 : index
    %159 = vector.load %arg12[%c0_39, %c16] : memref<8x32xbf16, #tpu.memory_space<vmem>>, vector<8x8xbf16>
    tpu.vector_store %arg12[%c0_39, %c16], %158 {strides = array<i32>} : memref<8x32xbf16, #tpu.memory_space<vmem>>, vector<8x8xbf16>,
    %160 = vector.extract_strided_slice %19 {offsets = [0, 24], sizes = [8, 8], strides = [1, 1]} : vector<8x96xf32> to vector<8x8xf32>
    %161 = vector.extract_strided_slice %160 {offsets = [0, 0], sizes = [8, 4], strides = [1, 1]} : vector<8x8xf32> to vector<8x4xf32>
    %162 = vector.extract_strided_slice %160 {offsets = [0, 4], sizes = [8, 4], strides = [1, 1]} : vector<8x8xf32> to vector<8x4xf32>
    %163 = arith.mulf %161, %20 : vector<8x4xf32>
    %164 = arith.mulf %162, %21 : vector<8x4xf32>
    %165 = arith.subf %163, %164 : vector<8x4xf32>
    %166 = arith.truncf %165 : vector<8x4xf32> to vector<8x4xbf16>
    %167 = arith.mulf %162, %20 : vector<8x4xf32>
    %168 = arith.mulf %161, %21 : vector<8x4xf32>
    %169 = arith.addf %167, %168 : vector<8x4xf32>
    %170 = arith.truncf %169 : vector<8x4xf32> to vector<8x4xbf16>
    %171 = vector.extract_strided_slice %19 {offsets = [0, 56], sizes = [8, 8], strides = [1, 1]} : vector<8x96xf32> to vector<8x8xf32>
    %172 = vector.extract_strided_slice %171 {offsets = [0, 0], sizes = [8, 4], strides = [1, 1]} : vector<8x8xf32> to vector<8x4xf32>
    %173 = vector.extract_strided_slice %171 {offsets = [0, 4], sizes = [8, 4], strides = [1, 1]} : vector<8x8xf32> to vector<8x4xf32>
    %174 = arith.mulf %172, %20 : vector<8x4xf32>
    %175 = arith.mulf %173, %21 : vector<8x4xf32>
    %176 = arith.subf %174, %175 : vector<8x4xf32>
    %177 = arith.truncf %176 : vector<8x4xf32> to vector<8x4xbf16>
    %178 = arith.mulf %173, %20 : vector<8x4xf32>
    %179 = arith.mulf %172, %21 : vector<8x4xf32>
    %180 = arith.addf %178, %179 : vector<8x4xf32>
    %181 = arith.truncf %180 : vector<8x4xf32> to vector<8x4xbf16>
    %182 = vector.extract_strided_slice %19 {offsets = [0, 88], sizes = [8, 8], strides = [1, 1]} : vector<8x96xf32> to vector<8x8xf32>
    %183 = arith.truncf %182 : vector<8x8xf32> to vector<8x8xbf16>
    %cst_40 = arith.constant dense<0.000000e+00> : vector<8x8xf32>
    %184 = tpu.matmul %166, %177, %cst_40 {dimension_numbers = #tpu.dot_dimension_numbers<[1], [1], [0], [0], [0, 0, 1, 0], [], []>} : vector<8x4xbf16>, vector<8x4xbf16>, vector<8x8xf32> -> vector<8x8xf32>
    %cst_41 = arith.constant dense<0.000000e+00> : vector<8x8xf32>
    %185 = tpu.matmul %170, %181, %cst_41 {dimension_numbers = #tpu.dot_dimension_numbers<[1], [1], [0], [0], [0, 0, 1, 0], [], []>} : vector<8x4xbf16>, vector<8x4xbf16>, vector<8x8xf32> -> vector<8x8xf32>
    %186 = arith.addf %184, %185 : vector<8x8xf32>
    %cst_42 = arith.constant 0.353553385 : f32
    %187 = vector.broadcast %cst_42 : f32 to vector<8x8xf32>
    %188 = arith.mulf %186, %187 : vector<8x8xf32>
    %cst_43 = arith.constant -3.40282347E+38 : f32
    %189 = vector.broadcast %cst_43 : f32 to vector<8x8xf32>
    %190 = arith.select %24, %188, %189 : vector<8x8xi1>, vector<8x8xf32>
    %cst_44 = arith.constant dense<0xFF800000> : vector<8xf32>
    %191 = vector.multi_reduction <maximumf>, %190, %cst_44 [1] : vector<8x8xf32> to vector<8xf32>
    %192 = vector.shape_cast %191 : vector<8xf32> to vector<8x1xf32>
    %193 = vector.broadcast %192 : vector<8x1xf32> to vector<8x8xf32>
    %194 = arith.subf %190, %193 : vector<8x8xf32>
    %195 = math.exp %194 : vector<8x8xf32>
    %cst_45 = arith.constant dense<0.000000e+00> : vector<8xf32>
    %196 = vector.multi_reduction <add>, %195, %cst_45 [1] : vector<8x8xf32> to vector<8xf32>
    %197 = vector.shape_cast %196 : vector<8xf32> to vector<8x1xf32>
    %198 = tpu.reciprocal %197 {approx = true} : vector<8x1xf32> -> vector<8x1xf32>
    %199 = vector.broadcast %198 : vector<8x1xf32> to vector<8x8xf32>
    %200 = arith.mulf %195, %199 : vector<8x8xf32>
    %201 = arith.truncf %200 : vector<8x8xf32> to vector<8x8xbf16>
    %cst_46 = arith.constant dense<0.000000e+00> : vector<8x8xf32>
    %202 = tpu.matmul %201, %183, %cst_46 {dimension_numbers = #tpu.dot_dimension_numbers<[1], [0], [0], [1], [0, 0, 1, 1], [], []>} : vector<8x8xbf16>, vector<8x8xbf16>, vector<8x8xf32> -> vector<8x8xf32>
    %203 = arith.truncf %202 : vector<8x8xf32> to vector<8x8xbf16>
    %c0_47 = arith.constant 0 : index
    %c24 = arith.constant 24 : index
    %204 = vector.load %arg12[%c0_47, %c24] : memref<8x32xbf16, #tpu.memory_space<vmem>>, vector<8x8xbf16>
    tpu.vector_store %arg12[%c0_47, %c24], %203 {strides = array<i32>} : memref<8x32xbf16, #tpu.memory_space<vmem>>, vector<8x8xbf16>,
    %c0_48 = arith.constant 0 : index
    %c0_49 = arith.constant 0 : index
    %205 = vector.load %arg12[%c0_48, %c0_49] : memref<8x32xbf16, #tpu.memory_space<vmem>>, vector<8x32xbf16>
    %c0_50 = arith.constant 0 : index
    %c0_51 = arith.constant 0 : index
    %206 = vector.load %arg5[%c0_50, %c0_51] : memref<32x32xbf16, #tpu.memory_space<vmem>>, vector<32x32xbf16>
    %cst_52 = arith.constant dense<0.000000e+00> : vector<8x32xf32>
    %207 = tpu.matmul %205, %206, %cst_52 {dimension_numbers = #tpu.dot_dimension_numbers<[1], [0], [0], [1], [0, 0, 1, 1], [], []>} : vector<8x32xbf16>, vector<32x32xbf16>, vector<8x32xf32> -> vector<8x32xf32>
    %208 = arith.addf %3, %207 : vector<8x32xf32>
    %c0_53 = arith.constant 0 : index
    %c0_54 = arith.constant 0 : index
    %209 = vector.load %arg8[%c0_53, %c0_54] : memref<1x32xf32, #tpu.memory_space<vmem>>, vector<1x32xf32>
    %210 = arith.mulf %208, %208 : vector<8x32xf32>
    %cst_55 = arith.constant dense<0.000000e+00> : vector<8xf32>
    %211 = vector.multi_reduction <add>, %210, %cst_55 [1] : vector<8x32xf32> to vector<8xf32>
    %212 = vector.shape_cast %211 : vector<8xf32> to vector<8x1xf32>
    %cst_56 = arith.constant 3.200000e+01 : f32
    %213 = vector.broadcast %cst_56 : f32 to vector<8x1xf32>
    %214 = arith.divf %212, %213 : vector<8x1xf32>
    %cst_57 = arith.constant 9.99999997E-7 : f32
    %215 = vector.broadcast %cst_57 : f32 to vector<8x1xf32>
    %216 = arith.addf %214, %215 : vector<8x1xf32>
    %217 = math.rsqrt %216 : vector<8x1xf32>
    %218 = vector.broadcast %217 : vector<8x1xf32> to vector<8x32xf32>
    %219 = arith.mulf %208, %218 : vector<8x32xf32>
    %220 = vector.broadcast %209 : vector<1x32xf32> to vector<8x32xf32>
    %221 = arith.mulf %219, %220 : vector<8x32xf32>
    %222 = arith.truncf %221 : vector<8x32xf32> to vector<8x32xbf16>
    %c0_58 = arith.constant 0 : index
    %c0_59 = arith.constant 0 : index
    %223 = vector.load %arg9[%c0_58, %c0_59] : memref<32x256xbf16, #tpu.memory_space<vmem>>, vector<32x256xbf16>
    %cst_60 = arith.constant dense<0.000000e+00> : vector<8x256xf32>
    %224 = tpu.matmul %222, %223, %cst_60 {dimension_numbers = #tpu.dot_dimension_numbers<[1], [0], [0], [1], [0, 0, 1, 1], [], []>} : vector<8x32xbf16>, vector<32x256xbf16>, vector<8x256xf32> -> vector<8x256xf32>
    %225 = vector.extract_strided_slice %224 {offsets = [0, 0], sizes = [8, 128], strides = [1, 1]} : vector<8x256xf32> to vector<8x128xf32>
    %226 = vector.extract_strided_slice %224 {offsets = [0, 128], sizes = [8, 128], strides = [1, 1]} : vector<8x256xf32> to vector<8x128xf32>
    %227 = arith.negf %225 : vector<8x128xf32>
    %228 = math.exp %227 : vector<8x128xf32>
    %cst_61 = arith.constant 1.000000e+00 : f32
    %229 = vector.broadcast %cst_61 : f32 to vector<8x128xf32>
    %230 = arith.addf %229, %228 : vector<8x128xf32>
    %231 = arith.divf %229, %230 : vector<8x128xf32>
    %232 = arith.mulf %225, %231 : vector<8x128xf32>
    %233 = arith.mulf %232, %226 : vector<8x128xf32>
    %234 = arith.truncf %233 : vector<8x128xf32> to vector<8x128xbf16>
    %c0_62 = arith.constant 0 : index
    %c0_63 = arith.constant 0 : index
    %235 = vector.load %arg10[%c0_62, %c0_63] : memref<128x32xbf16, #tpu.memory_space<vmem>>, vector<128x32xbf16>
    %cst_64 = arith.constant dense<0.000000e+00> : vector<8x32xf32>
    %236 = tpu.matmul %234, %235, %cst_64 {dimension_numbers = #tpu.dot_dimension_numbers<[1], [0], [0], [1], [0, 0, 1, 1], [], []>} : vector<8x128xbf16>, vector<128x32xbf16>, vector<8x32xf32> -> vector<8x32xf32>
    %237 = arith.addf %208, %236 : vector<8x32xf32>
    %c0_65 = arith.constant 0 : index
    %c0_66 = arith.constant 0 : index
    %c0_67 = arith.constant 0 : index
    %238 = vector.load %arg11[%c0_65, %c0_66, %c0_67] : memref<1x8x32xf32, #tpu.memory_space<vmem>>, vector<1x8x32xf32>
    %239 = vector.shape_cast %238 : vector<1x8x32xf32> to vector<8x32xf32>
    %240 = vector.shape_cast %237 : vector<8x32xf32> to vector<1x8x32xf32>
    tpu.vector_store %arg11[%c0_65, %c0_66, %c0_67], %240 {strides = array<i32>} : memref<1x8x32xf32, #tpu.memory_space<vmem>>, vector<1x8x32xf32>,
    return
  }
  func.func @transform_0(%arg0: i32) -> (i32, i32, i32) {
    %c0_i32 = arith.constant 0 : i32
    %c0_i32_0 = arith.constant 0 : i32
    %c0_i32_1 = arith.constant 0 : i32
    return %arg0, %c0_i32, %c0_i32_0 : i32, i32, i32
  }
  func.func @transform_1(%arg0: i32) -> (i32, i32) {
    %c0_i32 = arith.constant 0 : i32
    %c0_i32_0 = arith.constant 0 : i32
    %c0_i32_1 = arith.constant 0 : i32
    return %c0_i32, %c0_i32_0 : i32, i32
  }
  func.func @transform_2(%arg0: i32) -> (i32, i32) {
    %c0_i32 = arith.constant 0 : i32
    %c0_i32_0 = arith.constant 0 : i32
    %c0_i32_1 = arith.constant 0 : i32
    return %c0_i32, %c0_i32_0 : i32, i32
  }
  func.func @transform_3(%arg0: i32) -> (i32, i32) {
    %c0_i32 = arith.constant 0 : i32
    %c0_i32_0 = arith.constant 0 : i32
    %c0_i32_1 = arith.constant 0 : i32
    return %c0_i32, %c0_i32_0 : i32, i32
  }
  func.func @transform_4(%arg0: i32) -> (i32, i32) {
    %c0_i32 = arith.constant 0 : i32
    %c0_i32_0 = arith.constant 0 : i32
    %c0_i32_1 = arith.constant 0 : i32
    return %c0_i32, %c0_i32_0 : i32, i32
  }
  func.func @transform_5(%arg0: i32) -> (i32, i32) {
    %c0_i32 = arith.constant 0 : i32
    %c0_i32_0 = arith.constant 0 : i32
    %c0_i32_1 = arith.constant 0 : i32
    return %c0_i32, %c0_i32_0 : i32, i32
  }
  func.func @transform_6(%arg0: i32) -> (i32, i32) {
    %c0_i32 = arith.constant 0 : i32
    %c0_i32_0 = arith.constant 0 : i32
    %c0_i32_1 = arith.constant 0 : i32
    return %c0_i32, %c0_i32_0 : i32, i32
  }
  func.func @transform_7(%arg0: i32) -> (i32, i32) {
    %c0_i32 = arith.constant 0 : i32
    %c0_i32_0 = arith.constant 0 : i32
    %c0_i32_1 = arith.constant 0 : i32
    return %c0_i32, %c0_i32_0 : i32, i32
  }
  func.func @transform_8(%arg0: i32) -> (i32, i32) {
    %c0_i32 = arith.constant 0 : i32
    %c0_i32_0 = arith.constant 0 : i32
    %c0_i32_1 = arith.constant 0 : i32
    return %c0_i32, %c0_i32_0 : i32, i32
  }
  func.func @transform_9(%arg0: i32) -> (i32, i32) {
    %c0_i32 = arith.constant 0 : i32
    %c0_i32_0 = arith.constant 0 : i32
    %c0_i32_1 = arith.constant 0 : i32
    return %c0_i32, %c0_i32_0 : i32, i32
  }
  func.func @transform_10(%arg0: i32) -> (i32, i32, i32) {
    %c0_i32 = arith.constant 0 : i32
    %c0_i32_0 = arith.constant 0 : i32
    %c0_i32_1 = arith.constant 0 : i32
    return %arg0, %c0_i32, %c0_i32_0 : i32, i32, i32
  }
}

</mosaic_0001>

<bundles_post_ra>
// kernel: tpu_custom_call.1
= control target key start
LH: loop header
LB: loop body
LE: loop exit
PB: predicated region body
PF: predicated region fallthrough
CT: control target
= control target key end

     0   :  { %15 = vsyncpa [#allocation4], 0  ;;  %s2579_s0 = inlined_call_operand.vmem [shape: f32[2,8,32], index: 0, kind: input, shape index: {}]   ;;  %s2580_s1 = inlined_call_operand.vmem [shape: f32[8,32], index: 1, kind: input, shape index: {}]   ;;  %s2581_s2 = inlined_call_operand.vmem [shape: f32[1,32], index: 2, kind: input, shape index: {}]   ;;  %s2582_s3 = inlined_call_operand.vmem [shape: bf16[32,96], index: 3, kind: input, shape index: {}]   ;;  %s2583_s4 = inlined_call_operand.vmem [shape: bf16[32,32], index: 4, kind: input, shape index: {}]   ;;  %s2584_s5 = inlined_call_operand.vmem [shape: f32[8,4], index: 5, kind: input, shape index: {}]   ;;  %s2585_s6 = inlined_call_operand.vmem [shape: f32[8,4], index: 6, kind: input, shape index: {}]   ;;  %s2586_s7 = inlined_call_operand.vmem [shape: f32[1,32], index: 7, kind: input, shape index: {}]   ;;  %s2587_s8 = inlined_call_operand.vmem [shape: bf16[32,256], index: 8, kind: input, shape index: {}]   ;;  %s2588_s9 = inlined_call_operand.vmem [shape: bf16[128,32], index: 9, kind: input, shape index: {}]   ;;  %s2589_s10 = inlined_call_operand.hbm [shape: f32[2,8,32], index: 10, kind: output, shape index: {}]  }
   0x1   :  { %17 = vsyncpa [#allocation4 + $0x1], 0  ;;  %s2173_s13 = smov 0   ;;  %s2175_s14 = smov 0  }
   0x2   :  { %s2177_s15 = smov 0   ;;  %s2179_s16 = smov 0  }
   0x3 LB: > { %s2194_s17 = sadd.s32 4294967295, %s2081_s16   ;;  %s1694_s18 = sadd.s32 4294967294, %s2081_s16   ;;  %s2081_s16 = sphi %s2179_s16, %s2597_s16   ;;  %s2077_s15 = sphi %s2177_s15, %s2596_s15   ;;  %s2073_s14 = sphi %s2175_s14, %s2595_s14   ;;  %s2069_s13 = sphi %s2173_s13, %s2594_s13  }
   0x4   : > { %s2198_s19 = sadd.s32 1, %s2081_s16   ;;  %s245_s20 = sadd.s32 1, %s2077_s15 }
   0x5   : > { %s242_s21 = ssub.s32 %s2081_s16, %s2198_s19  ;;  %p255_p0 = scmp.ne.s32.totalorder %s2077_s15, %s2073_s14 }
   0x6   : > { %p243_p1 = scmp.eq.s32.totalorder %s242_s21, 0  ;;  %p256_p2 = scmp.eq.s32.totalorder %s2194_s17, 1 }
   0x7   : > { %p261_p3 = scmp.ne.s32.totalorder %s2073_s14, %s2069_s13  ;;  %p262_p4 = scmp.eq.s32.totalorder %s1694_s18, 1 }
   0x8   : > { %s2209_s22 = scalar_select %p243_p1, %s2077_s15, %s245_s20  }
   0x9   : > { %p2211_p5 = por %p256_p2, %p255_p0  ;;  %p2215_p6 = por %p262_p4, %p261_p3 }
   0xa   : > { %p1697_p7 = scmp.ge.s32.totalorder %s2081_s16, 1  ;;  %p314_p8 = scmp.lt.s32.totalorder %s2081_s16, 3 }
   0xc   : > { %p315_p9 = pnand %p1697_p7, %p314_p8 }
   0xd   : > { %p351_p10 = scmp.lt.s32.totalorder (!%p315_p9), %s2194_s17, 1  ;;  %v357_v0 = vld [vmem:[%s2580_s1] sm:$0xff] (!%p315_p9)  ;;  %vm361_vm0 = vcmask (!%p315_p9), 261120   ;;  %v2083_v6 = vmov (!%p315_p9), 0.0   ;;  %vm2084_vm1 = vmmov (!%p315_p9), 0   ;;  %v1978_v7 = vld [vmem:[%s2582_s3 + $0x8] sm:$0xff] (!%p315_p9)   ;;  %v439_v61 = vlaneseq (!%p315_p9) }
   0xe   : > { %318 = sbr.rel (%p315_p9) target bundleno = 4031 (0xfbf), region = 60  ;;  %v1977_v5 = vld [vmem:[%s2582_s3] sm:$0xff] (!%p315_p9)   ;;  %1783 = vmatprep.subr.bf16.mxu0 (!%p315_p9), %v2083_v6  ;;  %1787 = vmatprep.mubr.msk.bf16.mxu0 (!%p315_p9), %vm2084_vm1, %v2083_v6  ;;  %s2085_s27 = smov (!%p315_p9), 32   ;;  %vm503_vm2 = vcmask (!%p315_p9), 31744   ;;  %vm601_vm4 = vcmask (!%p315_p9), 64512   ;;  %vm620_vm5 = vcmask (!%p315_p9), 1043456  }
   0xf   : > { %1784 = vmatpush3.bf16.msra.mxu0 (!%p315_p9), %v1977_v5  ;;  %1797 = vmatprep.subr.bf16.mxu1 (!%p315_p9), %v2083_v6  ;;  %v2251_v8 = vld [vmem:[%s2585_s6] sm:$0xff] (!%p315_p9)  ;;  %s2087_s18 = smov (!%p315_p9), 4   ;;  %s2088_s20 = smov (!%p315_p9), 124   ;;  %v2319_v63 = vshrl.u32 (!%p315_p9), %v439_v61, 7  ;;  %vm665_vm6 = vcmask (!%p315_p9), 60416   ;;  %vm896_vm7 = vcmask (!%p315_p9), 126016  }
  0x10   : > { %1785 = vmatprep.subr.bf16.mxu0 (!%p315_p9), %v2083_v6  ;;  %1799 = vmatprep.mubr.msk.bf16.mxu1 (!%p315_p9), %vm2084_vm1, %v2083_v6  ;;  %v2258_v9 = vld [vmem:[%s2584_s5] sm:$0xff] (!%p315_p9)  ;;  %s2089_s21 = smov (!%p315_p9), 96   ;;  %s2091_s26 = smov (!%p315_p9), 40   ;;  %vm1127_vm8 = vcmask (!%p315_p9), 191616   ;;  %vm1358_vm9 = vcmask (!%p315_p9), 257216  }
  0x11   : > { %486 = vrot.lane.b32.xlu1 (!%p315_p9), %v2251_v8, %s2085_s27  ;;  %v1700_v14 = vld [vmem:[%s2581_s2] ss:$0 sm:$0xff] (!%p315_p9)  ;;  %s2094_s29 = smov (!%p315_p9), 12   ;;  %s2095_s30 = smov (!%p315_p9), 64  }
  0x12   : > { %s2097_s12 = smov (!%p315_p9), 116  }
  0x13   : > { %1786 = vmatpush3.bf16.msra.mxu0 (!%p315_p9), %v1978_v7 }
  0x14   : > { %1791 = vmatprep.subr.bf16.mxu0 (!%p315_p9), %v2083_v6 }
  0x15   : > { %s352_s25 = scalar_select %p351_p10, %s2194_s17, 1  ;;  %468 = vrot.lane.b32.xlu1 %v2258_v9, %s2085_s27 }
  0x16   : > { %s2092_s27 = smov 8  }
  0x17   : > { %s1699_s28 = sshll.u32 %s352_s25, 3  ;;  %s2090_s25 = smov 92  }
  0x18   : > { %s354_s11 = scalar_lea.vmem %s2579_s0, %s1699_s28  ;;  %s2086_s28 = smov 36  }
  0x19   : > { %v356_v1 = vld [vmem:[%s354_s11] sm:$0xff]  ;;  %482 = vrot.lane.b32.xlu1 %v2258_v9, %s2086_s28  ;;  %s2096_s11 = smov 84  }
  0x1a   : > { %v2229_v2 = vadd.f32 %v357_v0, %v356_v1  ;;  %v2321_v0 = vand.u32 127, %v439_v61 }
  0x1c   : > { %v360_v3 = vmul.f32 %v2229_v2, %v2229_v2  ;;  %vm443_vm3 = vcmp.le.s32.totalorder %v2321_v0, %v2319_v63 }
  0x1e   : > { %v362_v4 = vsel %vm361_vm0, %v360_v3, 0.0 }
  0x1f   : > { %363 = vadd.xlane.f32.xlu0 %v362_v4 }
  0x35   : > { %472 = vrot.lane.b32.xlu0 %v2251_v8, %s2086_s28  ;;  %s2093_s28 = smov 44  }
  0x83   : > { %v487_v25 = vpop.permute.xlu1 %486 }
  0x87   : > { %v469_v27 = vpop.permute.xlu1 %468 }
  0x8b   : > { %v483_v28 = vpop.permute.xlu1 %482 }
  0xac   : > { %v364_v10 = vpop.xlane.xlu0 %363 }
  0xad   : > { %v366_v11 = vmul.f32 0.03125, %v364_v10 }
  0xaf   : > { %v367_v12 = vadd.f32 1e-06, %v366_v11 }
  0xb0   : > { %v473_v18 = vpop.permute.xlu0 %472 }
  0xb1   : > { %1995 = vrsqrt.f32 %v367_v12 }
  0xbb   : > { %v1996_v13 = vpop.eup %1995 }
  0xbc   : > { %v369_v15 = vmul.f32 %v1996_v13, %v2229_v2 }
  0xbe   : > { %v376_v16 = vmul.f32 %v1700_v14, %v369_v15 }
  0xc0   : > { %v377_v17 = vpack.c.bf16 %v376_v16, %v376_v16 }
  0xc2   : > { %1788 = vmatmul.mubr.msk.bf16.vlgmr.msra.gmra.mrb[0].mxu0 %vm361_vm0, %v377_v17 }
  0xc3   : > { %1793 = vmatprep.mubr.msk.bf16.mxu0 %vm2084_vm1, %v2083_v6 }
 0x195   : > { %v2269_v19 = vpop.f32.mrb[0].mxu0 }
 0x196   : > { %v475_v20 = vmul.f32 %v473_v18, %v2269_v19  ;;  %v1789_v21 = vpop.f32.mrb[1].mxu0  ;;  %v461_v22 = vmul.f32 %v2251_v8, %v2269_v19  ;;  %v489_v26 = vmul.f32 %v487_v25, %v2269_v19  ;;  %v471_v29 = vmul.f32 %v469_v27, %v2269_v19 }
 0x197   : > { %v434_v23 = vpop.f32.mrb[2].mxu0  ;;  %v485_v33 = vmul.f32 %v483_v28, %v2269_v19  ;;  %v444_v48 = vmul.f32 %v2258_v9, %v2269_v19 }
 0x198   : > { %463 = vrot.lane.b32.xlu0 %v461_v22, %s2087_s18  ;;  %v1790_v24 = vpop.f32.mrb[3].mxu0  ;;  %477 = vrot.lane.b32.xlu1 %v475_v20, %s2088_s20  ;;  %v2333_v22 = vpack.c.bf16 %v2269_v19, %v2269_v19 }
 0x19c   : > { %491 = vrot.lane.b32.xlu1 %v489_v26, %s2087_s18 }
 0x1a0   : > { %446 = vrot.lane.b32.xlu1 %v2251_v8, %s2087_s18 }
 0x1a4   : > { %457 = vrot.lane.b32.xlu1 %v2258_v9, %s2087_s18 }
 0x20a   : > { %v478_v30 = vpop.permute.xlu1 %477  ;;  %v464_v41 = vpop.permute.xlu0 %463 }
 0x20b   : > { %v480_v31 = vsub.f32 %v471_v29, %v478_v30 }
 0x20d   : > { %v481_v32 = vpack.c.bf16 %v480_v31, %v480_v31 }
 0x20e   : > { %v492_v34 = vpop.permute.xlu1 %491 }
 0x20f   : > { %v494_v35 = vadd.f32 %v492_v34, %v485_v33  ;;  %551 = vrot.lane.b32.xlu0 %v481_v32, %s2089_s21  ;;  %s2098_s21 = smov 88  }
 0x211   : > { %v495_v36 = vpack.c.bf16 %v494_v35, %v494_v35 }
 0x212   : > { %v447_v37 = vpop.permute.xlu1 %446 }
 0x213   : > { %501 = vrot.lane.b32.xlu1 %v495_v36, %s2090_s25  ;;  %v449_v38 = vmul.f32 %v447_v37, %v2269_v19  ;;  %s2099_s25 = smov 120  }
 0x216   : > { %v458_v39 = vpop.permute.xlu1 %457 }
 0x217   : > { %v460_v40 = vmul.f32 %v458_v39, %v2269_v19  ;;  %451 = vrot.lane.b32.xlu1 %v449_v38, %s2088_s20 }
 0x219   : > { %v466_v42 = vadd.f32 %v464_v41, %v460_v40 }
 0x21b   : > { %v467_v43 = vpack.c.bf16 %v466_v42, %v466_v42  ;;  %713 = vrot.lane.b32.xlu1 %v2251_v8, %s2091_s26 }
 0x21d   : > { %498 = vrot.lane.b32.xlu0 %v467_v43, %s2088_s20 }
 0x21f   : > { %685 = vrot.lane.b32.xlu1 %v2251_v8, %s2092_s27 }
 0x223   : > { %699 = vrot.lane.b32.xlu1 %v2251_v8, %s2093_s28 }
 0x227   : > { %671 = vrot.lane.b32.xlu1 %v2251_v8, %s2094_s29 }
 0x22b   : > { %709 = vrot.lane.b32.xlu1 %v2258_v9, %s2093_s28  ;;  %s2100_s28 = smov 48  }
 0x281   : > { %v552_v44 = vpop.permute.xlu0 %551 }
 0x282   : > { %v557_v45 = vsel %vm503_vm2, %v552_v44, 0 }
 0x283   : > { %1798 = vmatpush3.bf16.xpose.msra.mxu1 %v557_v45 }
 0x284   : > { %1821 = vmatprep.subr.bf16.mxu1 %v2083_v6 }
 0x285   : > { %v502_v46 = vpop.permute.xlu1 %501 }
 0x286   : > { %v508_v47 = vsel %vm503_vm2, %v502_v46, 0 }
 0x287   : > { %1792 = vmatpush3.bf16.xpose.msra.mxu0 %v508_v47 }
 0x288   : > { %1803 = vmatprep.subr.bf16.mxu0 %v2083_v6 }
 0x289   : > { %v452_v49 = vpop.permute.xlu1 %451 }
 0x28a   : > { %v454_v50 = vsub.f32 %v444_v48, %v452_v49 }
 0x28c   : > { %v455_v51 = vpack.c.bf16 %v454_v50, %v454_v50 }
 0x28d   : > { %v714_v52 = vpop.permute.xlu1 %713 }
 0x28e   : > { %v716_v53 = vmul.f32 %v714_v52, %v2269_v19  ;;  %1800 = vmatmul.mubr.msk.bf16.vlgmr.msra.gmra.mrb[0].mxu1 %vm503_vm2, %v455_v51 }
 0x28f   : > { %v499_v54 = vpop.permute.xlu0 %498  ;;  %1823 = vmatprep.mubr.msk.bf16.mxu1 %vm2084_vm1, %v2083_v6 }
 0x290   : > { %718 = vrot.lane.b32.xlu1 %v716_v53, %s2087_s18  ;;  %1794 = vmatmul.mubr.msk.bf16.vlgmr.msra.gmra.mrb[4].mxu0 %vm503_vm2, %v499_v54 }
 0x291   : > { %v686_v55 = vpop.permute.xlu1 %685  ;;  %1805 = vmatprep.mubr.msk.bf16.mxu0 %vm2084_vm1, %v2083_v6 }
 0x292   : > { %v688_v57 = vmul.f32 %v686_v55, %v2269_v19 }
 0x294   : > { %681 = vrot.lane.b32.xlu1 %v2258_v9, %s2094_s29  ;;  %s2590_s29 = smov 16  }
 0x295   : > { %v700_v56 = vpop.permute.xlu1 %699 }
 0x296   : > { %v702_v58 = vmul.f32 %v700_v56, %v2269_v19 }
 0x298   : > { %690 = vrot.lane.b32.xlu1 %v688_v57, %s2087_s18 }
 0x299   : > { %v672_v59 = vpop.permute.xlu1 %671 }
 0x29a   : > { %v674_v60 = vmul.f32 %v672_v59, %v2269_v19 }
 0x29c   : > { %695 = vrot.lane.b32.xlu1 %v2258_v9, %s2091_s26 }
 0x29d   : > { %v710_v16 = vpop.permute.xlu1 %709 }
 0x29e   : > { %v712_v20 = vmul.f32 %v710_v16, %v2269_v19 }
 0x2a0   : > { %667 = vrot.lane.b32.xlu1 %v2258_v9, %s2092_s27 }
 0x2a4   : > { %676 = vrot.lane.b32.xlu1 %v674_v60, %s2088_s20 }
 0x302   : > { %v719_v17 = vpop.permute.xlu1 %718 }
 0x303   : > { %v721_v21 = vadd.f32 %v719_v17, %v712_v20 }
 0x305   : > { %v722_v25 = vpack.c.bf16 %v721_v21, %v721_v21 }
 0x306   : > { %v682_v18 = vpop.permute.xlu1 %681 }
 0x307   : > { %v684_v24 = vmul.f32 %v682_v18, %v2269_v19 }
 0x30a   : > { %v691_v23 = vpop.permute.xlu1 %690 }
 0x30b   : > { %v693_v26 = vadd.f32 %v691_v23, %v684_v24 }
 0x30d   : > { %v694_v27 = vpack.c.bf16 %v693_v26, %v693_v26 }
 0x30e   : > { %v696_v28 = vpop.permute.xlu1 %695 }
 0x30f   : > { %v698_v32 = vmul.f32 %v696_v28, %v2269_v19 }
 0x312   : > { %v668_v29 = vpop.permute.xlu1 %667 }
 0x313   : > { %v670_v36 = vmul.f32 %v668_v29, %v2269_v19 }
 0x316   : > { %v677_v34 = vpop.permute.xlu1 %676 }
 0x317   : > { %v679_v38 = vsub.f32 %v670_v36, %v677_v34 }
 0x319   : > { %v680_v42 = vpack.c.bf16 %v679_v38, %v679_v38 }
 0x361   : > { %v593_v62 = vpop.f32.mrb[0].mxu1 }
 0x362   : > { %v1801_v1 = vpop.f32.mrb[1].mxu1 }
 0x363   : > { %v544_v3 = vpop.f32.mrb[4].mxu0  ;;  %v596_v4 = vpop.f32.mrb[2].mxu1 }
 0x364   : > { %v594_v5 = vadd.f32 %v593_v62, %v544_v3  ;;  %v1795_v7 = vpop.f32.mrb[5].mxu0  ;;  %v1802_v10 = vpop.f32.mrb[3].mxu1 }
 0x365   : > { %v547_v11 = vpop.f32.mrb[6].mxu0 }
 0x366   : > { %v599_v12 = vmul.f32 0.35355338, %v594_v5  ;;  %v1796_v13 = vpop.f32.mrb[7].mxu0 }
 0x368   : > { %v600_v14 = vsel %vm443_vm3, %v599_v12, -3.4028235e+38 }
 0x369   : > { %v602_v15 = vsel %vm601_vm4, %v600_v14, -inf }
 0x36a   : > { %603 = vmax.xlane.f32.xlu0 %v602_v15 }
 0x380   : > { %704 = vrot.lane.b32.xlu0 %v702_v58, %s2088_s20 }
 0x384   : > { %615 = vrot.lane.b32.xlu0 %v2333_v22, %s2095_s30  ;;  %s2102_s30 = smov 52  }
 0x388   : > { %727 = vrot.lane.b32.xlu0 %v722_v25, %s2096_s11  ;;  %s2103_s11 = smov 20  }
 0x38c   : > { %724 = vrot.lane.b32.xlu0 %v694_v27, %s2097_s12  ;;  %s2104_s12 = smov 56  }
 0x3f7   : > { %v604_v30 = vpop.xlane.xlu0 %603 }
 0x3f8   : > { %v605_v31 = vsub.f32 %v600_v14, %v604_v30 }
 0x3fa   : > { %v606_v33 = vmul.f32 1.442695, %v605_v31 }
 0x3fb   : > { %v705_v35 = vpop.permute.xlu0 %704 }
 0x3fc   : > { %1997 = vpow2.f32 %v606_v33  ;;  %v707_v37 = vsub.f32 %v698_v32, %v705_v35 }
 0x3fe   : > { %v708_v39 = vpack.c.bf16 %v707_v37, %v707_v37 }
 0x3ff   : > { %v616_v40 = vpop.permute.xlu0 %615 }
 0x400   : > { %v622_v41 = vsel %vm620_vm5, %v616_v40, 0  ;;  %779 = vrot.lane.b32.xlu0 %v708_v39, %s2098_s21  ;;  %s2105_s21 = smov 76  }
 0x401   : > { %1804 = vmatpush3.bf16.msra.mxu0 %v622_v41 }
 0x402   : > { %1809 = vmatprep.subr.bf16.mxu0 %v2083_v6 }
 0x403   : > { %v728_v45 = vpop.permute.xlu0 %727 }
 0x404   : > { %776 = vrot.lane.b32.xlu0 %v680_v42, %s2099_s25  ;;  %v733_v59 = vsel %vm503_vm2, %v728_v45, 0  ;;  %s2106_s25 = smov 108  }
 0x406   : > { %v1998_v43 = vpop.eup %1997 }
 0x407   : > { %v608_v44 = vsel %vm601_vm4, %v1998_v43, 0.0  ;;  %v725_v46 = vpop.permute.xlu0 %724 }
 0x408   : > { %609 = vadd.xlane.f32.xlu1 %v608_v44  ;;  %944 = vrot.lane.b32.xlu0 %v2251_v8, %s2100_s28 }
 0x419   : > { %916 = vrot.lane.b32.xlu1 %v2251_v8, %s2590_s29 }
 0x41d   : > { %930 = vrot.lane.b32.xlu1 %v2251_v8, %s2102_s30 }
 0x421   : > { %902 = vrot.lane.b32.xlu1 %v2251_v8, %s2103_s11 }
 0x425   : > { %940 = vrot.lane.b32.xlu1 %v2258_v9, %s2102_s30  ;;  %s2107_s30 = smov 80  }
 0x472   : > { %v780_v47 = vpop.permute.xlu0 %779 }
 0x473   : > { %v785_v62 = vsel %vm503_vm2, %v780_v47, 0 }
 0x476   : > { %v777_v48 = vpop.permute.xlu0 %776 }
 0x47a   : > { %v945_v49 = vpop.permute.xlu0 %944 }
 0x47b   : > { %v947_v50 = vmul.f32 %v945_v49, %v2269_v19 }
 0x47d   : > { %949 = vrot.lane.b32.xlu1 %v947_v50, %s2087_s18 }
 0x495   : > { %v610_v51 = vpop.xlane.xlu1 %609 }
 0x496   : > { %1999 = vrcp.f32 %v610_v51 }
 0x499   : > { %v917_v52 = vpop.permute.xlu1 %916 }
 0x49a   : > { %v919_v53 = vmul.f32 %v917_v52, %v2269_v19 }
 0x49c   : > { %921 = vrot.lane.b32.xlu1 %v919_v53, %s2087_s18 }
 0x49d   : > { %v931_v54 = vpop.permute.xlu1 %930 }
 0x49e   : > { %v933_v57 = vmul.f32 %v931_v54, %v2269_v19 }
 0x4a0   : > { %v2000_v55 = vpop.eup %1999  ;;  %926 = vrot.lane.b32.xlu1 %v2258_v9, %s2100_s28 }
 0x4a1   : > { %v612_v56 = vmul.f32 %v2000_v55, %v1998_v43  ;;  %v903_v60 = vpop.permute.xlu1 %902 }
 0x4a2   : > { %v905_v61 = vmul.f32 %v903_v60, %v2269_v19 }
 0x4a3   : > { %v613_v58 = vpack.c.bf16 %v612_v56, %v612_v56 }
 0x4a4   : > { %935 = vrot.lane.b32.xlu1 %v933_v57, %s2088_s20 }
 0x4a5   : > { %1806 = vmatmul.mubr.msk.bf16.vlgmr.msra.gmra.mrb[8].mxu0 %vm601_vm4, %v613_v58  ;;  %v941_v1 = vpop.permute.xlu1 %940 }
 0x4a6   : > { %1810 = vmatpush3.bf16.xpose.msra.mxu0 %v733_v59  ;;  %1811 = vmatprep.mubr.msk.bf16.mxu0 %vm2084_vm1, %v2083_v6  ;;  %v943_v3 = vmul.f32 %v941_v1, %v2269_v19 }
 0x4a7   : > { %1815 = vmatprep.subr.bf16.mxu0 %v2083_v6 }
 0x4a8   : > { %898 = vrot.lane.b32.xlu1 %v2258_v9, %s2590_s29  ;;  %s2110_s29 = smov 60  }
 0x4ac   : > { %907 = vrot.lane.b32.xlu1 %v905_v61, %s2088_s20 }
 0x4ad   : > { %1812 = vmatmul.mubr.msk.bf16.vlgmr.msra.gmra.mrb[12].mxu0 %vm503_vm2, %v725_v46 }
 0x4ae   : > { %1816 = vmatpush3.bf16.xpose.msra.mxu0 %v785_v62  ;;  %1817 = vmatprep.mubr.msk.bf16.mxu0 %vm2084_vm1, %v2083_v6 }
 0x4af   : > { %1839 = vmatprep.subr.bf16.mxu0 %v2083_v6 }
 0x4b0   : > { %841 = vrot.lane.b32.xlu1 %v2333_v22, %s2104_s12 }
 0x4b9   : > { %1818 = vmatmul.mubr.msk.bf16.vlgmr.msra.gmra.mrb[12].mxu0 %vm503_vm2, %v777_v48 }
 0x4ba   : > { %1841 = vmatprep.mubr.msk.bf16.mxu0 %vm2084_vm1, %v2083_v6 }
 0x4ef   : > { %v950_v4 = vpop.permute.xlu1 %949 }
 0x4f0   : > { %v952_v5 = vadd.f32 %v950_v4, %v943_v3 }
 0x4f2   : > { %v953_v7 = vpack.c.bf16 %v952_v5, %v952_v5 }
 0x4f4   : > { %958 = vrot.lane.b32.xlu1 %v953_v7, %s2105_s21  ;;  %s2109_s21 = smov 24  }
 0x50e   : > { %v922_v10 = vpop.permute.xlu1 %921 }
 0x512   : > { %v927_v11 = vpop.permute.xlu1 %926 }
 0x513   : > { %v929_v12 = vmul.f32 %v927_v11, %v2269_v19 }
 0x516   : > { %v936_v13 = vpop.permute.xlu1 %935 }
 0x517   : > { %v938_v14 = vsub.f32 %v929_v12, %v936_v13 }
 0x519   : > { %v939_v42 = vpack.c.bf16 %v938_v14, %v938_v14 }
 0x51a   : > { %v899_v15 = vpop.permute.xlu1 %898 }
 0x51b   : > { %v901_v16 = vmul.f32 %v899_v15, %v2269_v19 }
 0x51e   : > { %v908_v17 = vpop.permute.xlu1 %907 }
 0x51f   : > { %v910_v18 = vsub.f32 %v901_v16, %v908_v17 }
 0x521   : > { %v911_v45 = vpack.c.bf16 %v910_v18, %v910_v18 }
 0x522   : > { %v842_v20 = vpop.permute.xlu1 %841 }
 0x523   : > { %v847_v21 = vsel %vm620_vm5, %v842_v20, 0 }
 0x524   : > { %1822 = vmatpush3.bf16.msra.mxu1 %v847_v21 }
 0x525   : > { %1827 = vmatprep.subr.bf16.mxu1 %v2083_v6 }
 0x566   : > { %v959_v51 = vpop.permute.xlu1 %958 }
 0x567   : > { %v964_v56 = vsel %vm503_vm2, %v959_v51, 0 }
 0x578   : > { %v658_v23 = vpop.f32.mrb[8].mxu0 }
 0x579   : > { %v664_v24 = vpack.c.bf16 %v658_v23, %v658_v23  ;;  %v1807_v25 = vpop.f32.mrb[9].mxu0 }
 0x57a   : > { %v661_v26 = vpop.f32.mrb[10].mxu0 }
 0x57b   : > { %666 = vst.msk [vmem:[#allocation2] sm:$0xf] %vm665_vm6, %v664_v24  ;;  %v1808_v27 = vpop.f32.mrb[11].mxu0 }
 0x58c   : > { %v821_v28 = vpop.f32.mrb[12].mxu0 }
 0x58d   : > { %v827_v29 = vmul.f32 0.35355338, %v821_v28  ;;  %v1819_v30 = vpop.f32.mrb[13].mxu0 }
 0x58e   : > { %v824_v31 = vpop.f32.mrb[14].mxu0 }
 0x58f   : > { %v1820_v32 = vpop.f32.mrb[15].mxu0  ;;  %v828_v33 = vsel %vm443_vm3, %v827_v29, -3.4028235e+38 }
 0x590   : > { %v829_v34 = vsel %vm601_vm4, %v828_v33, -inf }
 0x591   : > { %830 = vmax.xlane.f32.xlu0 %v829_v34 }
 0x5a7   : > { %912 = vrot.lane.b32.xlu0 %v2258_v9, %s2103_s11  ;;  %s2108_s11 = smov 112  }
 0x61e   : > { %v831_v35 = vpop.xlane.xlu0 %830 }
 0x61f   : > { %v832_v36 = vsub.f32 %v828_v33, %v831_v35 }
 0x621   : > { %v833_v37 = vmul.f32 1.442695, %v832_v36 }
 0x622   : > { %v913_v38 = vpop.permute.xlu0 %912 }
 0x623   : > { %2001 = vpow2.f32 %v833_v37  ;;  %v915_v39 = vmul.f32 %v913_v38, %v2269_v19 }
 0x625   : > { %v924_v40 = vadd.f32 %v922_v10, %v915_v39 }
 0x627   : > { %v925_v41 = vpack.c.bf16 %v924_v40, %v924_v40 }
 0x629   : > { %955 = vrot.lane.b32.xlu1 %v925_v41, %s2106_s25  ;;  %s2111_s25 = smov 28  }
 0x62d   : > { %v2002_v43 = vpop.eup %2001  ;;  %1010 = vrot.lane.b32.xlu1 %v939_v42, %s2107_s30 }
 0x62e   : > { %v835_v44 = vsel %vm601_vm4, %v2002_v43, 0.0 }
 0x62f   : > { %836 = vadd.xlane.f32.xlu0 %v835_v44 }
 0x631   : > { %1007 = vrot.lane.b32.xlu1 %v911_v45, %s2108_s11 }
 0x635   : > { %1175 = vrot.lane.b32.xlu1 %v2251_v8, %s2104_s12 }
 0x645   : > { %1147 = vrot.lane.b32.xlu0 %v2251_v8, %s2109_s21 }
 0x649   : > { %1161 = vrot.lane.b32.xlu0 %v2251_v8, %s2110_s29 }
 0x64d   : > { %1133 = vrot.lane.b32.xlu0 %v2251_v8, %s2111_s25 }
 0x651   : > { %1171 = vrot.lane.b32.xlu0 %v2258_v9, %s2110_s29  ;;  %s2115_s29 = smov 104  }
 0x655   : > { %1143 = vrot.lane.b32.xlu0 %v2258_v9, %s2111_s25 }
 0x69b   : > { %v956_v55 = vpop.permute.xlu1 %955 }
 0x69f   : > { %v1011_v60 = vpop.permute.xlu1 %1010 }
 0x6a0   : > { %v1016_v61 = vsel %vm503_vm2, %v1011_v60, 0 }
 0x6a3   : > { %v1008_v62 = vpop.permute.xlu1 %1007 }
 0x6a7   : > { %v1176_v29 = vpop.permute.xlu1 %1175 }
 0x6a8   : > { %v1178_v30 = vmul.f32 %v1176_v29, %v2269_v19 }
 0x6bc   : > { %v837_v46 = vpop.xlane.xlu0 %836 }
 0x6bd   : > { %2003 = vrcp.f32 %v837_v46 }
 0x6c0   : > { %v1148_v47 = vpop.permute.xlu0 %1147 }
 0x6c1   : > { %v1150_v48 = vmul.f32 %v1148_v47, %v2269_v19 }
 0x6c3   : > { %1152 = vrot.lane.b32.xlu0 %v1150_v48, %s2087_s18 }
 0x6c4   : > { %v1162_v49 = vpop.permute.xlu0 %1161 }
 0x6c5   : > { %v1164_v8 = vmul.f32 %v1162_v49, %v2269_v19 }
 0x6c7   : > { %v2004_v50 = vpop.eup %2003  ;;  %1157 = vrot.lane.b32.xlu0 %v2258_v9, %s2104_s12  ;;  %s2593_s12 = smov 16  }
 0x6c8   : > { %v839_v52 = vmul.f32 %v2004_v50, %v2002_v43  ;;  %v1134_v53 = vpop.permute.xlu0 %1133 }
 0x6c9   : > { %v1136_v58 = vmul.f32 %v1134_v53, %v2269_v19 }
 0x6ca   : > { %v840_v54 = vpack.c.bf16 %v839_v52, %v839_v52 }
 0x6cb   : > { %1166 = vrot.lane.b32.xlu0 %v1164_v8, %s2088_s20 }
 0x6cc   : > { %1824 = vmatmul.mubr.msk.bf16.vlgmr.msra.gmra.mrb[4].mxu1 %vm601_vm4, %v840_v54  ;;  %v1172_v57 = vpop.permute.xlu0 %1171 }
 0x6cd   : > { %1828 = vmatpush3.bf16.xpose.msra.mxu1 %v964_v56  ;;  %v1174_v59 = vmul.f32 %v1172_v57, %v2269_v19  ;;  %1829 = vmatprep.mubr.msk.bf16.mxu1 %vm2084_vm1, %v2083_v6 }
 0x6ce   : > { %1833 = vmatprep.subr.bf16.mxu1 %v2083_v6 }
 0x6cf   : > { %1138 = vrot.lane.b32.xlu0 %v1136_v58, %s2088_s20  ;;  %s2112_s20 = smov 68  }
 0x6d0   : > { %v1144_v1 = vpop.permute.xlu0 %1143 }
 0x6d1   : > { %v1146_v3 = vmul.f32 %v1144_v1, %v2269_v19 }
 0x6d3   : > { %1072 = vrot.lane.b32.xlu0 %v2333_v22, %s2100_s28  ;;  %s2113_s28 = smov 100  }
 0x6d4   : > { %1830 = vmatmul.mubr.msk.bf16.vlgmr.msra.gmra.mrb[8].mxu1 %vm503_vm2, %v956_v55 }
 0x6d5   : > { %1834 = vmatpush3.bf16.xpose.msra.mxu1 %v1016_v61  ;;  %1835 = vmatprep.mubr.msk.bf16.mxu1 %vm2084_vm1, %v2083_v6 }
 0x6d6   : > { %1857 = vmatprep.subr.bf16.mxu1 %v2083_v6 }
 0x6e0   : > { %1836 = vmatmul.mubr.msk.bf16.vlgmr.msra.gmra.mrb[8].mxu1 %vm503_vm2, %v1008_v62 }
 0x6e1   : > { %1859 = vmatprep.mubr.msk.bf16.mxu1 %vm2084_vm1, %v2083_v6 }
 0x735   : > { %v1153_v4 = vpop.permute.xlu0 %1152 }
 0x736   : > { %v1155_v5 = vadd.f32 %v1153_v4, %v1146_v3 }
 0x738   : > { %v1156_v38 = vpack.c.bf16 %v1155_v5, %v1155_v5 }
 0x739   : > { %v1158_v7 = vpop.permute.xlu0 %1157 }
 0x73a   : > { %v1160_v10 = vmul.f32 %v1158_v7, %v2269_v19 }
 0x73d   : > { %v1167_v11 = vpop.permute.xlu0 %1166 }
 0x73e   : > { %v1169_v12 = vsub.f32 %v1160_v10, %v1167_v11 }
 0x740   : > { %v1170_v41 = vpack.c.bf16 %v1169_v12, %v1169_v12 }
 0x741   : > { %v1139_v13 = vpop.permute.xlu0 %1138 }
 0x745   : > { %v1073_v14 = vpop.permute.xlu0 %1072 }
 0x746   : > { %v1078_v15 = vsel %vm620_vm5, %v1073_v14, 0 }
 0x747   : > { %1840 = vmatpush3.bf16.msra.mxu0 %v1078_v15 }
 0x748   : > { %1845 = vmatprep.subr.bf16.mxu0 %v2083_v6 }
 0x79f   : > { %v2426_v16 = vpop.f32.mrb[4].mxu1 }
 0x7a0   : > { %v1825_v17 = vpop.f32.mrb[5].mxu1  ;;  %v1741_v1 = vpack.c.bf16 %v2426_v16, %v2426_v16 }
 0x7a1   : > { %v886_v18 = vpop.f32.mrb[6].mxu1 }
 0x7a2   : > { %v1826_v20 = vpop.f32.mrb[7].mxu1  ;;  %v1980_v18 = vld [vmem:[%s2583_s4 + $0x8] sm:$0xff]  }
 0x7b3   : > { %v1052_v21 = vpop.f32.mrb[8].mxu1 }
 0x7b4   : > { %v1058_v23 = vmul.f32 0.35355338, %v1052_v21  ;;  %v1837_v24 = vpop.f32.mrb[9].mxu1 }
 0x7b5   : > { %v1055_v25 = vpop.f32.mrb[10].mxu1 }
 0x7b6   : > { %v1838_v26 = vpop.f32.mrb[11].mxu1  ;;  %v1059_v27 = vsel %vm443_vm3, %v1058_v23, -3.4028235e+38 }
 0x7b7   : > { %v1060_v28 = vsel %vm601_vm4, %v1059_v27, -inf }
 0x7b8   : > { %1061 = vmax.xlane.f32.xlu1 %v1060_v28 }
 0x7c9   : > { %1180 = vrot.lane.b32.xlu1 %v1178_v30, %s2087_s18  ;;  %s2114_s18 = smov 72  }
 0x7cd   : > { %1129 = vrot.lane.b32.xlu1 %v2258_v9, %s2109_s21 }
 0x845   : > { %v1062_v31 = vpop.xlane.xlu1 %1061 }
 0x846   : > { %v1063_v32 = vsub.f32 %v1059_v27, %v1062_v31 }
 0x848   : > { %v1064_v33 = vmul.f32 1.442695, %v1063_v32 }
 0x849   : > { %v1181_v34 = vpop.permute.xlu1 %1180 }
 0x84a   : > { %2005 = vpow2.f32 %v1064_v33  ;;  %v1183_v35 = vadd.f32 %v1181_v34, %v1174_v59 }
 0x84c   : > { %v1184_v36 = vpack.c.bf16 %v1183_v35, %v1183_v35  ;;  %v1983_v35 = vld [vmem:[%s2587_s8 + $0x4] ss:$8 sps:$4 sm:$0xff]  }
 0x84d   : > { %v1130_v37 = vpop.permute.xlu1 %1129 }
 0x84e   : > { %1189 = vrot.lane.b32.xlu0 %v1184_v36, %s2112_s20  ;;  %v1132_v39 = vmul.f32 %v1130_v37, %v2269_v19  ;;  %v1981_v36 = vld [vmem:[%s2587_s8] ss:$8 sps:$4 sm:$0xff]   ;;  %v1986_v37 = vld [vmem:[%s2587_s8 + $0x14] ss:$8 sps:$4 sm:$0xff]   ;;  %s2117_s20 = smov [#allocation3]  }
 0x850   : > { %v1141_v42 = vsub.f32 %v1132_v39, %v1139_v13 }
 0x852   : > { %1186 = vrot.lane.b32.xlu0 %v1156_v38, %s2113_s28  ;;  %v1142_v43 = vpack.c.bf16 %v1141_v42, %v1141_v42  ;;  %v2116_v38 = vmov 0   ;;  %s2023_s28 = sshll.u32 %s2117_s20, 4  ;;  %s2024_s28 = int_to_ptr.vmem [resolvable:$false] %s2023_s28 }
 0x854   : > { %v2006_v40 = vpop.eup %2005 }
 0x855   : > { %v1066_v9 = vsel %vm601_vm4, %v2006_v40, 0.0 }
 0x856   : > { %1067 = vadd.xlane.f32.xlu1 %v1066_v9  ;;  %1241 = vrot.lane.b32.xlu0 %v1170_v41, %s2114_s18  ;;  %v1722_v9 = vld [vmem:[%s2586_s7] ss:$0 sm:$0xff]  ;;  %s348_s18 = sand.u32 1, %s2073_s14  }
 0x85a   : > { %1238 = vrot.lane.b32.xlu0 %v1142_v43, %s2115_s29  ;;  %s1698_s29 = sshll.u32 %s348_s18, 3 }
 0x8c0   : > { %v1190_v45 = vpop.permute.xlu0 %1189 }
 0x8c1   : > { %v1195_v49 = vsel %vm503_vm2, %v1190_v45, 0 }
 0x8c4   : > { %v1187_v19 = vpop.permute.xlu0 %1186 }
 0x8c8   : > { %v1242_v50 = vpop.permute.xlu0 %1241 }
 0x8c9   : > { %v1247_v51 = vsel %vm503_vm2, %v1242_v50, 0  ;;  %v1992_v50 = vld [vmem:[%s2588_s9 + $0x28] sm:$0xff]  }
 0x8cc   : > { %v1239_v52 = vpop.permute.xlu0 %1238 }
 0x8e3   : > { %v1068_v44 = vpop.xlane.xlu1 %1067 }
 0x8e4   : > { %2007 = vrcp.f32 %v1068_v44 }
 0x8ee   : > { %v2008_v46 = vpop.eup %2007 }
 0x8ef   : > { %v1070_v47 = vmul.f32 %v2008_v46, %v2006_v40  ;;  %v1987_v46 = vld [vmem:[%s2588_s9] sm:$0xff]  }
 0x8f1   : > { %v1071_v48 = vpack.c.bf16 %v1070_v47, %v1070_v47  ;;  %v1988_v47 = vld [vmem:[%s2588_s9 + $0x8] sm:$0xff]  }
 0x8f3   : > { %1842 = vmatmul.mubr.msk.bf16.vlgmr.msra.gmra.mrb[16].mxu0 %vm601_vm4, %v1071_v48  ;;  %v1989_v48 = vld [vmem:[%s2588_s9 + $0x10] sm:$0xff]  }
 0x8f4   : > { %1846 = vmatpush3.bf16.xpose.msra.mxu0 %v1195_v49  ;;  %1847 = vmatprep.mubr.msk.bf16.mxu0 %vm2084_vm1, %v2083_v6  ;;  %v1991_v49 = vld [vmem:[%s2588_s9 + $0x20] sm:$0xff]  }
 0x8f5   : > { %1851 = vmatprep.subr.bf16.mxu0 %v2083_v6 }
 0x8fb   : > { %1848 = vmatmul.mubr.msk.bf16.vlgmr.msra.gmra.mrb[20].mxu0 %vm503_vm2, %v1187_v19  ;;  %v1990_v19 = vld [vmem:[%s2588_s9 + $0x18] sm:$0xff]  }
 0x8fc   : > { %1852 = vmatpush3.bf16.xpose.msra.mxu0 %v1247_v51  ;;  %1853 = vmatprep.mubr.msk.bf16.mxu0 %vm2084_vm1, %v2083_v6  ;;  %v1993_v51 = vld [vmem:[%s2588_s9 + $0x30] sm:$0xff]  }
 0x8fd   : > { %1465 = vmatprep.subr.bf16.mxu0 %v1983_v35 }
 0x907   : > { %1854 = vmatmul.mubr.msk.bf16.vlgmr.msra.gmra.mrb[20].mxu0 %vm503_vm2, %v1239_v52  ;;  %v1994_v52 = vld [vmem:[%s2588_s9 + $0x38] sm:$0xff]  }
 0x908   : > { %1466 = vmatpush1.bf16.msra.mxu0 %v1981_v36  ;;  %1497 = vmatprep.mubr.bf16.mxu0 %v2116_v38 }
 0x909   : > { %1467 = vmatprep.subr.bf16.mxu0 %v1986_v37 }
 0x9c6   : > { %v1114_v53 = vpop.f32.mrb[16].mxu0 }
 0x9c7   : > { %v1843_v8 = vpop.f32.mrb[17].mxu0  ;;  %v1742_v63 = vpack.c.bf16 %v1114_v53, %v1114_v53 }
 0x9c8   : > { %v1117_v54 = vpop.f32.mrb[18].mxu0 }
 0x9c9   : > { %v1844_v55 = vpop.f32.mrb[19].mxu0 }
 0x9da   : > { %v1283_v56 = vpop.f32.mrb[20].mxu0 }
 0x9db   : > { %v1289_v57 = vmul.f32 0.35355338, %v1283_v56  ;;  %v1855_v58 = vpop.f32.mrb[21].mxu0 }
 0x9dc   : > { %v1286_v59 = vpop.f32.mrb[22].mxu0 }
 0x9dd   : > { %v1856_v60 = vpop.f32.mrb[23].mxu0  ;;  %v1290_v61 = vsel %vm443_vm3, %v1289_v57, -3.4028235e+38 }
 0x9de   : > { %v1291_v62 = vsel %vm601_vm4, %v1290_v61, -inf }
 0x9df   : > { %1292 = vmax.xlane.f32.xlu0 %v1291_v62 }
 0x9f5   : > { %893 = vrot.lane.b32.xlu0 %v1741_v1, %s2092_s27 }
 0xa6c   : > { %v1293_v3 = vpop.xlane.xlu0 %1292 }
 0xa6d   : > { %v1294_v4 = vsub.f32 %v1290_v61, %v1293_v3 }
 0xa6f   : > { %v1295_v5 = vmul.f32 1.442695, %v1294_v4 }
 0xa70   : > { %v894_v7 = vpop.permute.xlu0 %893 }
 0xa71   : > { %2009 = vpow2.f32 %v1295_v5  ;;  %897 = vst.msk [vmem:[#allocation2] sm:$0xf] %vm896_vm7, %v894_v7 }
 0xa7b   : > { %v2010_v10 = vpop.eup %2009 }
 0xa7c   : > { %v1297_v11 = vsel %vm601_vm4, %v2010_v10, 0.0 }
 0xa7d   : > { %1298 = vadd.xlane.f32.xlu1 %v1297_v11 }
 0xa8e   : > { %1303 = vrot.lane.b32.xlu1 %v2333_v22, %s2091_s26  ;;  %v1979_v22 = vld [vmem:[%s2583_s4] sm:$0xff]   ;;  %s350_s26 = scalar_lea.vmem [#allocation3], %s1698_s29  ;;  %s2025_s29 = scalar_lea.vmem %s2024_s28, 256 }
 0xa8f   : > { %s1635_s27 = sshll.u32 %s350_s26, 4  ;;  %s2538_s27 = int_to_ptr.vmem [resolvable:$true] %s1635_s27 }
 0xa90   : > { %s2019_s25 = scalar_lea.vmem %s2538_s27, 128  ;;  %p2026_p0 = scmp.lt.s32.totalorder %s2538_s27, %s2024_s28 }
 0xa91   : > { %p2020_p11 = scmp.ne.s32.totalorder %s2538_s27, %s2019_s25  ;;  %p2027_p1 = scmp.lt.s32.totalorder %s2025_s29, %s2019_s25 }
 0xa92   : > { %1124 = vrot.lane.b32.xlu1 %v1742_v63, %s2593_s12  ;;  %s1738_s12 = sshll.u32 %s2194_s17, 7  ;;  %s1622_s17 = scalar_lea.sflag [#allocation4], %s348_s18 }
 0xa93   : > { %p2021_p12 = pnand %p2020_p11, %p2211_p5  ;;  %p2028_p2 = por %p2027_p1, %p2026_p0 }
 0xa95   : > { %p2022_p13 = pneg %p2021_p12 }
 0xa97   : > { %p2029_p3 = pnand %p2028_p2, %p2022_p13 }
 0xb0a   : > { %v1299_v0 = vpop.xlane.xlu1 %1298 }
 0xb0b   : > { %2011 = vrcp.f32 %v1299_v0 }
 0xb0e   : > { %v1304_v12 = vpop.permute.xlu1 %1303 }
 0xb0f   : > { %v1309_v13 = vsel %vm620_vm5, %v1304_v12, 0 }
 0xb10   : > { %1858 = vmatpush3.bf16.msra.mxu1 %v1309_v13 }
 0xb11   : > { %1863 = vmatprep.subr.bf16.mxu1 %v2083_v6 }
 0xb12   : > { %v1125_v14 = vpop.permute.xlu1 %1124 }
 0xb13   : > { %1128 = vst.msk [vmem:[#allocation2] sm:$0xf] %vm1127_vm8, %v1125_v14 }
 0xb15   : > { %v2012_v15 = vpop.eup %2011 }
 0xb16   : > { %v1301_v16 = vmul.f32 %v2012_v15, %v2010_v10 }
 0xb18   : > { %v1302_v17 = vpack.c.bf16 %v1301_v16, %v1301_v16 }
 0xb1a   : > { %1860 = vmatmul.mubr.msk.bf16.vlgmr.msra.gmra.mrb[12].mxu1 %vm601_vm4, %v1302_v17 }
 0xb1b   : > { %1867 = vmatprep.mubr.msk.bf16.mxu1 %vm2084_vm1, %v2083_v6  ;;  %1864 = vmatpush3.bf16.msra.mxu1 %v1979_v22 }
 0xb1c   : > { %1865 = vmatprep.subr.bf16.mxu1 %v2083_v6 }
 0xb1f   : > { %1866 = vmatpush3.bf16.msra.mxu1 %v1980_v18 }
 0xb20   : > { %1871 = vmatprep.subr.bf16.mxu1 %v2083_v6 }
 0xbed   : > { %v1345_v20 = vpop.f32.mrb[12].mxu1 }
 0xbee   : > { %v1743_v21 = vpack.c.bf16 %v1345_v20, %v1345_v20  ;;  %v1861_v23 = vpop.f32.mrb[13].mxu1 }
 0xbef   : > { %v1348_v24 = vpop.f32.mrb[14].mxu1 }
 0xbf0   : > { %1355 = vrot.lane.b32.xlu1 %v1743_v21, %s2109_s21  ;;  %v1862_v25 = vpop.f32.mrb[15].mxu1  ;;  %s2536_s21 = scalar_lea.hbm %s2589_s10, %s1738_s12 }
 0xc62   : > { %v1356_v26 = vpop.permute.xlu1 %1355 }
 0xc63   : > { %1359 = vst.msk [vmem:[#allocation2] sm:$0xf] %vm1358_vm9, %v1356_v26 }
 0xc6a   : > { %v1360_v27 = vld [vmem:[#allocation2] sm:$0xf] }
 0xc6b   : > { %1868 = vmatmul.mubr.msk.bf16.vlgmr.msra.gmra.mrb[16].mxu1 %vm361_vm0, %v1360_v27 }
 0xc6c   : > { %1887 = vmatprep.mubr.msk.bf16.mxu1 %vm2084_vm1, %v2083_v6  ;;  %1872 = vmatpush3.bf16.msra.mxu1 %v1987_v46 }
 0xc6d   : > { %1873 = vmatprep.subr.bf16.mxu1 %v2083_v6 }
 0xc70   : > { %1874 = vmatpush3.bf16.msra.mxu1 %v1988_v47 }
 0xc71   : > { %1875 = vmatprep.subr.bf16.mxu1 %v2083_v6 }
 0xc74   : > { %1876 = vmatpush3.bf16.msra.mxu1 %v1989_v48 }
 0xc75   : > { %1877 = vmatprep.subr.bf16.mxu1 %v2083_v6 }
 0xc78   : > { %1878 = vmatpush3.bf16.msra.mxu1 %v1990_v19 }
 0xc79   : > { %1879 = vmatprep.subr.bf16.mxu1 %v2083_v6 }
 0xc7c   : > { %1880 = vmatpush3.bf16.msra.mxu1 %v1991_v49 }
 0xc7d   : > { %1881 = vmatprep.subr.bf16.mxu1 %v2083_v6 }
 0xc80   : > { %1882 = vmatpush3.bf16.msra.mxu1 %v1992_v50 }
 0xc81   : > { %1883 = vmatprep.subr.bf16.mxu1 %v2083_v6 }
 0xc84   : > { %1884 = vmatpush3.bf16.msra.mxu1 %v1993_v51 }
 0xc85   : > { %1885 = vmatprep.subr.bf16.mxu1 %v2083_v6 }
 0xc88   : > { %1886 = vmatpush3.bf16.msra.mxu1 %v1994_v52 }
 0xd3e   : > { %v1414_v28 = vpop.f32.mrb[16].mxu1 }
 0xd3f   : > { %v2477_v29 = vadd.f32 %v1414_v28, %v2229_v2  ;;  %v1869_v30 = vpop.f32.mrb[17].mxu1  ;;  %v1984_v2 = vld [vmem:[%s2587_s8 + $0x10] ss:$8 sps:$4 sm:$0xff]  }
 0xd40   : > { %v1417_v31 = vpop.f32.mrb[18].mxu1  ;;  %1468 = vmatpush1.bf16.msra.mxu0 %v1984_v2 }
 0xd41   : > { %v1870_v32 = vpop.f32.mrb[19].mxu1  ;;  %v1422_v33 = vmul.f32 %v2477_v29, %v2477_v29 }
 0xd43   : > { %v1423_v34 = vsel %vm361_vm0, %v1422_v33, 0.0 }
 0xd44   : > { %1424 = vadd.xlane.f32.xlu1 %v1423_v34 }
 0xdd1   : > { %v1425_v39 = vpop.xlane.xlu1 %1424 }
 0xdd2   : > { %v1426_v40 = vmul.f32 0.03125, %v1425_v39 }
 0xdd4   : > { %v1427_v41 = vadd.f32 1e-06, %v1426_v40 }
 0xdd6   : > { %2013 = vrsqrt.f32 %v1427_v41 }
 0xde0   : > { %v2014_v42 = vpop.eup %2013 }
 0xde1   : > { %v1429_v43 = vmul.f32 %v2014_v42, %v2477_v29 }
 0xde3   : > { %v1436_v44 = vmul.f32 %v1722_v9, %v1429_v43 }
 0xde5   : > { %v1437_v45 = vpack.c.bf16 %v1436_v44, %v1436_v44 }
 0xde7   : > { %1727 = vmatmul.mubr.msk.bf16.vlgmr.msra.gmra.mrb[24].mxu0 %vm361_vm0, %v1437_v45 }
 0xeba   : > { %v1499_v53 = vpop.f32.mrb[24].mxu0 }
 0xebb   : > { %v1728_v8 = vmul.f32 -1.442695, %v1499_v53  ;;  %v1501_v54 = vpop.f32.mrb[25].mxu0 }
 0xebc   : > { %v1503_v55 = vpop.f32.mrb[26].mxu0 }
 0xebd   : > { %2015 = vpow2.f32 %v1728_v8  ;;  %v1504_v56 = vpop.f32.mrb[27].mxu0 }
 0xec7   : > { %v2016_v57 = vpop.eup %2015 }
 0xec8   : > { %v1509_v58 = vadd.f32 1.0, %v2016_v57 }
 0xeca   : > { %2017 = vrcp.f32 %v1509_v58 }
 0xed4   : > { %v2018_v59 = vpop.eup %2017 }
 0xed5   : > { %v1512_v60 = vmul.f32 %v2018_v59, %v1499_v53 }
 0xed7   : > { %v1513_v61 = vmul.f32 %v1512_v60, %v1501_v54 }
 0xed9   : > { %v1514_v6 = vpack.c.bf16 %v1513_v61, %v1513_v61 }
 0xedb   : > { %1888 = vmatmul.mubr.bf16.vlgmr.msra.gmra.mrb[20].mxu1 %v1514_v6 }
 0xfae   : > { %v1613_v62 = vpop.f32.mrb[20].mxu1 }
 0xfaf   : > { %v1619_v1 = vadd.f32 %v1613_v62, %v2477_v29  ;;  %v1889_v3 = vpop.f32.mrb[21].mxu1 }
 0xfb0   : > { %v1616_v4 = vpop.f32.mrb[22].mxu1 }
 0xfb1   : > { %v1890_v5 = vpop.f32.mrb[23].mxu1  ;;  %1620 = vst.msk [vmem:[%s350_s26] sm:$0xff] %vm361_vm0, %v1619_v1 }
 0xfb2   : > { %2032 = shalt.err (!%p2029_p3)
}
 0xfb3   : > { %s2033_s18 = scalar_lea.hbm %s2536_s21, 128  ;;  %s2037_s30 = scalar_lea.hbm %s2589_s10, 256 }
 0xfb4   : > { %p2034_p4 = scmp.ne.s32.totalorder %s2536_s21, %s2033_s18  ;;  %p2038_p9 = scmp.lt.u32.totalorder %s2536_s21, %s2589_s10 }
 0xfb5   : > { %p2039_p10 = scmp.lt.u32.totalorder %s2037_s30, %s2033_s18  ;;  %p2041_p12 = scmp.lt.u32.totalorder %s2033_s18, %s2536_s21 }
 0xfb6   : > { %p2035_p7 = pnand %p2034_p4, %p2211_p5 }
 0xfb7   : > { %p2040_p11 = por %p2039_p10, %p2038_p9 }
 0xfb8   : > { %p2036_p8 = pneg %p2035_p7 }
 0xfb9   : > { %p2042_p13 = por %p2041_p12, %p2040_p11 }
 0xfbb   : > { %p2043_p0 = pnand %p2042_p13, %p2036_p8 }
 0xfbd   : > { %2046 = shalt.err (!%p2043_p0)
}
 0xfbe   : > { %1904 = dma.vmem_to_hbm [thread:$0]  (%p2211_p5), %s2538_s27, 128, %s2536_s21, %s1622_s17  }
 0xfbf PF: > { %p1910_p1 = scmp.ge.s32.totalorder %s2081_s16, 2  ;;  %s1647_s25 = sand.u32 1, %s2069_s13  }
 0xfc0   : > { %s1648_s28 = scalar_lea.sflag [#allocation4], %s1647_s25 }
 0xfc1   : > { %p1907_p2 = pnand %p1910_p1, %p2215_p6 }
 0xfc3   : > { %2064 = dma.done.wait (!%p1907_p2), %s1648_s28, 128  }
 0xfc4   : > { %2066 = vsyncadd (!%p1907_p2), %s1648_s28, 4294967168  ;;  %p20_p3 = scmp.ge.s32.totalorder %s2198_s19, 4   ;;  %s2594_s13 = smov %s2073_s14 }
 0xfc5   : > { %s2595_s14 = smov %s2077_s15  ;;  %s2596_s15 = smov %s2209_s22 }
 0xfc6   : > { %s2597_s16 = smov %s2198_s19  ;;  %22 = sbr.rel (!%p20_p3) target bundleno = 3 (0x3), region = 95 }
 0xfcd   :  { %1653 = vsyncpa [#allocation4], 1 }
 0xfce   :  { %1655 = vsyncpa [#allocation4 + $0x1], 1 }

// kernel: tpu_custom_call.1
= control target key start
LH: loop header
LB: loop body
LE: loop exit
PB: predicated region body
PF: predicated region fallthrough
CT: control target
= control target key end

     0   :  { %15 = vsyncpa [#allocation4], 0  ;;  %s2579_s0 = inlined_call_operand.vmem [shape: f32[2,8,32], index: 0, kind: input, shape index: {}]   ;;  %s2580_s1 = inlined_call_operand.vmem [shape: f32[8,32], index: 1, kind: input, shape index: {}]   ;;  %s2581_s2 = inlined_call_operand.vmem [shape: f32[1,32], index: 2, kind: input, shape index: {}]   ;;  %s2582_s3 = inlined_call_operand.vmem [shape: bf16[32,96], index: 3, kind: input, shape index: {}]   ;;  %s2583_s4 = inlined_call_operand.vmem [shape: bf16[32,32], index: 4, kind: input, shape index: {}]   ;;  %s2584_s5 = inlined_call_operand.vmem [shape: f32[8,4], index: 5, kind: input, shape index: {}]   ;;  %s2585_s6 = inlined_call_operand.vmem [shape: f32[8,4], index: 6, kind: input, shape index: {}]   ;;  %s2586_s7 = inlined_call_operand.vmem [shape: f32[1,32], index: 7, kind: input, shape index: {}]   ;;  %s2587_s8 = inlined_call_operand.vmem [shape: bf16[32,256], index: 8, kind: input, shape index: {}]   ;;  %s2588_s9 = inlined_call_operand.vmem [shape: bf16[128,32], index: 9, kind: input, shape index: {}]   ;;  %s2589_s10 = inlined_call_operand.hbm [shape: f32[2,8,32], index: 10, kind: output, shape index: {}]  }
   0x1   :  { %17 = vsyncpa [#allocation4 + $0x1], 0  ;;  %s2173_s13 = smov 0   ;;  %s2175_s14 = smov 0  }
   0x2   :  { %s2177_s15 = smov 0   ;;  %s2179_s16 = smov 0  }
   0x3 LB: > { %s2194_s17 = sadd.s32 4294967295, %s2081_s16   ;;  %s1694_s18 = sadd.s32 4294967294, %s2081_s16   ;;  %s2081_s16 = sphi %s2179_s16, %s2597_s16   ;;  %s2077_s15 = sphi %s2177_s15, %s2596_s15   ;;  %s2073_s14 = sphi %s2175_s14, %s2595_s14   ;;  %s2069_s13 = sphi %s2173_s13, %s2594_s13  }
   0x4   : > { %s2198_s19 = sadd.s32 1, %s2081_s16   ;;  %s245_s20 = sadd.s32 1, %s2077_s15 }
   0x5   : > { %s242_s21 = ssub.s32 %s2081_s16, %s2198_s19  ;;  %p255_p0 = scmp.ne.s32.totalorder %s2077_s15, %s2073_s14 }
   0x6   : > { %p243_p1 = scmp.eq.s32.totalorder %s242_s21, 0  ;;  %p256_p2 = scmp.eq.s32.totalorder %s2194_s17, 1 }
   0x7   : > { %p261_p3 = scmp.ne.s32.totalorder %s2073_s14, %s2069_s13  ;;  %p262_p4 = scmp.eq.s32.totalorder %s1694_s18, 1 }
   0x8   : > { %s2209_s22 = scalar_select %p243_p1, %s2077_s15, %s245_s20  }
   0x9   : > { %p2211_p5 = por %p256_p2, %p255_p0  ;;  %p2215_p6 = por %p262_p4, %p261_p3 }
   0xa   : > { %p1697_p7 = scmp.ge.s32.totalorder %s2081_s16, 1  ;;  %p314_p8 = scmp.lt.s32.totalorder %s2081_s16, 3 }
   0xc   : > { %p315_p9 = pnand %p1697_p7, %p314_p8 }
   0xd   : > { %p351_p10 = scmp.lt.s32.totalorder (!%p315_p9), %s2194_s17, 1  ;;  %v357_v0 = vld [vmem:[%s2580_s1] sm:$0xff] (!%p315_p9)  ;;  %vm361_vm0 = vcmask (!%p315_p9), 261120   ;;  %v2083_v6 = vmov (!%p315_p9), 0.0   ;;  %vm2084_vm1 = vmmov (!%p315_p9), 0   ;;  %v1978_v7 = vld [vmem:[%s2582_s3 + $0x8] sm:$0xff] (!%p315_p9)   ;;  %v439_v61 = vlaneseq (!%p315_p9) }
   0xe   : > { %318 = sbr.rel (%p315_p9) target bundleno = 4031 (0xfbf), region = 60  ;;  %v1977_v5 = vld [vmem:[%s2582_s3] sm:$0xff] (!%p315_p9)   ;;  %1783 = vmatprep.subr.bf16.mxu0 (!%p315_p9), %v2083_v6  ;;  %1787 = vmatprep.mubr.msk.bf16.mxu0 (!%p315_p9), %vm2084_vm1, %v2083_v6  ;;  %s2085_s27 = smov (!%p315_p9), 32   ;;  %vm503_vm2 = vcmask (!%p315_p9), 31744   ;;  %vm601_vm4 = vcmask (!%p315_p9), 64512   ;;  %vm620_vm5 = vcmask (!%p315_p9), 1043456  }
   0xf   : > { %1784 = vmatpush3.bf16.msra.mxu0 (!%p315_p9), %v1977_v5  ;;  %1797 = vmatprep.subr.bf16.mxu1 (!%p315_p9), %v2083_v6  ;;  %v2251_v8 = vld [vmem:[%s2585_s6] sm:$0xff] (!%p315_p9)  ;;  %s2087_s18 = smov (!%p315_p9), 4   ;;  %s2088_s20 = smov (!%p315_p9), 124   ;;  %v2319_v63 = vshrl.u32 (!%p315_p9), %v439_v61, 7  ;;  %vm665_vm6 = vcmask (!%p315_p9), 60416   ;;  %vm896_vm7 = vcmask (!%p315_p9), 126016  }
  0x10   : > { %1785 = vmatprep.subr.bf16.mxu0 (!%p315_p9), %v2083_v6  ;;  %1799 = vmatprep.mubr.msk.bf16.mxu1 (!%p315_p9), %vm2084_vm1, %v2083_v6  ;;  %v2258_v9 = vld [vmem:[%s2584_s5] sm:$0xff] (!%p315_p9)  ;;  %s2089_s21 = smov (!%p315_p9), 96   ;;  %s2091_s26 = smov (!%p315_p9), 40   ;;  %vm1127_vm8 = vcmask (!%p315_p9), 191616   ;;  %vm1358_vm9 = vcmask (!%p315_p9), 257216  }
  0x11   : > { %486 = vrot.lane.b32.xlu1 (!%p315_p9), %v2251_v8, %s2085_s27  ;;  %v1700_v14 = vld [vmem:[%s2581_s2] ss:$0 sm:$0xff] (!%p315_p9)  ;;  %s2094_s29 = smov (!%p315_p9), 12   ;;  %s2095_s30 = smov (!%p315_p9), 64  }
  0x12   : > { %s2097_s12 = smov (!%p315_p9), 116  }
  0x13   : > { %1786 = vmatpush3.bf16.msra.mxu0 (!%p315_p9), %v1978_v7 }
  0x14   : > { %1791 = vmatprep.subr.bf16.mxu0 (!%p315_p9), %v2083_v6 }
  0x15   : > { %s352_s25 = scalar_select %p351_p10, %s2194_s17, 1  ;;  %468 = vrot.lane.b32.xlu1 %v2258_v9, %s2085_s27 }
  0x16   : > { %s2092_s27 = smov 8  }
  0x17   : > { %s1699_s28 = sshll.u32 %s352_s25, 3  ;;  %s2090_s25 = smov 92  }
  0x18   : > { %s354_s11 = scalar_lea.vmem %s2579_s0, %s1699_s28  ;;  %s2086_s28 = smov 36  }
  0x19   : > { %v356_v1 = vld [vmem:[%s354_s11] sm:$0xff]  ;;  %482 = vrot.lane.b32.xlu1 %v2258_v9, %s2086_s28  ;;  %s2096_s11 = smov 84  }
  0x1a   : > { %v2229_v2 = vadd.f32 %v357_v0, %v356_v1  ;;  %v2321_v0 = vand.u32 127, %v439_v61 }
  0x1c   : > { %v360_v3 = vmul.f32 %v2229_v2, %v2229_v2  ;;  %vm443_vm3 = vcmp.le.s32.totalorder %v2321_v0, %v2319_v63 }
  0x1e   : > { %v362_v4 = vsel %vm361_vm0, %v360_v3, 0.0 }
  0x1f   : > { %363 = vadd.xlane.f32.xlu0 %v362_v4 }
  0x35   : > { %472 = vrot.lane.b32.xlu0 %v2251_v8, %s2086_s28  ;;  %s2093_s28 = smov 44  }
  0x83   : > { %v487_v25 = vpop.permute.xlu1 %486 }
  0x87   : > { %v469_v27 = vpop.permute.xlu1 %468 }
  0x8b   : > { %v483_v28 = vpop.permute.xlu1 %482 }
  0xac   : > { %v364_v10 = vpop.xlane.xlu0 %363 }
  0xad   : > { %v366_v11 = vmul.f32 0.03125, %v364_v10 }
  0xaf   : > { %v367_v12 = vadd.f32 1e-06, %v366_v11 }
  0xb0   : > { %v473_v18 = vpop.permute.xlu0 %472 }
  0xb1   : > { %1995 = vrsqrt.f32 %v367_v12 }
  0xbb   : > { %v1996_v13 = vpop.eup %1995 }
  0xbc   : > { %v369_v15 = vmul.f32 %v1996_v13, %v2229_v2 }
  0xbe   : > { %v376_v16 = vmul.f32 %v1700_v14, %v369_v15 }
  0xc0   : > { %v377_v17 = vpack.c.bf16 %v376_v16, %v376_v16 }
  0xc2   : > { %1788 = vmatmul.mubr.msk.bf16.vlgmr.msra.gmra.mrb[0].mxu0 %vm361_vm0, %v377_v17 }
  0xc3   : > { %1793 = vmatprep.mubr.msk.bf16.mxu0 %vm2084_vm1, %v2083_v6 }
 0x195   : > { %v2269_v19 = vpop.f32.mrb[0].mxu0 }
 0x196   : > { %v475_v20 = vmul.f32 %v473_v18, %v2269_v19  ;;  %v1789_v21 = vpop.f32.mrb[1].mxu0  ;;  %v461_v22 = vmul.f32 %v2251_v8, %v2269_v19  ;;  %v489_v26 = vmul.f32 %v487_v25, %v2269_v19  ;;  %v471_v29 = vmul.f32 %v469_v27, %v2269_v19 }
 0x197   : > { %v434_v23 = vpop.f32.mrb[2].mxu0  ;;  %v485_v33 = vmul.f32 %v483_v28, %v2269_v19  ;;  %v444_v48 = vmul.f32 %v2258_v9, %v2269_v19 }
 0x198   : > { %463 = vrot.lane.b32.xlu0 %v461_v22, %s2087_s18  ;;  %v1790_v24 = vpop.f32.mrb[3].mxu0  ;;  %477 = vrot.lane.b32.xlu1 %v475_v20, %s2088_s20  ;;  %v2333_v22 = vpack.c.bf16 %v2269_v19, %v2269_v19 }
 0x19c   : > { %491 = vrot.lane.b32.xlu1 %v489_v26, %s2087_s18 }
 0x1a0   : > { %446 = vrot.lane.b32.xlu1 %v2251_v8, %s2087_s18 }
 0x1a4   : > { %457 = vrot.lane.b32.xlu1 %v2258_v9, %s2087_s18 }
 0x20a   : > { %v478_v30 = vpop.permute.xlu1 %477  ;;  %v464_v41 = vpop.permute.xlu0 %463 }
 0x20b   : > { %v480_v31 = vsub.f32 %v471_v29, %v478_v30 }
 0x20d   : > { %v481_v32 = vpack.c.bf16 %v480_v31, %v480_v31 }
 0x20e   : > { %v492_v34 = vpop.permute.xlu1 %491 }
 0x20f   : > { %v494_v35 = vadd.f32 %v492_v34, %v485_v33  ;;  %551 = vrot.lane.b32.xlu0 %v481_v32, %s2089_s21  ;;  %s2098_s21 = smov 88  }
 0x211   : > { %v495_v36 = vpack.c.bf16 %v494_v35, %v494_v35 }
 0x212   : > { %v447_v37 = vpop.permute.xlu1 %446 }
 0x213   : > { %501 = vrot.lane.b32.xlu1 %v495_v36, %s2090_s25  ;;  %v449_v38 = vmul.f32 %v447_v37, %v2269_v19  ;;  %s2099_s25 = smov 120  }
 0x216   : > { %v458_v39 = vpop.permute.xlu1 %457 }
 0x217   : > { %v460_v40 = vmul.f32 %v458_v39, %v2269_v19  ;;  %451 = vrot.lane.b32.xlu1 %v449_v38, %s2088_s20 }
 0x219   : > { %v466_v42 = vadd.f32 %v464_v41, %v460_v40 }
 0x21b   : > { %v467_v43 = vpack.c.bf16 %v466_v42, %v466_v42  ;;  %713 = vrot.lane.b32.xlu1 %v2251_v8, %s2091_s26 }
 0x21d   : > { %498 = vrot.lane.b32.xlu0 %v467_v43, %s2088_s20 }
 0x21f   : > { %685 = vrot.lane.b32.xlu1 %v2251_v8, %s2092_s27 }
 0x223   : > { %699 = vrot.lane.b32.xlu1 %v2251_v8, %s2093_s28 }
 0x227   : > { %671 = vrot.lane.b32.xlu1 %v2251_v8, %s2094_s29 }
 0x22b   : > { %709 = vrot.lane.b32.xlu1 %v2258_v9, %s2093_s28  ;;  %s2100_s28 = smov 48  }
 0x281   : > { %v552_v44 = vpop.permute.xlu0 %551 }
 0x282   : > { %v557_v45 = vsel %vm503_vm2, %v552_v44, 0 }
 0x283   : > { %1798 = vmatpush3.bf16.xpose.msra.mxu1 %v557_v45 }
 0x284   : > { %1821 = vmatprep.subr.bf16.mxu1 %v2083_v6 }
 0x285   : > { %v502_v46 = vpop.permute.xlu1 %501 }
 0x286   : > { %v508_v47 = vsel %vm503_vm2, %v502_v46, 0 }
 0x287   : > { %1792 = vmatpush3.bf16.xpose.msra.mxu0 %v508_v47 }
 0x288   : > { %1803 = vmatprep.subr.bf16.mxu0 %v2083_v6 }
 0x289   : > { %v452_v49 = vpop.permute.xlu1 %451 }
 0x28a   : > { %v454_v50 = vsub.f32 %v444_v48, %v452_v49 }
 0x28c   : > { %v455_v51 = vpack.c.bf16 %v454_v50, %v454_v50 }
 0x28d   : > { %v714_v52 = vpop.permute.xlu1 %713 }
 0x28e   : > { %v716_v53 = vmul.f32 %v714_v52, %v2269_v19  ;;  %1800 = vmatmul.mubr.msk.bf16.vlgmr.msra.gmra.mrb[0].mxu1 %vm503_vm2, %v455_v51 }
 0x28f   : > { %v499_v54 = vpop.permute.xlu0 %498  ;;  %1823 = vmatprep.mubr.msk.bf16.mxu1 %vm2084_vm1, %v2083_v6 }
 0x290   : > { %718 = vrot.lane.b32.xlu1 %v716_v53, %s2087_s18  ;;  %1794 = vmatmul.mubr.msk.bf16.vlgmr.msra.gmra.mrb[4].mxu0 %vm503_vm2, %v499_v54 }
 0x291   : > { %v686_v55 = vpop.permute.xlu1 %685  ;;  %1805 = vmatprep.mubr.msk.bf16.mxu0 %vm2084_vm1, %v2083_v6 }
 0x292   : > { %v688_v57 = vmul.f32 %v686_v55, %v2269_v19 }
 0x294   : > { %681 = vrot.lane.b32.xlu1 %v2258_v9, %s2094_s29  ;;  %s2590_s29 = smov 16  }
 0x295   : > { %v700_v56 = vpop.permute.xlu1 %699 }
 0x296   : > { %v702_v58 = vmul.f32 %v700_v56, %v2269_v19 }
 0x298   : > { %690 = vrot.lane.b32.xlu1 %v688_v57, %s2087_s18 }
 0x299   : > { %v672_v59 = vpop.permute.xlu1 %671 }
 0x29a   : > { %v674_v60 = vmul.f32 %v672_v59, %v2269_v19 }
 0x29c   : > { %695 = vrot.lane.b32.xlu1 %v2258_v9, %s2091_s26 }
 0x29d   : > { %v710_v16 = vpop.permute.xlu1 %709 }
 0x29e   : > { %v712_v20 = vmul.f32 %v710_v16, %v2269_v19 }
 0x2a0   : > { %667 = vrot.lane.b32.xlu1 %v2258_v9, %s2092_s27 }
 0x2a4   : > { %676 = vrot.lane.b32.xlu1 %v674_v60, %s2088_s20 }
 0x302   : > { %v719_v17 = vpop.permute.xlu1 %718 }
 0x303   : > { %v721_v21 = vadd.f32 %v719_v17, %v712_v20 }
 0x305   : > { %v722_v25 = vpack.c.bf16 %v721_v21, %v721_v21 }
 0x306   : > { %v682_v18 = vpop.permute.xlu1 %681 }
 0x307   : > { %v684_v24 = vmul.f32 %v682_v18, %v2269_v19 }
 0x30a   : > { %v691_v23 = vpop.permute.xlu1 %690 }
 0x30b   : > { %v693_v26 = vadd.f32 %v691_v23, %v684_v24 }
 0x30d   : > { %v694_v27 = vpack.c.bf16 %v693_v26, %v693_v26 }
 0x30e   : > { %v696_v28 = vpop.permute.xlu1 %695 }
 0x30f   : > { %v698_v32 = vmul.f32 %v696_v28, %v2269_v19 }
 0x312   : > { %v668_v29 = vpop.permute.xlu1 %667 }
 0x313   : > { %v670_v36 = vmul.f32 %v668_v29, %v2269_v19 }
 0x316   : > { %v677_v34 = vpop.permute.xlu1 %676 }
 0x317   : > { %v679_v38 = vsub.f32 %v670_v36, %v677_v34 }
 0x319   : > { %v680_v42 = vpack.c.bf16 %v679_v38, %v679_v38 }
 0x361   : > { %v593_v62 = vpop.f32.mrb[0].mxu1 }
 0x362   : > { %v1801_v1 = vpop.f32.mrb[1].mxu1 }
 0x363   : > { %v544_v3 = vpop.f32.mrb[4].mxu0  ;;  %v596_v4 = vpop.f32.mrb[2].mxu1 }
 0x364   : > { %v594_v5 = vadd.f32 %v593_v62, %v544_v3  ;;  %v1795_v7 = vpop.f32.mrb[5].mxu0  ;;  %v1802_v10 = vpop.f32.mrb[3].mxu1 }
 0x365   : > { %v547_v11 = vpop.f32.mrb[6].mxu0 }
 0x366   : > { %v599_v12 = vmul.f32 0.35355338, %v594_v5  ;;  %v1796_v13 = vpop.f32.mrb[7].mxu0 }
 0x368   : > { %v600_v14 = vsel %vm443_vm3, %v599_v12, -3.4028235e+38 }
 0x369   : > { %v602_v15 = vsel %vm601_vm4, %v600_v14, -inf }
 0x36a   : > { %603 = vmax.xlane.f32.xlu0 %v602_v15 }
 0x380   : > { %704 = vrot.lane.b32.xlu0 %v702_v58, %s2088_s20 }
 0x384   : > { %615 = vrot.lane.b32.xlu0 %v2333_v22, %s2095_s30  ;;  %s2102_s30 = smov 52  }
 0x388   : > { %727 = vrot.lane.b32.xlu0 %v722_v25, %s2096_s11  ;;  %s2103_s11 = smov 20  }
 0x38c   : > { %724 = vrot.lane.b32.xlu0 %v694_v27, %s2097_s12  ;;  %s2104_s12 = smov 56  }
 0x3f7   : > { %v604_v30 = vpop.xlane.xlu0 %603 }
 0x3f8   : > { %v605_v31 = vsub.f32 %v600_v14, %v604_v30 }
 0x3fa   : > { %v606_v33 = vmul.f32 1.442695, %v605_v31 }
 0x3fb   : > { %v705_v35 = vpop.permute.xlu0 %704 }
 0x3fc   : > { %1997 = vpow2.f32 %v606_v33  ;;  %v707_v37 = vsub.f32 %v698_v32, %v705_v35 }
 0x3fe   : > { %v708_v39 = vpack.c.bf16 %v707_v37, %v707_v37 }
 0x3ff   : > { %v616_v40 = vpop.permute.xlu0 %615 }
 0x400   : > { %v622_v41 = vsel %vm620_vm5, %v616_v40, 0  ;;  %779 = vrot.lane.b32.xlu0 %v708_v39, %s2098_s21  ;;  %s2105_s21 = smov 76  }
 0x401   : > { %1804 = vmatpush3.bf16.msra.mxu0 %v622_v41 }
 0x402   : > { %1809 = vmatprep.subr.bf16.mxu0 %v2083_v6 }
 0x403   : > { %v728_v45 = vpop.permute.xlu0 %727 }
 0x404   : > { %776 = vrot.lane.b32.xlu0 %v680_v42, %s2099_s25  ;;  %v733_v59 = vsel %vm503_vm2, %v728_v45, 0  ;;  %s2106_s25 = smov 108  }
 0x406   : > { %v1998_v43 = vpop.eup %1997 }
 0x407   : > { %v608_v44 = vsel %vm601_vm4, %v1998_v43, 0.0  ;;  %v725_v46 = vpop.permute.xlu0 %724 }
 0x408   : > { %609 = vadd.xlane.f32.xlu1 %v608_v44  ;;  %944 = vrot.lane.b32.xlu0 %v2251_v8, %s2100_s28 }
 0x419   : > { %916 = vrot.lane.b32.xlu1 %v2251_v8, %s2590_s29 }
 0x41d   : > { %930 = vrot.lane.b32.xlu1 %v2251_v8, %s2102_s30 }
 0x421   : > { %902 = vrot.lane.b32.xlu1 %v2251_v8, %s2103_s11 }
 0x425   : > { %940 = vrot.lane.b32.xlu1 %v2258_v9, %s2102_s30  ;;  %s2107_s30 = smov 80  }
 0x472   : > { %v780_v47 = vpop.permute.xlu0 %779 }
 0x473   : > { %v785_v62 = vsel %vm503_vm2, %v780_v47, 0 }
 0x476   : > { %v777_v48 = vpop.permute.xlu0 %776 }
 0x47a   : > { %v945_v49 = vpop.permute.xlu0 %944 }
 0x47b   : > { %v947_v50 = vmul.f32 %v945_v49, %v2269_v19 }
 0x47d   : > { %949 = vrot.lane.b32.xlu1 %v947_v50, %s2087_s18 }
 0x495   : > { %v610_v51 = vpop.xlane.xlu1 %609 }
 0x496   : > { %1999 = vrcp.f32 %v610_v51 }
 0x499   : > { %v917_v52 = vpop.permute.xlu1 %916 }
 0x49a   : > { %v919_v53 = vmul.f32 %v917_v52, %v2269_v19 }
 0x49c   : > { %921 = vrot.lane.b32.xlu1 %v919_v53, %s2087_s18 }
 0x49d   : > { %v931_v54 = vpop.permute.xlu1 %930 }
 0x49e   : > { %v933_v57 = vmul.f32 %v931_v54, %v2269_v19 }
 0x4a0   : > { %v2000_v55 = vpop.eup %1999  ;;  %926 = vrot.lane.b32.xlu1 %v2258_v9, %s2100_s28 }
 0x4a1   : > { %v612_v56 = vmul.f32 %v2000_v55, %v1998_v43  ;;  %v903_v60 = vpop.permute.xlu1 %902 }
 0x4a2   : > { %v905_v61 = vmul.f32 %v903_v60, %v2269_v19 }
 0x4a3   : > { %v613_v58 = vpack.c.bf16 %v612_v56, %v612_v56 }
 0x4a4   : > { %935 = vrot.lane.b32.xlu1 %v933_v57, %s2088_s20 }
 0x4a5   : > { %1806 = vmatmul.mubr.msk.bf16.vlgmr.msra.gmra.mrb[8].mxu0 %vm601_vm4, %v613_v58  ;;  %v941_v1 = vpop.permute.xlu1 %940 }
 0x4a6   : > { %1810 = vmatpush3.bf16.xpose.msra.mxu0 %v733_v59  ;;  %1811 = vmatprep.mubr.msk.bf16.mxu0 %vm2084_vm1, %v2083_v6  ;;  %v943_v3 = vmul.f32 %v941_v1, %v2269_v19 }
 0x4a7   : > { %1815 = vmatprep.subr.bf16.mxu0 %v2083_v6 }
 0x4a8   : > { %898 = vrot.lane.b32.xlu1 %v2258_v9, %s2590_s29  ;;  %s2110_s29 = smov 60  }
 0x4ac   : > { %907 = vrot.lane.b32.xlu1 %v905_v61, %s2088_s20 }
 0x4ad   : > { %1812 = vmatmul.mubr.msk.bf16.vlgmr.msra.gmra.mrb[12].mxu0 %vm503_vm2, %v725_v46 }
 0x4ae   : > { %1816 = vmatpush3.bf16.xpose.msra.mxu0 %v785_v62  ;;  %1817 = vmatprep.mubr.msk.bf16.mxu0 %vm2084_vm1, %v2083_v6 }
 0x4af   : > { %1839 = vmatprep.subr.bf16.mxu0 %v2083_v6 }
 0x4b0   : > { %841 = vrot.lane.b32.xlu1 %v2333_v22, %s2104_s12 }
 0x4b9   : > { %1818 = vmatmul.mubr.msk.bf16.vlgmr.msra.gmra.mrb[12].mxu0 %vm503_vm2, %v777_v48 }
 0x4ba   : > { %1841 = vmatprep.mubr.msk.bf16.mxu0 %vm2084_vm1, %v2083_v6 }
 0x4ef   : > { %v950_v4 = vpop.permute.xlu1 %949 }
 0x4f0   : > { %v952_v5 = vadd.f32 %v950_v4, %v943_v3 }
 0x4f2   : > { %v953_v7 = vpack.c.bf16 %v952_v5, %v952_v5 }
 0x4f4   : > { %958 = vrot.lane.b32.xlu1 %v953_v7, %s2105_s21  ;;  %s2109_s21 = smov 24  }
 0x50e   : > { %v922_v10 = vpop.permute.xlu1 %921 }
 0x512   : > { %v927_v11 = vpop.permute.xlu1 %926 }
 0x513   : > { %v929_v12 = vmul.f32 %v927_v11, %v2269_v19 }
 0x516   : > { %v936_v13 = vpop.permute.xlu1 %935 }
 0x517   : > { %v938_v14 = vsub.f32 %v929_v12, %v936_v13 }
 0x519   : > { %v939_v42 = vpack.c.bf16 %v938_v14, %v938_v14 }
 0x51a   : > { %v899_v15 = vpop.permute.xlu1 %898 }
 0x51b   : > { %v901_v16 = vmul.f32 %v899_v15, %v2269_v19 }
 0x51e   : > { %v908_v17 = vpop.permute.xlu1 %907 }
 0x51f   : > { %v910_v18 = vsub.f32 %v901_v16, %v908_v17 }
 0x521   : > { %v911_v45 = vpack.c.bf16 %v910_v18, %v910_v18 }
 0x522   : > { %v842_v20 = vpop.permute.xlu1 %841 }
 0x523   : > { %v847_v21 = vsel %vm620_vm5, %v842_v20, 0 }
 0x524   : > { %1822 = vmatpush3.bf16.msra.mxu1 %v847_v21 }
 0x525   : > { %1827 = vmatprep.subr.bf16.mxu1 %v2083_v6 }
 0x566   : > { %v959_v51 = vpop.permute.xlu1 %958 }
 0x567   : > { %v964_v56 = vsel %vm503_vm2, %v959_v51, 0 }
 0x578   : > { %v658_v23 = vpop.f32.mrb[8].mxu0 }
 0x579   : > { %v664_v24 = vpack.c.bf16 %v658_v23, %v658_v23  ;;  %v1807_v25 = vpop.f32.mrb[9].mxu0 }
 0x57a   : > { %v661_v26 = vpop.f32.mrb[10].mxu0 }
 0x57b   : > { %666 = vst.msk [vmem:[#allocation2] sm:$0xf] %vm665_vm6, %v664_v24  ;;  %v1808_v27 = vpop.f32.mrb[11].mxu0 }
 0x58c   : > { %v821_v28 = vpop.f32.mrb[12].mxu0 }
 0x58d   : > { %v827_v29 = vmul.f32 0.35355338, %v821_v28  ;;  %v1819_v30 = vpop.f32.mrb[13].mxu0 }
 0x58e   : > { %v824_v31 = vpop.f32.mrb[14].mxu0 }
 0x58f   : > { %v1820_v32 = vpop.f32.mrb[15].mxu0  ;;  %v828_v33 = vsel %vm443_vm3, %v827_v29, -3.4028235e+38 }
 0x590   : > { %v829_v34 = vsel %vm601_vm4, %v828_v33, -inf }
 0x591   : > { %830 = vmax.xlane.f32.xlu0 %v829_v34 }
 0x5a7   : > { %912 = vrot.lane.b32.xlu0 %v2258_v9, %s2103_s11  ;;  %s2108_s11 = smov 112  }
 0x61e   : > { %v831_v35 = vpop.xlane.xlu0 %830 }
 0x61f   : > { %v832_v36 = vsub.f32 %v828_v33, %v831_v35 }
 0x621   : > { %v833_v37 = vmul.f32 1.442695, %v832_v36 }
 0x622   : > { %v913_v38 = vpop.permute.xlu0 %912 }
 0x623   : > { %2001 = vpow2.f32 %v833_v37  ;;  %v915_v39 = vmul.f32 %v913_v38, %v2269_v19 }
 0x625   : > { %v924_v40 = vadd.f32 %v922_v10, %v915_v39 }
 0x627   : > { %v925_v41 = vpack.c.bf16 %v924_v40, %v924_v40 }
 0x629   : > { %955 = vrot.lane.b32.xlu1 %v925_v41, %s2106_s25  ;;  %s2111_s25 = smov 28  }
 0x62d   : > { %v2002_v43 = vpop.eup %2001  ;;  %1010 = vrot.lane.b32.xlu1 %v939_v42, %s2107_s30 }
 0x62e   : > { %v835_v44 = vsel %vm601_vm4, %v2002_v43, 0.0 }
 0x62f   : > { %836 = vadd.xlane.f32.xlu0 %v835_v44 }
 0x631   : > { %1007 = vrot.lane.b32.xlu1 %v911_v45, %s2108_s11 }
 0x635   : > { %1175 = vrot.lane.b32.xlu1 %v2251_v8, %s2104_s12 }
 0x645   : > { %1147 = vrot.lane.b32.xlu0 %v2251_v8, %s2109_s21 }
 0x649   : > { %1161 = vrot.lane.b32.xlu0 %v2251_v8, %s2110_s29 }
 0x64d   : > { %1133 = vrot.lane.b32.xlu0 %v2251_v8, %s2111_s25 }
 0x651   : > { %1171 = vrot.lane.b32.xlu0 %v2258_v9, %s2110_s29  ;;  %s2115_s29 = smov 104  }
 0x655   : > { %1143 = vrot.lane.b32.xlu0 %v2258_v9, %s2111_s25 }
 0x69b   : > { %v956_v55 = vpop.permute.xlu1 %955 }
 0x69f   : > { %v1011_v60 = vpop.permute.xlu1 %1010 }
 0x6a0   : > { %v1016_v61 = vsel %vm503_vm2, %v1011_v60, 0 }
 0x6a3   : > { %v1008_v62 = vpop.permute.xlu1 %1007 }
 0x6a7   : > { %v1176_v29 = vpop.permute.xlu1 %1175 }
 0x6a8   : > { %v1178_v30 = vmul.f32 %v1176_v29, %v2269_v19 }
 0x6bc   : > { %v837_v46 = vpop.xlane.xlu0 %836 }
 0x6bd   : > { %2003 = vrcp.f32 %v837_v46 }
 0x6c0   : > { %v1148_v47 = vpop.permute.xlu0 %1147 }
 0x6c1   : > { %v1150_v48 = vmul.f32 %v1148_v47, %v2269_v19 }
 0x6c3   : > { %1152 = vrot.lane.b32.xlu0 %v1150_v48, %s2087_s18 }
 0x6c4   : > { %v1162_v49 = vpop.permute.xlu0 %1161 }
 0x6c5   : > { %v1164_v8 = vmul.f32 %v1162_v49, %v2269_v19 }
 0x6c7   : > { %v2004_v50 = vpop.eup %2003  ;;  %1157 = vrot.lane.b32.xlu0 %v2258_v9, %s2104_s12  ;;  %s2593_s12 = smov 16  }
 0x6c8   : > { %v839_v52 = vmul.f32 %v2004_v50, %v2002_v43  ;;  %v1134_v53 = vpop.permute.xlu0 %1133 }
 0x6c9   : > { %v1136_v58 = vmul.f32 %v1134_v53, %v2269_v19 }
 0x6ca   : > { %v840_v54 = vpack.c.bf16 %v839_v52, %v839_v52 }
 0x6cb   : > { %1166 = vrot.lane.b32.xlu0 %v1164_v8, %s2088_s20 }
 0x6cc   : > { %1824 = vmatmul.mubr.msk.bf16.vlgmr.msra.gmra.mrb[4].mxu1 %vm601_vm4, %v840_v54  ;;  %v1172_v57 = vpop.permute.xlu0 %1171 }
 0x6cd   : > { %1828 = vmatpush3.bf16.xpose.msra.mxu1 %v964_v56  ;;  %v1174_v59 = vmul.f32 %v1172_v57, %v2269_v19  ;;  %1829 = vmatprep.mubr.msk.bf16.mxu1 %vm2084_vm1, %v2083_v6 }
 0x6ce   : > { %1833 = vmatprep.subr.bf16.mxu1 %v2083_v6 }
 0x6cf   : > { %1138 = vrot.lane.b32.xlu0 %v1136_v58, %s2088_s20  ;;  %s2112_s20 = smov 68  }
 0x6d0   : > { %v1144_v1 = vpop.permute.xlu0 %1143 }
 0x6d1   : > { %v1146_v3 = vmul.f32 %v1144_v1, %v2269_v19 }
 0x6d3   : > { %1072 = vrot.lane.b32.xlu0 %v2333_v22, %s2100_s28  ;;  %s2113_s28 = smov 100  }
 0x6d4   : > { %1830 = vmatmul.mubr.msk.bf16.vlgmr.msra.gmra.mrb[8].mxu1 %vm503_vm2, %v956_v55 }
 0x6d5   : > { %1834 = vmatpush3.bf16.xpose.msra.mxu1 %v1016_v61  ;;  %1835 = vmatprep.mubr.msk.bf16.mxu1 %vm2084_vm1, %v2083_v6 }
 0x6d6   : > { %1857 = vmatprep.subr.bf16.mxu1 %v2083_v6 }
 0x6e0   : > { %1836 = vmatmul.mubr.msk.bf16.vlgmr.msra.gmra.mrb[8].mxu1 %vm503_vm2, %v1008_v62 }
 0x6e1   : > { %1859 = vmatprep.mubr.msk.bf16.mxu1 %vm2084_vm1, %v2083_v6 }
 0x735   : > { %v1153_v4 = vpop.permute.xlu0 %1152 }
 0x736   : > { %v1155_v5 = vadd.f32 %v1153_v4, %v1146_v3 }
 0x738   : > { %v1156_v38 = vpack.c.bf16 %v1155_v5, %v1155_v5 }
 0x739   : > { %v1158_v7 = vpop.permute.xlu0 %1157 }
 0x73a   : > { %v1160_v10 = vmul.f32 %v1158_v7, %v2269_v19 }
 0x73d   : > { %v1167_v11 = vpop.permute.xlu0 %1166 }
 0x73e   : > { %v1169_v12 = vsub.f32 %v1160_v10, %v1167_v11 }
 0x740   : > { %v1170_v41 = vpack.c.bf16 %v1169_v12, %v1169_v12 }
 0x741   : > { %v1139_v13 = vpop.permute.xlu0 %1138 }
 0x745   : > { %v1073_v14 = vpop.permute.xlu0 %1072 }
 0x746   : > { %v1078_v15 = vsel %vm620_vm5, %v1073_v14, 0 }
 0x747   : > { %1840 = vmatpush3.bf16.msra.mxu0 %v1078_v15 }
 0x748   : > { %1845 = vmatprep.subr.bf16.mxu0 %v2083_v6 }
 0x79f   : > { %v2426_v16 = vpop.f32.mrb[4].mxu1 }
 0x7a0   : > { %v1825_v17 = vpop.f32.mrb[5].mxu1  ;;  %v1741_v1 = vpack.c.bf16 %v2426_v16, %v2426_v16 }
 0x7a1   : > { %v886_v18 = vpop.f32.mrb[6].mxu1 }
 0x7a2   : > { %v1826_v20 = vpop.f32.mrb[7].mxu1  ;;  %v1980_v18 = vld [vmem:[%s2583_s4 + $0x8] sm:$0xff]  }
 0x7b3   : > { %v1052_v21 = vpop.f32.mrb[8].mxu1 }
 0x7b4   : > { %v1058_v23 = vmul.f32 0.35355338, %v1052_v21  ;;  %v1837_v24 = vpop.f32.mrb[9].mxu1 }
 0x7b5   : > { %v1055_v25 = vpop.f32.mrb[10].mxu1 }
 0x7b6   : > { %v1838_v26 = vpop.f32.mrb[11].mxu1  ;;  %v1059_v27 = vsel %vm443_vm3, %v1058_v23, -3.4028235e+38 }
 0x7b7   : > { %v1060_v28 = vsel %vm601_vm4, %v1059_v27, -inf }
 0x7b8   : > { %1061 = vmax.xlane.f32.xlu1 %v1060_v28 }
 0x7c9   : > { %1180 = vrot.lane.b32.xlu1 %v1178_v30, %s2087_s18  ;;  %s2114_s18 = smov 72  }
 0x7cd   : > { %1129 = vrot.lane.b32.xlu1 %v2258_v9, %s2109_s21 }
 0x845   : > { %v1062_v31 = vpop.xlane.xlu1 %1061 }
 0x846   : > { %v1063_v32 = vsub.f32 %v1059_v27, %v1062_v31 }
 0x848   : > { %v1064_v33 = vmul.f32 1.442695, %v1063_v32 }
 0x849   : > { %v1181_v34 = vpop.permute.xlu1 %1180 }
 0x84a   : > { %2005 = vpow2.f32 %v1064_v33  ;;  %v1183_v35 = vadd.f32 %v1181_v34, %v1174_v59 }
 0x84c   : > { %v1184_v36 = vpack.c.bf16 %v1183_v35, %v1183_v35  ;;  %v1983_v35 = vld [vmem:[%s2587_s8 + $0x4] ss:$8 sps:$4 sm:$0xff]  }
 0x84d   : > { %v1130_v37 = vpop.permute.xlu1 %1129 }
 0x84e   : > { %1189 = vrot.lane.b32.xlu0 %v1184_v36, %s2112_s20  ;;  %v1132_v39 = vmul.f32 %v1130_v37, %v2269_v19  ;;  %v1981_v36 = vld [vmem:[%s2587_s8] ss:$8 sps:$4 sm:$0xff]   ;;  %v1986_v37 = vld [vmem:[%s2587_s8 + $0x14] ss:$8 sps:$4 sm:$0xff]   ;;  %s2117_s20 = smov [#allocation3]  }
 0x850   : > { %v1141_v42 = vsub.f32 %v1132_v39, %v1139_v13 }
 0x852   : > { %1186 = vrot.lane.b32.xlu0 %v1156_v38, %s2113_s28  ;;  %v1142_v43 = vpack.c.bf16 %v1141_v42, %v1141_v42  ;;  %v2116_v38 = vmov 0   ;;  %s2023_s28 = sshll.u32 %s2117_s20, 4  ;;  %s2024_s28 = int_to_ptr.vmem [resolvable:$false] %s2023_s28 }
 0x854   : > { %v2006_v40 = vpop.eup %2005 }
 0x855   : > { %v1066_v9 = vsel %vm601_vm4, %v2006_v40, 0.0 }
 0x856   : > { %1067 = vadd.xlane.f32.xlu1 %v1066_v9  ;;  %1241 = vrot.lane.b32.xlu0 %v1170_v41, %s2114_s18  ;;  %v1722_v9 = vld [vmem:[%s2586_s7] ss:$0 sm:$0xff]  ;;  %s348_s18 = sand.u32 1, %s2073_s14  }
 0x85a   : > { %1238 = vrot.lane.b32.xlu0 %v1142_v43, %s2115_s29  ;;  %s1698_s29 = sshll.u32 %s348_s18, 3 }
 0x8c0   : > { %v1190_v45 = vpop.permute.xlu0 %1189 }
 0x8c1   : > { %v1195_v49 = vsel %vm503_vm2, %v1190_v45, 0 }
 0x8c4   : > { %v1187_v19 = vpop.permute.xlu0 %1186 }
 0x8c8   : > { %v1242_v50 = vpop.permute.xlu0 %1241 }
 0x8c9   : > { %v1247_v51 = vsel %vm503_vm2, %v1242_v50, 0  ;;  %v1992_v50 = vld [vmem:[%s2588_s9 + $0x28] sm:$0xff]  }
 0x8cc   : > { %v1239_v52 = vpop.permute.xlu0 %1238 }
 0x8e3   : > { %v1068_v44 = vpop.xlane.xlu1 %1067 }
 0x8e4   : > { %2007 = vrcp.f32 %v1068_v44 }
 0x8ee   : > { %v2008_v46 = vpop.eup %2007 }
 0x8ef   : > { %v1070_v47 = vmul.f32 %v2008_v46, %v2006_v40  ;;  %v1987_v46 = vld [vmem:[%s2588_s9] sm:$0xff]  }
 0x8f1   : > { %v1071_v48 = vpack.c.bf16 %v1070_v47, %v1070_v47  ;;  %v1988_v47 = vld [vmem:[%s2588_s9 + $0x8] sm:$0xff]  }
 0x8f3   : > { %1842 = vmatmul.mubr.msk.bf16.vlgmr.msra.gmra.mrb[16].mxu0 %vm601_vm4, %v1071_v48  ;;  %v1989_v48 = vld [vmem:[%s2588_s9 + $0x10] sm:$0xff]  }
 0x8f4   : > { %1846 = vmatpush3.bf16.xpose.msra.mxu0 %v1195_v49  ;;  %1847 = vmatprep.mubr.msk.bf16.mxu0 %vm2084_vm1, %v2083_v6  ;;  %v1991_v49 = vld [vmem:[%s2588_s9 + $0x20] sm:$0xff]  }
 0x8f5   : > { %1851 = vmatprep.subr.bf16.mxu0 %v2083_v6 }
 0x8fb   : > { %1848 = vmatmul.mubr.msk.bf16.vlgmr.msra.gmra.mrb[20].mxu0 %vm503_vm2, %v1187_v19  ;;  %v1990_v19 = vld [vmem:[%s2588_s9 + $0x18] sm:$0xff]  }
 0x8fc   : > { %1852 = vmatpush3.bf16.xpose.msra.mxu0 %v1247_v51  ;;  %1853 = vmatprep.mubr.msk.bf16.mxu0 %vm2084_vm1, %v2083_v6  ;;  %v1993_v51 = vld [vmem:[%s2588_s9 + $0x30] sm:$0xff]  }
 0x8fd   : > { %1465 = vmatprep.subr.bf16.mxu0 %v1983_v35 }
 0x907   : > { %1854 = vmatmul.mubr.msk.bf16.vlgmr.msra.gmra.mrb[20].mxu0 %vm503_vm2, %v1239_v52  ;;  %v1994_v52 = vld [vmem:[%s2588_s9 + $0x38] sm:$0xff]  }
 0x908   : > { %1466 = vmatpush1.bf16.msra.mxu0 %v1981_v36  ;;  %1497 = vmatprep.mubr.bf16.mxu0 %v2116_v38 }
 0x909   : > { %1467 = vmatprep.subr.bf16.mxu0 %v1986_v37 }
 0x9c6   : > { %v1114_v53 = vpop.f32.mrb[16].mxu0 }
 0x9c7   : > { %v1843_v8 = vpop.f32.mrb[17].mxu0  ;;  %v1742_v63 = vpack.c.bf16 %v1114_v53, %v1114_v53 }
 0x9c8   : > { %v1117_v54 = vpop.f32.mrb[18].mxu0 }
 0x9c9   : > { %v1844_v55 = vpop.f32.mrb[19].mxu0 }
 0x9da   : > { %v1283_v56 = vpop.f32.mrb[20].mxu0 }
 0x9db   : > { %v1289_v57 = vmul.f32 0.35355338, %v1283_v56  ;;  %v1855_v58 = vpop.f32.mrb[21].mxu0 }
 0x9dc   : > { %v1286_v59 = vpop.f32.mrb[22].mxu0 }
 0x9dd   : > { %v1856_v60 = vpop.f32.mrb[23].mxu0  ;;  %v1290_v61 = vsel %vm443_vm3, %v1289_v57, -3.4028235e+38 }
 0x9de   : > { %v1291_v62 = vsel %vm601_vm4, %v1290_v61, -inf }
 0x9df   : > { %1292 = vmax.xlane.f32.xlu0 %v1291_v62 }
 0x9f5   : > { %893 = vrot.lane.b32.xlu0 %v1741_v1, %s2092_s27 }
 0xa6c   : > { %v1293_v3 = vpop.xlane.xlu0 %1292 }
 0xa6d   : > { %v1294_v4 = vsub.f32 %v1290_v61, %v1293_v3 }
 0xa6f   : > { %v1295_v5 = vmul.f32 1.442695, %v1294_v4 }
 0xa70   : > { %v894_v7 = vpop.permute.xlu0 %893 }
 0xa71   : > { %2009 = vpow2.f32 %v1295_v5  ;;  %897 = vst.msk [vmem:[#allocation2] sm:$0xf] %vm896_vm7, %v894_v7 }
 0xa7b   : > { %v2010_v10 = vpop.eup %2009 }
 0xa7c   : > { %v1297_v11 = vsel %vm601_vm4, %v2010_v10, 0.0 }
 0xa7d   : > { %1298 = vadd.xlane.f32.xlu1 %v1297_v11 }
 0xa8e   : > { %1303 = vrot.lane.b32.xlu1 %v2333_v22, %s2091_s26  ;;  %v1979_v22 = vld [vmem:[%s2583_s4] sm:$0xff]   ;;  %s350_s26 = scalar_lea.vmem [#allocation3], %s1698_s29  ;;  %s2025_s29 = scalar_lea.vmem %s2024_s28, 256 }
 0xa8f   : > { %s1635_s27 = sshll.u32 %s350_s26, 4  ;;  %s2538_s27 = int_to_ptr.vmem [resolvable:$true] %s1635_s27 }
 0xa90   : > { %s2019_s25 = scalar_lea.vmem %s2538_s27, 128  ;;  %p2026_p0 = scmp.lt.s32.totalorder %s2538_s27, %s2024_s28 }
 0xa91   : > { %p2020_p11 = scmp.ne.s32.totalorder %s2538_s27, %s2019_s25  ;;  %p2027_p1 = scmp.lt.s32.totalorder %s2025_s29, %s2019_s25 }
 0xa92   : > { %1124 = vrot.lane.b32.xlu1 %v1742_v63, %s2593_s12  ;;  %s1738_s12 = sshll.u32 %s2194_s17, 7  ;;  %s1622_s17 = scalar_lea.sflag [#allocation4], %s348_s18 }
 0xa93   : > { %p2021_p12 = pnand %p2020_p11, %p2211_p5  ;;  %p2028_p2 = por %p2027_p1, %p2026_p0 }
 0xa95   : > { %p2022_p13 = pneg %p2021_p12 }
 0xa97   : > { %p2029_p3 = pnand %p2028_p2, %p2022_p13 }
 0xb0a   : > { %v1299_v0 = vpop.xlane.xlu1 %1298 }
 0xb0b   : > { %2011 = vrcp.f32 %v1299_v0 }
 0xb0e   : > { %v1304_v12 = vpop.permute.xlu1 %1303 }
 0xb0f   : > { %v1309_v13 = vsel %vm620_vm5, %v1304_v12, 0 }
 0xb10   : > { %1858 = vmatpush3.bf16.msra.mxu1 %v1309_v13 }
 0xb11   : > { %1863 = vmatprep.subr.bf16.mxu1 %v2083_v6 }
 0xb12   : > { %v1125_v14 = vpop.permute.xlu1 %1124 }
 0xb13   : > { %1128 = vst.msk [vmem:[#allocation2] sm:$0xf] %vm1127_vm8, %v1125_v14 }
 0xb15   : > { %v2012_v15 = vpop.eup %2011 }
 0xb16   : > { %v1301_v16 = vmul.f32 %v2012_v15, %v2010_v10 }
 0xb18   : > { %v1302_v17 = vpack.c.bf16 %v1301_v16, %v1301_v16 }
 0xb1a   : > { %1860 = vmatmul.mubr.msk.bf16.vlgmr.msra.gmra.mrb[12].mxu1 %vm601_vm4, %v1302_v17 }
 0xb1b   : > { %1867 = vmatprep.mubr.msk.bf16.mxu1 %vm2084_vm1, %v2083_v6  ;;  %1864 = vmatpush3.bf16.msra.mxu1 %v1979_v22 }
 0xb1c   : > { %1865 = vmatprep.subr.bf16.mxu1 %v2083_v6 }
 0xb1f   : > { %1866 = vmatpush3.bf16.msra.mxu1 %v1980_v18 }
 0xb20   : > { %1871 = vmatprep.subr.bf16.mxu1 %v2083_v6 }
 0xbed   : > { %v1345_v20 = vpop.f32.mrb[12].mxu1 }
 0xbee   : > { %v1743_v21 = vpack.c.bf16 %v1345_v20, %v1345_v20  ;;  %v1861_v23 = vpop.f32.mrb[13].mxu1 }
 0xbef   : > { %v1348_v24 = vpop.f32.mrb[14].mxu1 }
 0xbf0   : > { %1355 = vrot.lane.b32.xlu1 %v1743_v21, %s2109_s21  ;;  %v1862_v25 = vpop.f32.mrb[15].mxu1  ;;  %s2536_s21 = scalar_lea.hbm %s2589_s10, %s1738_s12 }
 0xc62   : > { %v1356_v26 = vpop.permute.xlu1 %1355 }
 0xc63   : > { %1359 = vst.msk [vmem:[#allocation2] sm:$0xf] %vm1358_vm9, %v1356_v26 }
 0xc6a   : > { %v1360_v27 = vld [vmem:[#allocation2] sm:$0xf] }
 0xc6b   : > { %1868 = vmatmul.mubr.msk.bf16.vlgmr.msra.gmra.mrb[16].mxu1 %vm361_vm0, %v1360_v27 }
 0xc6c   : > { %1887 = vmatprep.mubr.msk.bf16.mxu1 %vm2084_vm1, %v2083_v6  ;;  %1872 = vmatpush3.bf16.msra.mxu1 %v1987_v46 }
 0xc6d   : > { %1873 = vmatprep.subr.bf16.mxu1 %v2083_v6 }
 0xc70   : > { %1874 = vmatpush3.bf16.msra.mxu1 %v1988_v47 }
 0xc71   : > { %1875 = vmatprep.subr.bf16.mxu1 %v2083_v6 }
 0xc74   : > { %1876 = vmatpush3.bf16.msra.mxu1 %v1989_v48 }
 0xc75   : > { %1877 = vmatprep.subr.bf16.mxu1 %v2083_v6 }
 0xc78   : > { %1878 = vmatpush3.bf16.msra.mxu1 %v1990_v19 }
 0xc79   : > { %1879 = vmatprep.subr.bf16.mxu1 %v2083_v6 }
 0xc7c   : > { %1880 = vmatpush3.bf16.msra.mxu1 %v1991_v49 }
 0xc7d   : > { %1881 = vmatprep.subr.bf16.mxu1 %v2083_v6 }
 0xc80   : > { %1882 = vmatpush3.bf16.msra.mxu1 %v1992_v50 }
 0xc81   : > { %1883 = vmatprep.subr.bf16.mxu1 %v2083_v6 }
 0xc84   : > { %1884 = vmatpush3.bf16.msra.mxu1 %v1993_v51 }
 0xc85   : > { %1885 = vmatprep.subr.bf16.mxu1 %v2083_v6 }
 0xc88   : > { %1886 = vmatpush3.bf16.msra.mxu1 %v1994_v52 }
 0xd3e   : > { %v1414_v28 = vpop.f32.mrb[16].mxu1 }
 0xd3f   : > { %v2477_v29 = vadd.f32 %v1414_v28, %v2229_v2  ;;  %v1869_v30 = vpop.f32.mrb[17].mxu1  ;;  %v1984_v2 = vld [vmem:[%s2587_s8 + $0x10] ss:$8 sps:$4 sm:$0xff]  }
 0xd40   : > { %v1417_v31 = vpop.f32.mrb[18].mxu1  ;;  %1468 = vmatpush1.bf16.msra.mxu0 %v1984_v2 }
 0xd41   : > { %v1870_v32 = vpop.f32.mrb[19].mxu1  ;;  %v1422_v33 = vmul.f32 %v2477_v29, %v2477_v29 }
 0xd43   : > { %v1423_v34 = vsel %vm361_vm0, %v1422_v33, 0.0 }
 0xd44   : > { %1424 = vadd.xlane.f32.xlu1 %v1423_v34 }
 0xdd1   : > { %v1425_v39 = vpop.xlane.xlu1 %1424 }
 0xdd2   : > { %v1426_v40 = vmul.f32 0.03125, %v1425_v39 }
 0xdd4   : > { %v1427_v41 = vadd.f32 1e-06, %v1426_v40 }
 0xdd6   : > { %2013 = vrsqrt.f32 %v1427_v41 }
 0xde0   : > { %v2014_v42 = vpop.eup %2013 }
 0xde1   : > { %v1429_v43 = vmul.f32 %v2014_v42, %v2477_v29 }
 0xde3   : > { %v1436_v44 = vmul.f32 %v1722_v9, %v1429_v43 }
 0xde5   : > { %v1437_v45 = vpack.c.bf16 %v1436_v44, %v1436_v44 }
 0xde7   : > { %1727 = vmatmul.mubr.msk.bf16.vlgmr.msra.gmra.mrb[24].mxu0 %vm361_vm0, %v1437_v45 }
 0xeba   : > { %v1499_v53 = vpop.f32.mrb[24].mxu0 }
 0xebb   : > { %v1728_v8 = vmul.f32 -1.442695, %v1499_v53  ;;  %v1501_v54 = vpop.f32.mrb[25].mxu0 }
 0xebc   : > { %v1503_v55 = vpop.f32.mrb[26].mxu0 }
 0xebd   : > { %2015 = vpow2.f32 %v1728_v8  ;;  %v1504_v56 = vpop.f32.mrb[27].mxu0 }
 0xec7   : > { %v2016_v57 = vpop.eup %2015 }
 0xec8   : > { %v1509_v58 = vadd.f32 1.0, %v2016_v57 }
 0xeca   : > { %2017 = vrcp.f32 %v1509_v58 }
 0xed4   : > { %v2018_v59 = vpop.eup %2017 }
 0xed5   : > { %v1512_v60 = vmul.f32 %v2018_v59, %v1499_v53 }
 0xed7   : > { %v1513_v61 = vmul.f32 %v1512_v60, %v1501_v54 }
 0xed9   : > { %v1514_v6 = vpack.c.bf16 %v1513_v61, %v1513_v61 }
 0xedb   : > { %1888 = vmatmul.mubr.bf16.vlgmr.msra.gmra.mrb[20].mxu1 %v1514_v6 }
 0xfae   : > { %v1613_v62 = vpop.f32.mrb[20].mxu1 }
 0xfaf   : > { %v1619_v1 = vadd.f32 %v1613_v62, %v2477_v29  ;;  %v1889_v3 = vpop.f32.mrb[21].mxu1 }
 0xfb0   : > { %v1616_v4 = vpop.f32.mrb[22].mxu1 }
 0xfb1   : > { %v1890_v5 = vpop.f32.mrb[23].mxu1  ;;  %1620 = vst.msk [vmem:[%s350_s26] sm:$0xff] %vm361_vm0, %v1619_v1 }
 0xfb2   : > { %2032 = shalt.err (!%p2029_p3)
}
 0xfb3   : > { %s2033_s18 = scalar_lea.hbm %s2536_s21, 128  ;;  %s2037_s30 = scalar_lea.hbm %s2589_s10, 256 }
 0xfb4   : > { %p2034_p4 = scmp.ne.s32.totalorder %s2536_s21, %s2033_s18  ;;  %p2038_p9 = scmp.lt.u32.totalorder %s2536_s21, %s2589_s10 }
 0xfb5   : > { %p2039_p10 = scmp.lt.u32.totalorder %s2037_s30, %s2033_s18  ;;  %p2041_p12 = scmp.lt.u32.totalorder %s2033_s18, %s2536_s21 }
 0xfb6   : > { %p2035_p7 = pnand %p2034_p4, %p2211_p5 }
 0xfb7   : > { %p2040_p11 = por %p2039_p10, %p2038_p9 }
 0xfb8   : > { %p2036_p8 = pneg %p2035_p7 }
 0xfb9   : > { %p2042_p13 = por %p2041_p12, %p2040_p11 }
 0xfbb   : > { %p2043_p0 = pnand %p2042_p13, %p2036_p8 }
 0xfbd   : > { %2046 = shalt.err (!%p2043_p0)
}
 0xfbe   : > { %1904 = dma.vmem_to_hbm [thread:$0]  (%p2211_p5), %s2538_s27, 128, %s2536_s21, %s1622_s17  }
 0xfbf PF: > { %p1910_p1 = scmp.ge.s32.totalorder %s2081_s16, 2  ;;  %s1647_s25 = sand.u32 1, %s2069_s13  }
 0xfc0   : > { %s1648_s28 = scalar_lea.sflag [#allocation4], %s1647_s25 }
 0xfc1   : > { %p1907_p2 = pnand %p1910_p1, %p2215_p6 }
 0xfc3   : > { %2064 = dma.done.wait (!%p1907_p2), %s1648_s28, 128  }
 0xfc4   : > { %2066 = vsyncadd (!%p1907_p2), %s1648_s28, 4294967168  ;;  %p20_p3 = scmp.ge.s32.totalorder %s2198_s19, 4   ;;  %s2594_s13 = smov %s2073_s14 }
 0xfc5   : > { %s2595_s14 = smov %s2077_s15  ;;  %s2596_s15 = smov %s2209_s22 }
 0xfc6   : > { %s2597_s16 = smov %s2198_s19  ;;  %22 = sbr.rel (!%p20_p3) target bundleno = 3 (0x3), region = 95 }
 0xfcd   :  { %1653 = vsyncpa [#allocation4], 1 }
 0xfce   :  { %1655 = vsyncpa [#allocation4 + $0x1], 1 }

</bundles_post_ra>
